<compile_context>
chip_gen: v6e
topology: v6e:2x2x1
jax: 0.10.0
libtpu: 0.0.40
codegen_flags: <defaults>
</compile_context>

<pallas_src>
import jax
import jax.numpy as jnp
from jax.experimental import pallas as pl
from jax.experimental.pallas import tpu as pltpu


def _round_up(x, m):
    return (x + m - 1) // m * m


def _go_kernel(x_ref, mask_ref, w1_ref, b1_ref, w2_ref, b2_ref, out_ref,
               num_acc, den_acc):
    # x_ref:    (Bb, t_l, D) bf16  token embeddings for one (batch-block, seq-tile)
    # mask_ref: (Bb, t_l)    f32   1.0 = valid token
    # w1_ref:   (D, D) bf16, b1_ref: (1, D) f32        synthetic bert dense
    # w2_ref:   (D, O_pad) bf16, b2_ref: (1, O_pad) f32  GO linear head
    # out_ref:  (Bb, O_pad)  f32   logits for this batch block
    # num_acc:  (Bb, D) f32  running masked feature sum
    # den_acc:  (Bb, 1) f32  running mask count
    l = pl.program_id(1)

    @pl.when(l == 0)
    def _init():
        num_acc[...] = jnp.zeros_like(num_acc)
        den_acc[...] = jnp.zeros_like(den_acc)

    bb, t_l, d = x_ref.shape

    # --- synthetic "bert" layer: one big MXU matmul over the whole batch block ---
    x = x_ref[...].reshape(bb * t_l, d)          # leading-dim merge (t_l % 8 == 0) -> free
    h = jnp.dot(x, w1_ref[...], preferred_element_type=jnp.float32)
    h = jax.nn.gelu(h + b1_ref[...], approximate=True)   # f32 (v5e: no bf16 VPU/EUP)
    h = h.reshape(bb, t_l, d)

    # --- masked_mean_pooling accumulation: VPU multiply + sublane reduce (off the MXU) ---
    m = mask_ref[...]                             # (Bb, t_l) f32
    num_acc[...] += jnp.sum(h * m[:, :, None], axis=1)        # (Bb, D)
    den_acc[...] += jnp.sum(m, axis=1, keepdims=True)         # (Bb, 1)

    # --- last seq tile: finalize pooling and apply the GO head (M = Bb on the MXU) ---
    @pl.when(l == pl.num_programs(1) - 1)
    def _finalize():
        pooled = num_acc[...] / jnp.maximum(den_acc[...], 1e-9)     # exact divide
        logits = jnp.dot(pooled.astype(jnp.bfloat16), w2_ref[...],
                         preferred_element_type=jnp.float32) + b2_ref[...]
        out_ref[...] = logits.astype(out_ref.dtype)                 # (Bb, O_pad)


def protein_bert_go_forward(seq, mask, emb, w1, b1, w2, b2, *, t_l=None, bb=8):
    """seq: (B, L) int32 token ids, mask: (B, L) {0,1}. Returns (B, out_dim) logits."""
    B, L = seq.shape
    D = emb.shape[1]
    O = w2.shape[1]

    # Sequence tile: >=256 for the 256-wide MXUs (v6e/v7x); a single full tile
    # for short sequences.  Multi-tile requires t_l % 128 == 0 so the mask
    # block stays lane-aligned.
    if t_l is None:
        if L >= 256:
            t_l = 256
        elif L >= 128:
            t_l = 128
        else:
            t_l = _round_up(L, 8)
    l_pad = _round_up(L, t_l)
    num_l = l_pad // t_l
    if num_l > 1 and t_l % 128 != 0:
        raise ValueError("multi-tile sequences require t_l to be a multiple of 128")

    b_pad = _round_up(B, bb)
    num_b = b_pad // bb
    o_pad = _round_up(O, 128)

    # Pad ids / mask (cheap) instead of the (B, L, D) activations.  Pad token 0
    # maps to a finite embedding row; mask==0 zeroes its contribution, and
    # all-padding batch rows give den=0 -> pooled=0 (sliced off below).
    seq_p = jnp.pad(seq, ((0, b_pad - B), (0, l_pad - L)))
    maskf = jnp.pad(mask.astype(jnp.float32), ((0, b_pad - B), (0, l_pad - L)))

    # glue: embedding gather (synthetic bert front-end); bf16 halves DMA bytes.
    x = emb[seq_p].astype(jnp.bfloat16)                     # (b_pad, l_pad, D)

    w1b = w1.astype(jnp.bfloat16)
    w2b = jnp.pad(w2, ((0, 0), (0, o_pad - O))).astype(jnp.bfloat16)
    b1f = b1.astype(jnp.float32)
    b2f = jnp.pad(b2.astype(jnp.float32), ((0, 0), (0, o_pad - O)))

    # VMEM budget: double-buffered streams + resident weights + scratch.  Only
    # raise the compiler limit when we actually exceed the conservative
    # scoped default (v7x: 32 MiB scoped / 64 MiB physical).
    vmem_req = (2 * bb * t_l * D * 2 + 2 * bb * t_l * 4      # x, mask streams
                + 2 * (D * D * 2 + D * 4)                    # w1, b1 (resident)
                + 2 * (D * o_pad * 2 + o_pad * 4)            # w2, b2 (resident)
                + 2 * bb * o_pad * 4                         # logits out
                + bb * D * 4 + bb * 4)                       # accumulators
    cp_kwargs = dict(dimension_semantics=("parallel", "arbitrary"))
    if vmem_req > 12 * 1024 * 1024:
        cp_kwargs["vmem_limit_bytes"] = min(int(vmem_req * 1.5), 96 * 1024 * 1024)

    out = pl.pallas_call(
        _go_kernel,
        out_shape=jax.ShapeDtypeStruct((b_pad, o_pad), jnp.float32),
        grid_spec=pltpu.PrefetchScalarGridSpec(
            num_scalar_prefetch=0,
            grid=(num_b, num_l),
            in_specs=[
                pl.BlockSpec((bb, t_l, D), lambda b, l: (b, l, 0)),   # activations
                pl.BlockSpec((bb, t_l), lambda b, l: (b, l)),          # mask
                pl.BlockSpec((D, D), lambda b, l: (0, 0)),             # resident weight
                pl.BlockSpec((1, D), lambda b, l: (0, 0)),             # resident bias
                pl.BlockSpec((D, o_pad), lambda b, l: (0, 0)),         # resident weight
                pl.BlockSpec((1, o_pad), lambda b, l: (0, 0)),         # resident bias
            ],
            out_specs=pl.BlockSpec((bb, o_pad), lambda b, l: (b, 0)),
            scratch_shapes=[
                pltpu.VMEM((bb, D), jnp.float32),   # pooled numerator accumulator
                pltpu.VMEM((bb, 1), jnp.float32),   # mask count accumulator
            ],
        ),
        compiler_params=pltpu.CompilerParams(**cp_kwargs),
    )(x, maskf, w1b, b1f, w2b, b2f)

    return out[:B, :O]


def _reference(seq, mask, emb, w1, b1, w2, b2):
    x = emb[seq]
    h = jax.nn.gelu(jnp.einsum("bld,de->ble", x, w1) + b1[0], approximate=True)
    m = mask.astype(jnp.float32)[..., None]
    pooled = (h * m).sum(1) / jnp.maximum(m.sum(1), 1e-9)
    return pooled @ w2 + b2[0]


if __name__ == "__main__":
    # go_term = 'cellular_component' -> out_dim = 320
    B, L, D, VOCAB, OUT_DIM = 2, 256, 128, 30, 320

    key = jax.random.PRNGKey(0)
    k_emb, k_w1, k_b1, k_w2, k_b2, k_seq = jax.random.split(key, 6)

    emb = jax.random.normal(k_emb, (VOCAB, D), dtype=jnp.float32) * 0.02
    w1 = jax.random.normal(k_w1, (D, D), dtype=jnp.float32) * 0.02
    b1 = jax.random.normal(k_b1, (1, D), dtype=jnp.float32) * 0.02
    w2 = jax.random.normal(k_w2, (D, OUT_DIM), dtype=jnp.float32) * 0.02
    b2 = jax.random.normal(k_b2, (1, OUT_DIM), dtype=jnp.float32) * 0.02

    seq = jax.random.randint(k_seq, (B, L), 0, VOCAB, dtype=jnp.int32)
    # valid lengths 200 / 100 -> masks span both 128-token sequence tiles below
    lengths = jnp.array([200, 100], dtype=jnp.int32)
    mask = (jnp.arange(L, dtype=jnp.int32)[None, :] < lengths[:, None]).astype(jnp.int32)

    # t_l=128 forces num_l=2 so the accumulate-over-seq-tiles path is exercised.
    logits = protein_bert_go_forward(seq, mask, emb, w1, b1, w2, b2, t_l=128)
    logits = jax.block_until_ready(logits)

    ref = _reference(seq, mask, emb, w1, b1, w2, b2)
    assert logits.shape == (B, OUT_DIM), logits.shape
    # bf16 matmul inputs (f32 accumulation) -> loosened tolerance vs f32 reference.
    assert jnp.allclose(logits, ref, atol=2e-3, rtol=2e-2), (
        float(jnp.max(jnp.abs(logits - ref))))
    print("KERNEL_OK")
</pallas_src>

<mosaic_0001>
module attributes {stable_mosaic.version = 11 : i64} {
  func.func @_go_kernel(%arg0: i32, %arg1: i32, %arg2: memref<8x128x128xbf16, #tpu.memory_space<vmem>>, %arg3: memref<8x128xf32, #tpu.memory_space<vmem>>, %arg4: memref<128x128xbf16, #tpu.memory_space<vmem>>, %arg5: memref<1x128xf32, #tpu.memory_space<vmem>>, %arg6: memref<128x384xbf16, #tpu.memory_space<vmem>>, %arg7: memref<1x384xf32, #tpu.memory_space<vmem>>, %arg8: memref<8x384xf32, #tpu.memory_space<vmem>>, %arg9: memref<8x128xf32, #tpu.memory_space<vmem>>, %arg10: memref<8x1xf32, #tpu.memory_space<vmem>>) attributes {dimension_semantics = [#tpu.dimension_semantics<parallel>, #tpu.dimension_semantics<arbitrary>], iteration_bounds = array<i64: 1, 2>, scalar_prefetch = 0 : i64, scratch_operands = 2 : i64, tpu.core_type = #tpu.core_type<tc>, window_params = [{transform_indices = @transform_0, window_bounds = array<i64: 8, 128, 128>}, {transform_indices = @transform_1, window_bounds = array<i64: 8, 128>}, {pipeline_mode = #tpu.pipeline_mode<synchronous>, transform_indices = @transform_2, window_bounds = array<i64: 128, 128>}, {pipeline_mode = #tpu.pipeline_mode<synchronous>, transform_indices = @transform_3, window_bounds = array<i64: 1, 128>}, {pipeline_mode = #tpu.pipeline_mode<synchronous>, transform_indices = @transform_4, window_bounds = array<i64: 128, 384>}, {pipeline_mode = #tpu.pipeline_mode<synchronous>, transform_indices = @transform_5, window_bounds = array<i64: 1, 384>}, {transform_indices = @transform_6, window_bounds = array<i64: 8, 384>}]} {
    %c0_i32 = arith.constant 0 : i32
    %0 = arith.cmpi eq, %arg1, %c0_i32 : i32
    %1 = arith.extui %0 : i1 to i32
    %c0_i32_0 = arith.constant 0 : i32
    %2 = arith.cmpi ne, %1, %c0_i32_0 : i32
    scf.if %2 {
      %cst_24 = arith.constant 0.000000e+00 : f32
      %40 = vector.broadcast %cst_24 : f32 to vector<8x128xf32>
      %c0_25 = arith.constant 0 : index
      %c0_26 = arith.constant 0 : index
      %41 = vector.load %arg9[%c0_25, %c0_26] : memref<8x128xf32, #tpu.memory_space<vmem>>, vector<8x128xf32>
      tpu.vector_store %arg9[%c0_25, %c0_26], %40 {strides = array<i32>} : memref<8x128xf32, #tpu.memory_space<vmem>>, vector<8x128xf32>,
      %cst_27 = arith.constant 0.000000e+00 : f32
      %42 = vector.broadcast %cst_27 : f32 to vector<8x1xf32>
      %c0_28 = arith.constant 0 : index
      %c0_29 = arith.constant 0 : index
      %43 = vector.load %arg10[%c0_28, %c0_29] : memref<8x1xf32, #tpu.memory_space<vmem>>, vector<8x1xf32>
      tpu.vector_store %arg10[%c0_28, %c0_29], %42 {strides = array<i32>} : memref<8x1xf32, #tpu.memory_space<vmem>>, vector<8x1xf32>,
    } else {
    }
    %c0 = arith.constant 0 : index
    %c0_1 = arith.constant 0 : index
    %c0_2 = arith.constant 0 : index
    %3 = vector.load %arg2[%c0, %c0_1, %c0_2] : memref<8x128x128xbf16, #tpu.memory_space<vmem>>, vector<8x128x128xbf16>
    %4 = vector.shape_cast %3 : vector<8x128x128xbf16> to vector<1024x128xbf16>
    %c0_3 = arith.constant 0 : index
    %c0_4 = arith.constant 0 : index
    %5 = vector.load %arg4[%c0_3, %c0_4] : memref<128x128xbf16, #tpu.memory_space<vmem>>, vector<128x128xbf16>
    %cst = arith.constant dense<0.000000e+00> : vector<1024x128xf32>
    %6 = tpu.matmul %4, %5, %cst {dimension_numbers = #tpu.dot_dimension_numbers<[1], [0], [0], [1], [0, 0, 1, 1], [], []>} : vector<1024x128xbf16>, vector<128x128xbf16>, vector<1024x128xf32> -> vector<1024x128xf32>
    %c0_5 = arith.constant 0 : index
    %c0_6 = arith.constant 0 : index
    %7 = vector.load %arg5[%c0_5, %c0_6] : memref<1x128xf32, #tpu.memory_space<vmem>>, vector<1x128xf32>
    %8 = vector.broadcast %7 : vector<1x128xf32> to vector<1024x128xf32>
    %9 = arith.addf %6, %8 : vector<1024x128xf32>
    %10 = arith.mulf %9, %9 : vector<1024x128xf32>
    %11 = arith.mulf %9, %10 : vector<1024x128xf32>
    %cst_7 = arith.constant 4.471500e-02 : f32
    %12 = vector.broadcast %cst_7 : f32 to vector<1024x128xf32>
    %13 = arith.mulf %12, %11 : vector<1024x128xf32>
    %14 = arith.addf %9, %13 : vector<1024x128xf32>
    %cst_8 = arith.constant 0.797884583 : f32
    %15 = vector.broadcast %cst_8 : f32 to vector<1024x128xf32>
    %16 = arith.mulf %15, %14 : vector<1024x128xf32>
    %17 = math.tanh %16 : vector<1024x128xf32>
    %cst_9 = arith.constant 1.000000e+00 : f32
    %18 = vector.broadcast %cst_9 : f32 to vector<1024x128xf32>
    %19 = arith.addf %18, %17 : vector<1024x128xf32>
    %cst_10 = arith.constant 5.000000e-01 : f32
    %20 = vector.broadcast %cst_10 : f32 to vector<1024x128xf32>
    %21 = arith.mulf %20, %19 : vector<1024x128xf32>
    %22 = arith.mulf %9, %21 : vector<1024x128xf32>
    %23 = vector.shape_cast %22 : vector<1024x128xf32> to vector<8x128x128xf32>
    %c0_11 = arith.constant 0 : index
    %c0_12 = arith.constant 0 : index
    %24 = vector.load %arg3[%c0_11, %c0_12] : memref<8x128xf32, #tpu.memory_space<vmem>>, vector<8x128xf32>
    %c0_13 = arith.constant 0 : index
    %c0_14 = arith.constant 0 : index
    %25 = vector.load %arg9[%c0_13, %c0_14] : memref<8x128xf32, #tpu.memory_space<vmem>>, vector<8x128xf32>
    %26 = vector.shape_cast %24 : vector<8x128xf32> to vector<8x128x1xf32>
    %27 = vector.broadcast %26 : vector<8x128x1xf32> to vector<8x128x128xf32>
    %28 = arith.mulf %23, %27 : vector<8x128x128xf32>
    %cst_15 = arith.constant dense<0.000000e+00> : vector<8x128xf32>
    %29 = vector.multi_reduction <add>, %28, %cst_15 [1] : vector<8x128x128xf32> to vector<8x128xf32>
    %30 = arith.addf %25, %29 : vector<8x128xf32>
    %c0_16 = arith.constant 0 : index
    %c0_17 = arith.constant 0 : index
    %31 = vector.load %arg9[%c0_16, %c0_17] : memref<8x128xf32, #tpu.memory_space<vmem>>, vector<8x128xf32>
    tpu.vector_store %arg9[%c0_16, %c0_17], %30 {strides = array<i32>} : memref<8x128xf32, #tpu.memory_space<vmem>>, vector<8x128xf32>,
    %c0_18 = arith.constant 0 : index
    %c0_19 = arith.constant 0 : index
    %32 = vector.load %arg10[%c0_18, %c0_19] : memref<8x1xf32, #tpu.memory_space<vmem>>, vector<8x1xf32>
    %cst_20 = arith.constant dense<0.000000e+00> : vector<8xf32>
    %33 = vector.multi_reduction <add>, %24, %cst_20 [1] : vector<8x128xf32> to vector<8xf32>
    %34 = vector.shape_cast %33 : vector<8xf32> to vector<8x1xf32>
    %35 = arith.addf %32, %34 : vector<8x1xf32>
    %c0_21 = arith.constant 0 : index
    %c0_22 = arith.constant 0 : index
    %36 = vector.load %arg10[%c0_21, %c0_22] : memref<8x1xf32, #tpu.memory_space<vmem>>, vector<8x1xf32>
    tpu.vector_store %arg10[%c0_21, %c0_22], %35 {strides = array<i32>} : memref<8x1xf32, #tpu.memory_space<vmem>>, vector<8x1xf32>,
    %c1_i32 = arith.constant 1 : i32
    %37 = arith.cmpi eq, %arg1, %c1_i32 : i32
    %38 = arith.extui %37 : i1 to i32
    %c0_i32_23 = arith.constant 0 : i32
    %39 = arith.cmpi ne, %38, %c0_i32_23 : i32
    scf.if %39 {
      %c0_24 = arith.constant 0 : index
      %c0_25 = arith.constant 0 : index
      %40 = vector.load %arg9[%c0_24, %c0_25] : memref<8x128xf32, #tpu.memory_space<vmem>>, vector<8x128xf32>
      %c0_26 = arith.constant 0 : index
      %c0_27 = arith.constant 0 : index
      %41 = vector.load %arg10[%c0_26, %c0_27] : memref<8x1xf32, #tpu.memory_space<vmem>>, vector<8x1xf32>
      %cst_28 = arith.constant 9.99999971E-10 : f32
      %42 = vector.broadcast %cst_28 : f32 to vector<8x1xf32>
      %43 = arith.maximumf %41, %42 : vector<8x1xf32>
      %44 = vector.broadcast %43 : vector<8x1xf32> to vector<8x128xf32>
      %45 = arith.divf %40, %44 : vector<8x128xf32>
      %46 = arith.truncf %45 : vector<8x128xf32> to vector<8x128xbf16>
      %c0_29 = arith.constant 0 : index
      %c0_30 = arith.constant 0 : index
      %47 = vector.load %arg6[%c0_29, %c0_30] : memref<128x384xbf16, #tpu.memory_space<vmem>>, vector<128x384xbf16>
      %cst_31 = arith.constant dense<0.000000e+00> : vector<8x384xf32>
      %48 = tpu.matmul %46, %47, %cst_31 {dimension_numbers = #tpu.dot_dimension_numbers<[1], [0], [0], [1], [0, 0, 1, 1], [], []>} : vector<8x128xbf16>, vector<128x384xbf16>, vector<8x384xf32> -> vector<8x384xf32>
      %c0_32 = arith.constant 0 : index
      %c0_33 = arith.constant 0 : index
      %49 = vector.load %arg7[%c0_32, %c0_33] : memref<1x384xf32, #tpu.memory_space<vmem>>, vector<1x384xf32>
      %50 = vector.broadcast %49 : vector<1x384xf32> to vector<8x384xf32>
      %51 = arith.addf %48, %50 : vector<8x384xf32>
      %c0_34 = arith.constant 0 : index
      %c0_35 = arith.constant 0 : index
      %52 = vector.load %arg8[%c0_34, %c0_35] : memref<8x384xf32, #tpu.memory_space<vmem>>, vector<8x384xf32>
      tpu.vector_store %arg8[%c0_34, %c0_35], %51 {strides = array<i32>} : memref<8x384xf32, #tpu.memory_space<vmem>>, vector<8x384xf32>,
    } else {
    }
    return
  }
  func.func @transform_0(%arg0: i32, %arg1: i32) -> (i32, i32, i32) {
    %c0_i32 = arith.constant 0 : i32
    %c0_i32_0 = arith.constant 0 : i32
    return %arg0, %arg1, %c0_i32 : i32, i32, i32
  }
  func.func @transform_1(%arg0: i32, %arg1: i32) -> (i32, i32) {
    %c0_i32 = arith.constant 0 : i32
    return %arg0, %arg1 : i32, i32
  }
  func.func @transform_2(%arg0: i32, %arg1: i32) -> (i32, i32) {
    %c0_i32 = arith.constant 0 : i32
    %c0_i32_0 = arith.constant 0 : i32
    %c0_i32_1 = arith.constant 0 : i32
    return %c0_i32, %c0_i32_0 : i32, i32
  }
  func.func @transform_3(%arg0: i32, %arg1: i32) -> (i32, i32) {
    %c0_i32 = arith.constant 0 : i32
    %c0_i32_0 = arith.constant 0 : i32
    %c0_i32_1 = arith.constant 0 : i32
    return %c0_i32, %c0_i32_0 : i32, i32
  }
  func.func @transform_4(%arg0: i32, %arg1: i32) -> (i32, i32) {
    %c0_i32 = arith.constant 0 : i32
    %c0_i32_0 = arith.constant 0 : i32
    %c0_i32_1 = arith.constant 0 : i32
    return %c0_i32, %c0_i32_0 : i32, i32
  }
  func.func @transform_5(%arg0: i32, %arg1: i32) -> (i32, i32) {
    %c0_i32 = arith.constant 0 : i32
    %c0_i32_0 = arith.constant 0 : i32
    %c0_i32_1 = arith.constant 0 : i32
    return %c0_i32, %c0_i32_0 : i32, i32
  }
  func.func @transform_6(%arg0: i32, %arg1: i32) -> (i32, i32) {
    %c0_i32 = arith.constant 0 : i32
    %c0_i32_0 = arith.constant 0 : i32
    return %arg0, %c0_i32 : i32, i32
  }
}

</mosaic_0001>

<bundles_post_ra>
// kernel: tpu_custom_call.1
= control target key start
LH: loop header
LB: loop body
LE: loop exit
PB: predicated region body
PF: predicated region fallthrough
CT: control target
= control target key end

     0   :  { %s6955_s0 = inlined_call_operand.hbm [shape: bf16[8,256,128], index: 0, kind: input, shape index: {}]   ;;  %s6956_s1 = inlined_call_operand.hbm [shape: f32[8,256], index: 1, kind: input, shape index: {}]   ;;  %s6957_s2 = inlined_call_operand.hbm [shape: bf16[128,128], index: 2, kind: input, shape index: {}]   ;;  %s6958_s3 = inlined_call_operand.vmem [shape: f32[1,128], index: 3, kind: input, shape index: {}]   ;;  %s6959_s4 = inlined_call_operand.hbm [shape: bf16[128,384], index: 4, kind: input, shape index: {}]   ;;  %s6960_s5 = inlined_call_operand.vmem [shape: f32[1,384], index: 5, kind: input, shape index: {}]   ;;  %s6961_s6 = inlined_call_operand.hbm [shape: f32[8,384], index: 6, kind: output, shape index: {}]  }
   0x1   :  { %6983 = sst [smem:[#allocation71_spill]] %s6955_s0 }
   0x2   :  { %6984 = sst [smem:[#allocation72_spill]] %s6957_s2 }
   0x3   :  { %6985 = sst [smem:[#allocation73_spill]] %s6959_s4 }
   0x4   :  { %11 = vsyncpa [#allocation5], 0 }
   0x5   :  { %13 = vsyncpa [#allocation5 + $0x1], 0 }
   0x6   :  { %14 = vsyncpa [#allocation8], 0 }
   0x7   :  { %16 = vsyncpa [#allocation8 + $0x1], 0 }
   0x8   :  { %17 = vsyncpa [#allocation11], 0 }
   0x9   :  { %18 = vsyncpa [#allocation6], 0  ;;  %s4997_s21 = smov 0   ;;  %s4999_s22 = smov 0  }
   0xa   :  { %s5001_s23 = smov 0   ;;  %s5003_s24 = smov 0  }
   0xb   :  { %s5005_s25 = smov 0   ;;  %s5007_s26 = smov 0  }
   0xc LB: > { %s5026_s27 = sadd.s32 4294967295, %s4942_s26   ;;  %s33_s28 = sadd.s32 1, %s4938_s25  ;;  %s4942_s26 = sphi %s5007_s26, %s24_s26   ;;  %s4938_s25 = sphi %s5005_s25, %s7156_s25   ;;  %s4934_s24 = sphi %s5003_s24, %s7155_s24   ;;  %s4930_s23 = sphi %s5001_s23, %s7154_s23   ;;  %s4926_s22 = sphi %s4999_s22, %s7153_s22   ;;  %s4922_s21 = sphi %s4997_s21, %s7152_s21  }
   0xd   : > { %p34_p0 = scmp.ge.s32.totalorder %s33_s28, 2  ;;  %s45_s29 = sadd.s32 1, %s4930_s23 }
   0xe   : > { %p52_p1 = scmp.ne.s32.totalorder %s4930_s23, %s4926_s22  ;;  %p53_p2 = scmp.eq.s32.totalorder %s4942_s26, 0 }
   0xf   : > { %s7158_s28 = smov (%p34_p0, %s33_s28), 0  ;;  %p58_p4 = scmp.ne.s32.totalorder %s4926_s22, %s4922_s21 }
  0x10   : > { %6986 = sst [smem:[#allocation21_spill]] %s7158_s28  ;;  %p5035_p3 = por %p53_p2, %p52_p1 }
  0x11   : > { %s41_s7 = ssub.s32 %s4938_s25, %s7158_s28  ;;  %p6962_p5 = scmp.eq.s32.totalorder %s5026_s27, 0 }
  0x12   : > { %p43_p6 = scmp.eq.s32.totalorder %s41_s7, 0  ;;  %p3925_p7 = scmp.ge.s32.totalorder %s4942_s26, 1 }
  0x13   : > { %p5046_p8 = por %p6962_p5, %p58_p4  ;;  %p207_p9 = scmp.lt.s32.totalorder %s4942_s26, 3 }
  0x14   : > { %s5052_s9 = scalar_select %p43_p6, %s4930_s23, %s45_s29  }
  0x15   : > { %s6988_s8 = scalar_select %p5046_p8, 1, 0 }
  0x16   : > { %p5054_p10 = pnand %p3925_p7, %p207_p9  ;;  %s4944_s11 = smov [#allocation9]  }
  0x17   : > { %s219_s12 = sshll.u32 %s4944_s11, 4  ;;  %s4945_s14 = smov [#allocation10]   ;;  %s220_s12 = int_to_ptr.vmem [resolvable:$true] %s219_s12 }
  0x18   : > { %p4329_p11 = pneg %p5054_p10  ;;  %s235_s15 = sshll.u32 %s4945_s14, 4  ;;  %s236_s15 = int_to_ptr.vmem [resolvable:$true] %s235_s15 }
  0x19   : > { %s4785_s16 = scalar_lea.vmem %s220_s12, 1024  ;;  %p4793_p4 = scmp.lt.s32.totalorder %s220_s12, %s220_s12 }
  0x1a   : > { %p5062_p12 = pnand %p4329_p11, %p6962_p5  ;;  %p4786_p0 = scmp.ne.s32.totalorder %s220_s12, %s4785_s16 }
  0x1b   : > { %p4794_p6 = scmp.lt.s32.totalorder %s4785_s16, %s4785_s16 }
  0x1c   : > { %p4776_p13 = pneg %p5062_p12 }
  0x1d   : > { %p4795_p7 = por %p4794_p6, %p4793_p4 }
  0x1e   : > { %p4788_p1 = pnand %p4786_p0, %p4776_p13 }
  0x20   : > { %p4789_p2 = pneg %p4788_p1 }
  0x22   : > { %p4796_p9 = pnand %p4795_p7, %p4789_p2 }
  0x24   : > { %4799 = shalt.err (!%p4796_p9)
}
  0x25   : > { %s4946_s17 = smov 64   ;;  %s4947_s18 = smov 4  }
  0x26   : > { %s6991_s2 = sld [smem:[#allocation72_spill]]  ;;  %s4811_s21 = scalar_lea.vmem %s236_s15, 3072 }
  0x27   : > { %p4812_p11 = scmp.ne.s32.totalorder %s236_s15, %s4811_s21  ;;  %p4819_p5 = scmp.lt.s32.totalorder %s236_s15, %s236_s15 }
  0x28   : > { %p4820_p8 = scmp.lt.s32.totalorder %s4811_s21, %s4811_s21 }
  0x29   : > { %p4814_p0 = pnand %p4812_p11, %p4776_p13 }
  0x2a   : > { %p4821_p4 = por %p4820_p8, %p4819_p5 }
  0x2b   : > { %p4815_p1 = pneg %p4814_p0 }
  0x2c   : > { %4332 = dma.hbm_to_vmem [thread:$0]  (!%p5062_p12), %s6991_s2, 1024, %s220_s12, [#allocation8], %s4946_s17, %s4946_s17, %s4947_s18  }
  0x2d   : > { %p4822_p2 = pnand %p4821_p4, %p4815_p1 }
  0x2f   : > { %4825 = shalt.err (!%p4822_p2)
}
  0x30   : > { %s4948_s29 = smov 192   ;;  %s4949_s7 = smov 12  }
  0x31   : > { %s6992_s4 = sld [smem:[#allocation73_spill]]  ;;  %p3928_p6 = scmp.ge.s32.totalorder %s4942_s26, 2 }
  0x33   : > { %248 = sbr.rel (%p3928_p6) target bundleno = 84 (0x54), region = 32 }
  0x37   : > { %4335 = dma.hbm_to_vmem [thread:$0]  (!%p5062_p12), %s6992_s4, 3072, %s236_s15, [#allocation11], %s4948_s29, %s4948_s29, %s4949_s7  }
  0x38   : > { %s252_s12 = sand.u32 1, %s4930_s23   ;;  %s4044_s16 = sshll.u32 %s4938_s25, 10 }
  0x39   : > { %s3929_s17 = sshll.u32 %s252_s12, 9  ;;  %s6993_s0 = sld [smem:[#allocation71_spill]] }
  0x3a   : > { %s4310_s15 = scalar_select %p5035_p3, [#allocation0], [#allocation15] }
  0x3b   : > { %s256_s20 = scalar_lea.vmem [#allocation4], %s3929_s17  ;;  %s4950_s7 = smov 2048  }
  0x3c   : > { %s278_s21 = sshll.u32 %s256_s20, 4  ;;  %s270_s29 = sld [smem:[%s4310_s15]]   ;;  %s279_s21 = int_to_ptr.vmem [resolvable:$true] %s278_s21 }
  0x3d   : > { %4311 = sst [smem:[#allocation14]] (%p5035_p3), %s4950_s7  ;;  %s4951_s11 = smov 1024  }
  0x3e   : > { %4312 = sst [smem:[#allocation14 + $0x1]] (%p5035_p3), %s4951_s11  ;;  %s4952_s14 = smov 16  }
  0x3f   : > { %s265_s19 = scalar_lea.hbm %s6993_s0, %s4044_s16  ;;  %4313 = sst [smem:[#allocation14 + $0x2]] (%p5035_p3), %s4952_s14 }
  0x40   : > { %s4953_s2 = smov 64   ;;  %s4954_s17 = smov 4  }
  0x41   : > { %4314 = sst [smem:[#allocation14 + $0x3]] (%p5035_p3), %s4953_s2  ;;  %s253_s13 = scalar_lea.sflag [#allocation5], %s252_s12 }
  0x42   : > { %4315 = sst [smem:[#allocation14 + $0x4]] (%p5035_p3), %s4953_s2  ;;  %s3932_s16 = sshll.u32 %s270_s29, 26 }
  0x43   : > { %4316 = sst [smem:[#allocation14 + $0x5]] (%p5035_p3), %s4954_s17  ;;  %s3933_s18 = sadd.s32 134217728, %s3932_s16 }
  0x44   : > { %s4955_s15 = smov 131072   ;;  %s301_s20 = sand.u32 1, %s4942_s26  }
  0x45   : > { %4317 = dma.general (%p5035_p3), %s265_s19, 8192, %s279_s21, %s253_s13, %s4955_s15, [#allocation14], %s3933_s18, 0  }
  0x46   : > { %s3934_s7 = sshll.u32 %s252_s12, 3  ;;  %s3935_s11 = sshll.u32 %s4938_s25, 7 }
  0x47   : > { %s305_s14 = scalar_lea.vmem [#allocation7], %s3934_s7  ;;  %s312_s2 = scalar_lea.hbm %s6956_s1, %s3935_s11 }
  0x48   : > { %s314_s0 = sshll.u32 %s305_s14, 4  ;;  %s302_s29 = scalar_lea.sflag [#allocation8], %s301_s20  ;;  %s315_s0 = int_to_ptr.vmem [resolvable:$true] %s314_s0 }
  0x49   : > { %s4838_s17 = scalar_lea.vmem %s315_s0, 128  ;;  %s4956_s19 = smov [#allocation7]  }
  0x4a   : > { %p4839_p5 = scmp.ne.s32.totalorder %s315_s0, %s4838_s17  ;;  %s4842_s21 = sshll.u32 %s4956_s19, 4  ;;  %s4843_s21 = int_to_ptr.vmem [resolvable:$false] %s4842_s21 }
  0x4b   : > { %s4844_s16 = scalar_lea.vmem %s4843_s21, 256  ;;  %p4845_p13 = scmp.lt.s32.totalorder %s315_s0, %s4843_s21 }
  0x4c   : > { %p4840_p8 = pnand %p4839_p5, %p5035_p3  ;;  %p4846_p7 = scmp.lt.s32.totalorder %s4844_s16, %s4838_s17 }
  0x4e   : > { %p4841_p12 = pneg %p4840_p8  ;;  %p4847_p9 = por %p4846_p7, %p4845_p13 }
  0x50   : > { %p4848_p11 = pnand %p4847_p9, %p4841_p12 }
  0x52   : > { %4851 = shalt.err (!%p4848_p11)
}
  0x53   : > { %4318 = dma.hbm_to_vmem [thread:$0]  (%p5035_p3), %s312_s2, 128, %s315_s0, %s302_s29  }
  0x54 PF: > { %323 = sbr.rel (%p5054_p10) target bundleno = 1112 (0x458), region = 44 }
  0x59   : > { %s325_s4 = sand.u32 1, %s4926_s22   ;;  %p6994_p0 = scmp.ne.s32.totalorder %s6988_s8, 0 }
  0x5a   : > { %s3937_s28 = sshll.u32 %s325_s4, 9  ;;  %s326_s12 = scalar_lea.sflag [#allocation5], %s325_s4 }
  0x5b   : > { %s5118_s18 = scalar_lea.vmem [#allocation4], %s3937_s28 }
  0x5c   : > { %4901 = dma.done.wait (%p6994_p0), %s326_s12, 8192  }
  0x5d   : > { %4903 = vsyncadd (%p6994_p0), %s326_s12, 4294959104  ;;  %s334_s30 = sand.u32 1, %s5026_s27   ;;  %s3938_s0 = sshll.u32 %s325_s4, 3 }
  0x5e   : > { %s335_s13 = scalar_lea.sflag [#allocation8], %s334_s30  ;;  %s5125_s15 = scalar_lea.vmem [#allocation7], %s3938_s0 }
  0x5f   : > { %4905 = dma.done.wait (%p6994_p0), %s335_s13, 128  }
  0x60   : > { %4907 = vsyncadd (%p6994_p0), %s335_s13, 4294967168  ;;  %p6995_p3 = scmp.eq.s32.totalorder %s5026_s27, 0 }
  0x62   : > { %4909 = dma.done.wait (%p6995_p3), [#allocation8], 1024   ;;  %p6996_p10 = pmov %p6995_p3 }
  0x63   : > { %p6997_p1 = pmov %p6995_p3 }
  0x64   : > { %4911 = vsyncadd (%p6996_p10), [#allocation8], 4294966272 }
  0x65   : > { %4913 = dma.done.wait (%p6997_p1), [#allocation11], 3072   ;;  %p6998_p4 = pmov %p6997_p1 }
  0x66   : > { %p3941_p2 = scmp.ne.s32.totalorder %s4934_s24, 0 }
  0x67   : > { %4915 = vsyncadd (%p6998_p4), [#allocation11], 4294964224 }
  0x68   : > { %381 = sbr.rel (%p3941_p2) target bundleno = 111 (0x6f), region = 64 }
  0x6d   : > { %vm383_vm0 = vcmask 7168   ;;  %v4957_v0 = vmov 0.0  }
  0x6e   : > { %382 = vst [vmem:[#allocation2] sm:$0xff] %v4957_v0  ;;  %384 = vst.msk [vmem:[#allocation3] sm:$0xff] %vm383_vm0, %v4957_v0 }
  0x6f PF: > { %v4407_v1 = vld [vmem:[#allocation9 + $0x38] sm:$0xff]   ;;  %v2667_v2 = vlaneseq  ;;  %v4408_v3 = vld [vmem:[#allocation9 + $0x30] sm:$0xff]   ;;  %v4409_v7 = vld [vmem:[#allocation9 + $0x28] sm:$0xff]   ;;  %vm3507_vm1 = vcmask 1041409   ;;  %vm3528_vm2 = vcmask 7168   ;;  %vm3509_vm3 = vcmask 1042434  }
  0x70   : > { %4126 = vmatprep.subr.bf16.mxu0 %v4407_v1  ;;  %4290 = vmatprep.subr.bf16.mxu1 %v4407_v1  ;;  %v5143_v5 = vld [vmem:[%s5125_s15] sm:$0xff]  ;;  %v4410_v9 = vld [vmem:[#allocation9 + $0x20] sm:$0xff]   ;;  %v4413_v14 = vld [vmem:[#allocation9 + $0x8] sm:$0xff]   ;;  %vm3511_vm4 = vcmask 1043459   ;;  %vm3513_vm5 = vcmask 1044484   ;;  %vm3515_vm6 = vcmask 1045509  }
  0x71   : > { %v5140_v4 = vshrl.u32 %v2667_v2, 7  ;;  %4127 = vmatpush3.bf16.msra.mxu0 %v4407_v1  ;;  %4298 = vmatpush3.bf16.msra.mxu1 %v4407_v1  ;;  %v4415_v10 = vld [vmem:[%s5118_s18] sm:$0xff]   ;;  %v4411_v12 = vld [vmem:[#allocation9 + $0x18] sm:$0xff]   ;;  %v4414_v15 = vld [vmem:[#allocation9] sm:$0xff]   ;;  %vm3517_vm7 = vcmask 1046534   ;;  %vm3519_vm8 = vcmask 1047559  }
  0x72   : > { %4128 = vmatprep.subr.bf16.mxu0 %v4408_v3  ;;  %4291 = vmatprep.subr.bf16.mxu1 %v4408_v3  ;;  %v4416_v11 = vld [vmem:[%s5118_s18 + $0x100] sm:$0xff]   ;;  %v4417_v16 = vld [vmem:[%s5118_s18 + $0x8] sm:$0xff]   ;;  %v4419_v18 = vld [vmem:[%s5118_s18 + $0x10] sm:$0xff]   ;;  %p4015_p6 = scmp.ne.s32.totalorder %s4934_s24, 1 }
  0x73   : > { %6999 = vst [vmem:[#allocation22_spill] sm:$0xff] %v5140_v4  ;;  %v6967_v6 = vsub.s32 0, %v5140_v4  ;;  %4142 = vmatprep.mubr.bf16.mxu0 %v4415_v10  ;;  %4206 = vmatprep.mubr.bf16.mxu1 %v4416_v11  ;;  %v4412_v13 = vld [vmem:[#allocation9 + $0x10] sm:$0xff]   ;;  %v4418_v17 = vld [vmem:[%s5118_s18 + $0x108] sm:$0xff]   ;;  %v4420_v19 = vld [vmem:[%s5118_s18 + $0x110] sm:$0xff]   ;;  %v6965_v20 = vsub.s32 1, %v5140_v4 }
  0x74   : > { %v4421_v22 = vld [vmem:[%s5118_s18 + $0x18] sm:$0xff]   ;;  %v4423_v24 = vld [vmem:[%s5118_s18 + $0x20] sm:$0xff]   ;;  %v4425_v26 = vld [vmem:[%s5118_s18 + $0x28] sm:$0xff]   ;;  %v6966_v38 = vsub.s32 2, %v5140_v4  ;;  %v2870_v56 = vsub.s32 3, %v5140_v4 }
  0x75   : > { %v2670_v8 = vrot.slane %v5143_v5, %v6967_v6  ;;  %4129 = vmatpush3.bf16.msra.mxu0 %v4408_v3  ;;  %4299 = vmatpush3.bf16.msra.mxu1 %v4408_v3  ;;  %v2737_v21 = vrot.slane %v5143_v5, %v6965_v20  ;;  %v4422_v23 = vld [vmem:[%s5118_s18 + $0x118] sm:$0xff]   ;;  %v4424_v25 = vld [vmem:[%s5118_s18 + $0x120] sm:$0xff]   ;;  %v4426_v27 = vld [vmem:[%s5118_s18 + $0x128] sm:$0xff]  }
  0x76   : > { %4130 = vmatprep.subr.bf16.mxu0 %v4409_v7  ;;  %4292 = vmatprep.subr.bf16.mxu1 %v4409_v7  ;;  %v4427_v28 = vld [vmem:[%s5118_s18 + $0x30] sm:$0xff]   ;;  %v4429_v30 = vld [vmem:[%s5118_s18 + $0x38] sm:$0xff]   ;;  %v4431_v32 = vld [vmem:[%s5118_s18 + $0x40] sm:$0xff]   ;;  %v2804_v39 = vrot.slane %v5143_v5, %v6966_v38  ;;  %v2871_v57 = vrot.slane %v5143_v5, %v2870_v56 }
  0x77   : > { %2680 = vbcast.lane.b32.xlu1 %v2670_v8, 272  ;;  %2672 = vbcast.lane.b32.xlu0 %v2670_v8, 256  ;;  %v4428_v29 = vld [vmem:[%s5118_s18 + $0x130] sm:$0xff]   ;;  %v4430_v31 = vld [vmem:[%s5118_s18 + $0x138] sm:$0xff]   ;;  %v4432_v33 = vld [vmem:[%s5118_s18 + $0x140] sm:$0xff]  }
  0x78   : > { %v4433_v34 = vld [vmem:[%s5118_s18 + $0x48] sm:$0xff]   ;;  %v4435_v36 = vld [vmem:[%s5118_s18 + $0x50] sm:$0xff]   ;;  %v4437_v40 = vld [vmem:[%s5118_s18 + $0x58] sm:$0xff]  }
  0x79   : > { %4131 = vmatpush3.bf16.msra.mxu0 %v4409_v7  ;;  %4300 = vmatpush3.bf16.msra.mxu1 %v4409_v7  ;;  %v4434_v35 = vld [vmem:[%s5118_s18 + $0x148] sm:$0xff]   ;;  %v4436_v37 = vld [vmem:[%s5118_s18 + $0x150] sm:$0xff]   ;;  %v4438_v41 = vld [vmem:[%s5118_s18 + $0x158] sm:$0xff]  }
  0x7a   : > { %4132 = vmatprep.subr.bf16.mxu0 %v4410_v9  ;;  %4293 = vmatprep.subr.bf16.mxu1 %v4410_v9  ;;  %v4439_v42 = vld [vmem:[%s5118_s18 + $0x60] sm:$0xff]   ;;  %v4441_v44 = vld [vmem:[%s5118_s18 + $0x68] sm:$0xff]   ;;  %v4443_v46 = vld [vmem:[%s5118_s18 + $0x70] sm:$0xff]  }
  0x7b   : > { %2684 = vbcast.lane.b32.xlu1 %v2670_v8, 280  ;;  %2676 = vbcast.lane.b32.xlu0 %v2670_v8, 264  ;;  %v4440_v43 = vld [vmem:[%s5118_s18 + $0x160] sm:$0xff]   ;;  %v4442_v45 = vld [vmem:[%s5118_s18 + $0x168] sm:$0xff]   ;;  %v4444_v47 = vld [vmem:[%s5118_s18 + $0x170] sm:$0xff]  }
  0x7c   : > { %v4445_v48 = vld [vmem:[%s5118_s18 + $0x78] sm:$0xff]   ;;  %v4447_v50 = vld [vmem:[%s5118_s18 + $0x80] sm:$0xff]   ;;  %v4449_v52 = vld [vmem:[%s5118_s18 + $0x88] sm:$0xff]  }
  0x7d   : > { %4133 = vmatpush3.bf16.msra.mxu0 %v4410_v9  ;;  %4301 = vmatpush3.bf16.msra.mxu1 %v4410_v9  ;;  %v4446_v49 = vld [vmem:[%s5118_s18 + $0x178] sm:$0xff]   ;;  %v4448_v51 = vld [vmem:[%s5118_s18 + $0x180] sm:$0xff]   ;;  %v4450_v53 = vld [vmem:[%s5118_s18 + $0x188] sm:$0xff]  }
  0x7e   : > { %4134 = vmatprep.subr.bf16.mxu0 %v4411_v12  ;;  %4294 = vmatprep.subr.bf16.mxu1 %v4411_v12  ;;  %v4451_v54 = vld [vmem:[%s5118_s18 + $0x90] sm:$0xff]   ;;  %v4453_v58 = vld [vmem:[%s5118_s18 + $0x98] sm:$0xff]   ;;  %v4455_v60 = vld [vmem:[%s5118_s18 + $0xa0] sm:$0xff]  }
  0x7f   : > { %2692 = vbcast.lane.b32.xlu1 %v2670_v8, 296  ;;  %2688 = vbcast.lane.b32.xlu0 %v2670_v8, 288  ;;  %v4452_v55 = vld [vmem:[%s5118_s18 + $0x190] sm:$0xff]   ;;  %v4454_v59 = vld [vmem:[%s5118_s18 + $0x198] sm:$0xff]   ;;  %v4456_v61 = vld [vmem:[%s5118_s18 + $0x1a0] sm:$0xff]  }
  0x80   : > { %v4457_v62 = vld [vmem:[%s5118_s18 + $0xa8] sm:$0xff]   ;;  %v4459_v0 = vld [vmem:[%s5118_s18 + $0xb0] sm:$0xff]   ;;  %v4461_v2 = vld [vmem:[%s5118_s18 + $0xb8] sm:$0xff]  }
  0x81   : > { %4135 = vmatpush3.bf16.msra.mxu0 %v4411_v12  ;;  %4302 = vmatpush3.bf16.msra.mxu1 %v4411_v12  ;;  %v4458_v63 = vld [vmem:[%s5118_s18 + $0x1a8] sm:$0xff]   ;;  %v4460_v1 = vld [vmem:[%s5118_s18 + $0x1b0] sm:$0xff]   ;;  %v4462_v3 = vld [vmem:[%s5118_s18 + $0x1b8] sm:$0xff]  }
  0x82   : > { %4136 = vmatprep.subr.bf16.mxu0 %v4412_v13  ;;  %4295 = vmatprep.subr.bf16.mxu1 %v4412_v13  ;;  %v4463_v7 = vld [vmem:[%s5118_s18 + $0xc0] sm:$0xff]  }
  0x83   : > { %2700 = vbcast.lane.b32.xlu1 %v2670_v8, 312  ;;  %2696 = vbcast.lane.b32.xlu0 %v2670_v8, 304 }
  0x85   : > { %4137 = vmatpush3.bf16.msra.mxu0 %v4412_v13  ;;  %4303 = vmatpush3.bf16.msra.mxu1 %v4412_v13  ;;  %v4465_v13 = vld [vmem:[%s5118_s18 + $0xc8] sm:$0xff]  }
  0x86   : > { %4138 = vmatprep.subr.bf16.mxu0 %v4413_v14  ;;  %4296 = vmatprep.subr.bf16.mxu1 %v4413_v14 }
  0x87   : > { %2708 = vbcast.lane.b32.xlu1 %v2670_v8, 328  ;;  %2704 = vbcast.lane.b32.xlu0 %v2670_v8, 320 }
  0x89   : > { %4139 = vmatpush3.bf16.msra.mxu0 %v4413_v14  ;;  %4304 = vmatpush3.bf16.msra.mxu1 %v4413_v14  ;;  %v4466_v14 = vld [vmem:[%s5118_s18 + $0x1c8] sm:$0xff]  }
  0x8a   : > { %4140 = vmatprep.subr.bf16.mxu0 %v4414_v15  ;;  %4297 = vmatprep.subr.bf16.mxu1 %v4414_v15 }
  0x8b   : > { %2716 = vbcast.lane.b32.xlu1 %v2670_v8, 344  ;;  %2712 = vbcast.lane.b32.xlu0 %v2670_v8, 336 }
  0x8d   : > { %4141 = vmatpush3.bf16.msra.mxu0 %v4414_v15  ;;  %4305 = vmatpush3.bf16.msra.mxu1 %v4414_v15  ;;  %v4467_v15 = vld [vmem:[%s5118_s18 + $0xd0] sm:$0xff]  }
  0x8f   : > { %2724 = vbcast.lane.b32.xlu1 %v2670_v8, 360  ;;  %2720 = vbcast.lane.b32.xlu0 %v2670_v8, 352 }
  0x90   : > { %4143 = vmatmul.mubr.bf16.vlgmr.msra.gmra.mxu0 %v4417_v16  ;;  %4207 = vmatmul.mubr.bf16.vlgmr.msra.gmra.mxu1 %v4418_v17  ;;  %v4468_v16 = vld [vmem:[%s5118_s18 + $0x1d0] sm:$0xff]   ;;  %v2937_v17 = vsub.s32 4, %v5140_v4 }
  0x91   : > { %4146 = vmatprep.mubr.bf16.mxu0 %v4419_v18  ;;  %4210 = vmatprep.mubr.bf16.mxu1 %v4420_v19 }
  0x93   : > { %2732 = vbcast.lane.b32.xlu1 %v2670_v8, 376  ;;  %2728 = vbcast.lane.b32.xlu0 %v2670_v8, 368  ;;  %v4464_v8 = vld [vmem:[%s5118_s18 + $0x1c0] sm:$0xff]  }
  0x97   : > { %2743 = vbcast.lane.b32.xlu1 %v2737_v21, 264  ;;  %2739 = vbcast.lane.b32.xlu0 %v2737_v21, 256 }
  0x98   : > { %4147 = vmatmul.mubr.bf16.gmra.mxu0 %v4421_v22  ;;  %4211 = vmatmul.mubr.bf16.gmra.mxu1 %v4422_v23 }
  0x99   : > { %4150 = vmatprep.mubr.bf16.mxu0 %v4423_v24  ;;  %4214 = vmatprep.mubr.bf16.mxu1 %v4424_v25  ;;  %v4469_v24 = vld [vmem:[%s5118_s18 + $0xd8] sm:$0xff]  }
  0x9a   : > { %v4470_v25 = vld [vmem:[%s5118_s18 + $0x1d8] sm:$0xff]  }
  0x9b   : > { %2751 = vbcast.lane.b32.xlu1 %v2737_v21, 280  ;;  %2747 = vbcast.lane.b32.xlu0 %v2737_v21, 272 }
  0x9f   : > { %2759 = vbcast.lane.b32.xlu1 %v2737_v21, 296  ;;  %2755 = vbcast.lane.b32.xlu0 %v2737_v21, 288 }
  0xa0   : > { %4151 = vmatmul.mubr.bf16.gmra.mxu0 %v4425_v26  ;;  %4215 = vmatmul.mubr.bf16.gmra.mxu1 %v4426_v27  ;;  %v4471_v26 = vld [vmem:[%s5118_s18 + $0xe0] sm:$0xff]  }
  0xa1   : > { %4154 = vmatprep.mubr.bf16.mxu0 %v4427_v28  ;;  %4218 = vmatprep.mubr.bf16.mxu1 %v4428_v29  ;;  %v4472_v27 = vld [vmem:[%s5118_s18 + $0x1e0] sm:$0xff]  }
  0xa3   : > { %2767 = vbcast.lane.b32.xlu1 %v2737_v21, 312  ;;  %2763 = vbcast.lane.b32.xlu0 %v2737_v21, 304 }
  0xa7   : > { %2775 = vbcast.lane.b32.xlu1 %v2737_v21, 328  ;;  %2771 = vbcast.lane.b32.xlu0 %v2737_v21, 320 }
  0xa8   : > { %4155 = vmatmul.mubr.bf16.gmra.mxu0 %v4429_v30  ;;  %4219 = vmatmul.mubr.bf16.gmra.mxu1 %v4430_v31 }
  0xa9   : > { %4158 = vmatprep.mubr.bf16.mxu0 %v4431_v32  ;;  %4222 = vmatprep.mubr.bf16.mxu1 %v4432_v33  ;;  %v4473_v32 = vld [vmem:[%s5118_s18 + $0xe8] sm:$0xff]  }
  0xaa   : > { %v4474_v33 = vld [vmem:[%s5118_s18 + $0x1e8] sm:$0xff]  }
  0xab   : > { %2783 = vbcast.lane.b32.xlu1 %v2737_v21, 344  ;;  %2779 = vbcast.lane.b32.xlu0 %v2737_v21, 336 }
  0xaf   : > { %2791 = vbcast.lane.b32.xlu1 %v2737_v21, 360  ;;  %2787 = vbcast.lane.b32.xlu0 %v2737_v21, 352 }
  0xb0   : > { %4159 = vmatmul.mubr.bf16.gmra.mxu0 %v4433_v34  ;;  %4223 = vmatmul.mubr.bf16.gmra.mxu1 %v4434_v35  ;;  %v4475_v34 = vld [vmem:[%s5118_s18 + $0xf0] sm:$0xff]  }
  0xb1   : > { %4162 = vmatprep.mubr.bf16.mxu0 %v4435_v36  ;;  %4226 = vmatprep.mubr.bf16.mxu1 %v4436_v37  ;;  %v4476_v35 = vld [vmem:[%s5118_s18 + $0x1f0] sm:$0xff]  }
  0xb3   : > { %2799 = vbcast.lane.b32.xlu1 %v2737_v21, 376  ;;  %2795 = vbcast.lane.b32.xlu0 %v2737_v21, 368  ;;  %v2938_v21 = vrot.slane %v5143_v5, %v2937_v17 }
  0xb7   : > { %2810 = vbcast.lane.b32.xlu1 %v2804_v39, 264  ;;  %2806 = vbcast.lane.b32.xlu0 %v2804_v39, 256 }
  0xb8   : > { %4163 = vmatmul.mubr.bf16.gmra.mxu0 %v4437_v40  ;;  %4227 = vmatmul.mubr.bf16.gmra.mxu1 %v4438_v41  ;;  %v4477_v41 = vld [vmem:[%s5118_s18 + $0xf8] sm:$0xff]  }
  0xb9   : > { %4166 = vmatprep.mubr.bf16.mxu0 %v4439_v42  ;;  %4230 = vmatprep.mubr.bf16.mxu1 %v4440_v43  ;;  %v4478_v42 = vld [vmem:[%s5118_s18 + $0x1f8] sm:$0xff]  }
  0xbb   : > { %2818 = vbcast.lane.b32.xlu1 %v2804_v39, 280  ;;  %2814 = vbcast.lane.b32.xlu0 %v2804_v39, 272 }
  0xbf   : > { %2826 = vbcast.lane.b32.xlu1 %v2804_v39, 296  ;;  %2822 = vbcast.lane.b32.xlu0 %v2804_v39, 288 }
  0xc0   : > { %4167 = vmatmul.mubr.bf16.gmra.mxu0 %v4441_v44  ;;  %4231 = vmatmul.mubr.bf16.gmra.mxu1 %v4442_v45 }
  0xc1   : > { %4170 = vmatprep.mubr.bf16.mxu0 %v4443_v46  ;;  %4234 = vmatprep.mubr.bf16.mxu1 %v4444_v47  ;;  %v3004_v47 = vsub.s32 5, %v5140_v4 }
  0xc3   : > { %2834 = vbcast.lane.b32.xlu1 %v2804_v39, 312  ;;  %2830 = vbcast.lane.b32.xlu0 %v2804_v39, 304 }
  0xc7   : > { %2842 = vbcast.lane.b32.xlu1 %v2804_v39, 328  ;;  %2838 = vbcast.lane.b32.xlu0 %v2804_v39, 320 }
  0xc8   : > { %4171 = vmatmul.mubr.bf16.gmra.mxu0 %v4445_v48  ;;  %4235 = vmatmul.mubr.bf16.gmra.mxu1 %v4446_v49 }
  0xc9   : > { %4174 = vmatprep.mubr.bf16.mxu0 %v4447_v50  ;;  %4238 = vmatprep.mubr.bf16.mxu1 %v4448_v51  ;;  %v5271_v50 = vrot.slane %v5143_v5, %v3004_v47  ;;  %v3071_v51 = vsub.s32 6, %v5140_v4 }
  0xcb   : > { %2850 = vbcast.lane.b32.xlu1 %v2804_v39, 344  ;;  %2846 = vbcast.lane.b32.xlu0 %v2804_v39, 336 }
  0xcf   : > { %2858 = vbcast.lane.b32.xlu1 %v2804_v39, 360  ;;  %2854 = vbcast.lane.b32.xlu0 %v2804_v39, 352 }
  0xd0   : > { %4175 = vmatmul.mubr.bf16.gmra.mxu0 %v4449_v52  ;;  %4239 = vmatmul.mubr.bf16.gmra.mxu1 %v4450_v53 }
  0xd1   : > { %4178 = vmatprep.mubr.bf16.mxu0 %v4451_v54  ;;  %4242 = vmatprep.mubr.bf16.mxu1 %v4452_v55  ;;  %v5281_v54 = vrot.slane %v5143_v5, %v3071_v51  ;;  %v3138_v55 = vsub.s32 7, %v5140_v4 }
  0xd3   : > { %2866 = vbcast.lane.b32.xlu1 %v2804_v39, 376  ;;  %2862 = vbcast.lane.b32.xlu0 %v2804_v39, 368 }
  0xd7   : > { %2877 = vbcast.lane.b32.xlu1 %v2871_v57, 264  ;;  %2873 = vbcast.lane.b32.xlu0 %v2871_v57, 256 }
  0xd8   : > { %4179 = vmatmul.mubr.bf16.gmra.mxu0 %v4453_v58  ;;  %4243 = vmatmul.mubr.bf16.gmra.mxu1 %v4454_v59  ;;  %v5291_v58 = vrot.slane %v5143_v5, %v3138_v55 }
  0xd9   : > { %4182 = vmatprep.mubr.bf16.mxu0 %v4455_v60  ;;  %4246 = vmatprep.mubr.bf16.mxu1 %v4456_v61 }
  0xdb   : > { %2885 = vbcast.lane.b32.xlu1 %v2871_v57, 280  ;;  %2881 = vbcast.lane.b32.xlu0 %v2871_v57, 272 }
  0xdf   : > { %2893 = vbcast.lane.b32.xlu1 %v2871_v57, 296  ;;  %2889 = vbcast.lane.b32.xlu0 %v2871_v57, 288 }
  0xe0   : > { %4183 = vmatmul.mubr.bf16.gmra.mxu0 %v4457_v62  ;;  %4247 = vmatmul.mubr.bf16.gmra.mxu1 %v4458_v63 }
  0xe1   : > { %4186 = vmatprep.mubr.bf16.mxu0 %v4459_v0  ;;  %4250 = vmatprep.mubr.bf16.mxu1 %v4460_v1 }
  0xe3   : > { %2901 = vbcast.lane.b32.xlu1 %v2871_v57, 312  ;;  %2897 = vbcast.lane.b32.xlu0 %v2871_v57, 304 }
  0xe7   : > { %2909 = vbcast.lane.b32.xlu1 %v2871_v57, 328  ;;  %2905 = vbcast.lane.b32.xlu0 %v2871_v57, 320 }
  0xe8   : > { %4187 = vmatmul.mubr.bf16.gmra.mxu0 %v4461_v2  ;;  %4251 = vmatmul.mubr.bf16.gmra.mxu1 %v4462_v3 }
  0xe9   : > { %v5209_v9 = vpop.permute.xlu1 %2680  ;;  %v5211_v10 = vpop.permute.xlu0 %2672  ;;  %4190 = vmatprep.mubr.bf16.mxu0 %v4463_v7  ;;  %4254 = vmatprep.mubr.bf16.mxu1 %v4464_v8 }
  0xeb   : > { %2917 = vbcast.lane.b32.xlu1 %v2871_v57, 344  ;;  %2913 = vbcast.lane.b32.xlu0 %v2871_v57, 336 }
  0xed   : > { %v5213_v11 = vpop.permute.xlu1 %2684  ;;  %v5215_v12 = vpop.permute.xlu0 %2676 }
  0xef   : > { %2925 = vbcast.lane.b32.xlu1 %v2871_v57, 360  ;;  %2921 = vbcast.lane.b32.xlu0 %v2871_v57, 352 }
  0xf0   : > { %4191 = vmatmul.mubr.bf16.gmra.mxu0 %v4465_v13  ;;  %4255 = vmatmul.mubr.bf16.gmra.mxu1 %v4466_v14 }
  0xf1   : > { %v5222_v18 = vpop.permute.xlu1 %2692  ;;  %v5224_v19 = vpop.permute.xlu0 %2688  ;;  %4194 = vmatprep.mubr.bf16.mxu0 %v4467_v15  ;;  %4258 = vmatprep.mubr.bf16.mxu1 %v4468_v16 }
  0xf3   : > { %2933 = vbcast.lane.b32.xlu1 %v2871_v57, 376  ;;  %2929 = vbcast.lane.b32.xlu0 %v2871_v57, 368 }
  0xf5   : > { %v5227_v22 = vpop.permute.xlu1 %2700  ;;  %v5229_v23 = vpop.permute.xlu0 %2696 }
  0xf7   : > { %2944 = vbcast.lane.b32.xlu1 %v2938_v21, 264  ;;  %2940 = vbcast.lane.b32.xlu0 %v2938_v21, 256 }
  0xf8   : > { %4195 = vmatmul.mubr.bf16.gmra.mxu0 %v4469_v24  ;;  %4259 = vmatmul.mubr.bf16.gmra.mxu1 %v4470_v25  ;;  %v5360_v25 = vld [vmem:[%s6958_s3] ss:$0 sm:$0xff] }
  0xf9   : > { %v5235_v28 = vpop.permute.xlu1 %2708  ;;  %v5237_v29 = vpop.permute.xlu0 %2704  ;;  %4198 = vmatprep.mubr.bf16.mxu0 %v4471_v26  ;;  %4262 = vmatprep.mubr.bf16.mxu1 %v4472_v27 }
  0xfb   : > { %2952 = vbcast.lane.b32.xlu1 %v2938_v21, 280  ;;  %2948 = vbcast.lane.b32.xlu0 %v2938_v21, 272 }
  0xfd   : > { %v5239_v30 = vpop.permute.xlu1 %2716  ;;  %v5241_v31 = vpop.permute.xlu0 %2712 }
  0xff   : > { %2960 = vbcast.lane.b32.xlu1 %v2938_v21, 296  ;;  %2956 = vbcast.lane.b32.xlu0 %v2938_v21, 288 }
 0x100   : > { %4199 = vmatmul.mubr.bf16.gmra.mxu0 %v4473_v32  ;;  %4263 = vmatmul.mubr.bf16.gmra.mxu1 %v4474_v33 }
 0x101   : > { %v5247_v36 = vpop.permute.xlu1 %2724  ;;  %v5249_v37 = vpop.permute.xlu0 %2720  ;;  %4202 = vmatprep.mubr.bf16.mxu0 %v4475_v34  ;;  %4266 = vmatprep.mubr.bf16.mxu1 %v4476_v35 }
 0x103   : > { %2968 = vbcast.lane.b32.xlu1 %v2938_v21, 312  ;;  %2964 = vbcast.lane.b32.xlu0 %v2938_v21, 304 }
 0x105   : > { %v5251_v39 = vpop.permute.xlu1 %2732  ;;  %v5253_v40 = vpop.permute.xlu0 %2728 }
 0x107   : > { %2976 = vbcast.lane.b32.xlu1 %v2938_v21, 328  ;;  %2972 = vbcast.lane.b32.xlu0 %v2938_v21, 320 }
 0x108   : > { %4203 = vmatmul.mubr.bf16.gmra.mxu0 %v4477_v41  ;;  %4267 = vmatmul.mubr.bf16.gmra.mxu1 %v4478_v42 }
 0x109   : > { %v5257_v43 = vpop.permute.xlu1 %2743  ;;  %v5259_v44 = vpop.permute.xlu0 %2739 }
 0x10a   : > { %7000 = vst [vmem:[#allocation23_spill] sm:$0xff] %v5257_v43  ;;  %7001 = vst [vmem:[#allocation24_spill] sm:$0xff] %v5259_v44 }
 0x10b   : > { %2984 = vbcast.lane.b32.xlu1 %v2938_v21, 344  ;;  %2980 = vbcast.lane.b32.xlu0 %v2938_v21, 336 }
 0x10d   : > { %v5261_v45 = vpop.permute.xlu1 %2751  ;;  %v5263_v46 = vpop.permute.xlu0 %2747 }
 0x10e   : > { %7002 = vst [vmem:[#allocation25_spill] sm:$0xff] %v5261_v45  ;;  %7003 = vst [vmem:[#allocation26_spill] sm:$0xff] %v5263_v46 }
 0x10f   : > { %2992 = vbcast.lane.b32.xlu1 %v2938_v21, 360  ;;  %2988 = vbcast.lane.b32.xlu0 %v2938_v21, 352 }
 0x111   : > { %v5266_v48 = vpop.permute.xlu1 %2759  ;;  %v5268_v49 = vpop.permute.xlu0 %2755 }
 0x112   : > { %7004 = vst [vmem:[#allocation27_spill] sm:$0xff] %v5266_v48  ;;  %7005 = vst [vmem:[#allocation28_spill] sm:$0xff] %v5268_v49 }
 0x113   : > { %3000 = vbcast.lane.b32.xlu1 %v2938_v21, 376  ;;  %2996 = vbcast.lane.b32.xlu0 %v2938_v21, 368 }
 0x115   : > { %v5274_v52 = vpop.permute.xlu1 %2767  ;;  %v5276_v53 = vpop.permute.xlu0 %2763 }
 0x116   : > { %7006 = vst [vmem:[#allocation29_spill] sm:$0xff] %v5274_v52  ;;  %7007 = vst [vmem:[#allocation30_spill] sm:$0xff] %v5276_v53 }
 0x117   : > { %3011 = vbcast.lane.b32.xlu1 %v5271_v50, 264  ;;  %3007 = vbcast.lane.b32.xlu0 %v5271_v50, 256 }
 0x119   : > { %v5284_v56 = vpop.permute.xlu1 %2775  ;;  %v5286_v57 = vpop.permute.xlu0 %2771 }
 0x11a   : > { %7008 = vst [vmem:[#allocation31_spill] sm:$0xff] %v5284_v56  ;;  %7009 = vst [vmem:[#allocation32_spill] sm:$0xff] %v5286_v57 }
 0x11b   : > { %3074 = vbcast.lane.b32.xlu1 %v5281_v54, 256  ;;  %3015 = vbcast.lane.b32.xlu0 %v5271_v50, 272 }
 0x11d   : > { %v5293_v59 = vpop.permute.xlu1 %2783  ;;  %v5295_v60 = vpop.permute.xlu0 %2779 }
 0x11e   : > { %7010 = vst [vmem:[#allocation33_spill] sm:$0xff] %v5293_v59  ;;  %7011 = vst [vmem:[#allocation34_spill] sm:$0xff] %v5295_v60 }
 0x11f   : > { %3141 = vbcast.lane.b32.xlu1 %v5291_v58, 256  ;;  %3078 = vbcast.lane.b32.xlu0 %v5281_v54, 264 }
 0x121   : > { %v5299_v61 = vpop.permute.xlu1 %2791  ;;  %v5303_v62 = vpop.permute.xlu0 %2787 }
 0x122   : > { %7012 = vst [vmem:[#allocation35_spill] sm:$0xff] %v5299_v61  ;;  %7013 = vst [vmem:[#allocation36_spill] sm:$0xff] %v5303_v62 }
 0x123   : > { %3082 = vbcast.lane.b32.xlu1 %v5281_v54, 272  ;;  %3145 = vbcast.lane.b32.xlu0 %v5291_v58, 264 }
 0x125   : > { %v5305_v63 = vpop.permute.xlu1 %2799  ;;  %v5309_v5 = vpop.permute.xlu0 %2795 }
 0x126   : > { %7014 = vst [vmem:[#allocation37_spill] sm:$0xff] %v5305_v63  ;;  %7015 = vst [vmem:[#allocation38_spill] sm:$0xff] %v5309_v5 }
 0x127   : > { %3149 = vbcast.lane.b32.xlu1 %v5291_v58, 272  ;;  %3019 = vbcast.lane.b32.xlu0 %v5271_v50, 280 }
 0x129   : > { %v5311_v0 = vpop.permute.xlu1 %2810  ;;  %v5317_v1 = vpop.permute.xlu0 %2806 }
 0x12a   : > { %7016 = vst [vmem:[#allocation39_spill] sm:$0xff] %v5311_v0  ;;  %7017 = vst [vmem:[#allocation40_spill] sm:$0xff] %v5317_v1 }
 0x12b   : > { %3023 = vbcast.lane.b32.xlu1 %v5271_v50, 288  ;;  %3086 = vbcast.lane.b32.xlu0 %v5281_v54, 280 }
 0x12d   : > { %v5319_v2 = vpop.permute.xlu1 %2818  ;;  %v5323_v3 = vpop.permute.xlu0 %2814 }
 0x12e   : > { %7018 = vst [vmem:[#allocation41_spill] sm:$0xff] %v5319_v2  ;;  %7019 = vst [vmem:[#allocation42_spill] sm:$0xff] %v5323_v3 }
 0x12f   : > { %3090 = vbcast.lane.b32.xlu1 %v5281_v54, 288  ;;  %3153 = vbcast.lane.b32.xlu0 %v5291_v58, 280 }
 0x131   : > { %v5325_v7 = vpop.permute.xlu1 %2826  ;;  %v5331_v8 = vpop.permute.xlu0 %2822 }
 0x132   : > { %7020 = vst [vmem:[#allocation43_spill] sm:$0xff] %v5325_v7  ;;  %7021 = vst [vmem:[#allocation44_spill] sm:$0xff] %v5331_v8 }
 0x133   : > { %3157 = vbcast.lane.b32.xlu1 %v5291_v58, 288  ;;  %3027 = vbcast.lane.b32.xlu0 %v5271_v50, 296 }
 0x135   : > { %v5333_v13 = vpop.permute.xlu1 %2834  ;;  %v5337_v14 = vpop.permute.xlu0 %2830 }
 0x136   : > { %7022 = vst [vmem:[#allocation45_spill] sm:$0xff] %v5333_v13  ;;  %7023 = vst [vmem:[#allocation46_spill] sm:$0xff] %v5337_v14 }
 0x137   : > { %3031 = vbcast.lane.b32.xlu1 %v5271_v50, 304  ;;  %3094 = vbcast.lane.b32.xlu0 %v5281_v54, 296 }
 0x139   : > { %v5339_v15 = vpop.permute.xlu1 %2842  ;;  %v5345_v16 = vpop.permute.xlu0 %2838 }
 0x13a   : > { %7024 = vst [vmem:[#allocation47_spill] sm:$0xff] %v5339_v15  ;;  %7025 = vst [vmem:[#allocation48_spill] sm:$0xff] %v5345_v16 }
 0x13b   : > { %3098 = vbcast.lane.b32.xlu1 %v5281_v54, 304  ;;  %3161 = vbcast.lane.b32.xlu0 %v5291_v58, 296 }
 0x13d   : > { %v5347_v17 = vpop.permute.xlu1 %2850  ;;  %v5351_v21 = vpop.permute.xlu0 %2846 }
 0x13e   : > { %7026 = vst [vmem:[#allocation49_spill] sm:$0xff] %v5347_v17  ;;  %7027 = vst [vmem:[#allocation50_spill] sm:$0xff] %v5351_v21 }
 0x13f   : > { %3165 = vbcast.lane.b32.xlu1 %v5291_v58, 304  ;;  %3035 = vbcast.lane.b32.xlu0 %v5271_v50, 312 }
 0x141   : > { %v5353_v24 = vpop.permute.xlu1 %2858  ;;  %v5367_v34 = vpop.permute.xlu0 %2854 }
 0x142   : > { %7028 = vst [vmem:[#allocation51_spill] sm:$0xff] %v5353_v24  ;;  %7029 = vst [vmem:[#allocation52_spill] sm:$0xff] %v5367_v34 }
 0x143   : > { %3039 = vbcast.lane.b32.xlu1 %v5271_v50, 320  ;;  %3102 = vbcast.lane.b32.xlu0 %v5281_v54, 312 }
 0x145   : > { %v5369_v35 = vpop.permute.xlu1 %2866  ;;  %v5390_v24 = vpop.permute.xlu0 %2862 }
 0x146   : > { %7030 = vst [vmem:[#allocation53_spill] sm:$0xff] %v5369_v35  ;;  %7031 = vst [vmem:[#allocation54_spill] sm:$0xff] %v5390_v24 }
 0x147   : > { %3106 = vbcast.lane.b32.xlu1 %v5281_v54, 320  ;;  %3169 = vbcast.lane.b32.xlu0 %v5291_v58, 312 }
 0x149   : > { %v5392_v34 = vpop.permute.xlu1 %2877 }
 0x14a   : > { %7032 = vst [vmem:[#allocation55_spill] sm:$0xff] %v5392_v34 }
 0x14b   : > { %3173 = vbcast.lane.b32.xlu1 %v5291_v58, 320  ;;  %3043 = vbcast.lane.b32.xlu0 %v5271_v50, 328 }
 0x14d   : > { %v5419_v14 = vpop.permute.xlu1 %2885 }
 0x14e   : > { %7034 = vst [vmem:[#allocation57_spill] sm:$0xff] %v5419_v14 }
 0x14f   : > { %3047 = vbcast.lane.b32.xlu1 %v5271_v50, 336  ;;  %3110 = vbcast.lane.b32.xlu0 %v5281_v54, 328 }
 0x150   : > { %v4144_v26 = vpop.f32.mrf.mxu0  ;;  %v4208_v32 = vpop.f32.mrf.mxu1 }
 0x151   : > { %v5363_v27 = vadd.f32 %v4144_v26, %v5360_v25  ;;  %v5409_v7 = vadd.f32 %v4208_v32, %v5360_v25  ;;  %v5458_v1 = vpop.permute.xlu1 %2893 }
 0x152   : > { %v1002_v33 = vpop.f32.mrf.mxu0  ;;  %v1258_v26 = vpop.f32.mrf.mxu1  ;;  %7036 = vst [vmem:[#allocation59_spill] sm:$0xff] %v5458_v1 }
 0x153   : > { %3114 = vbcast.lane.b32.xlu1 %v5281_v54, 336  ;;  %3177 = vbcast.lane.b32.xlu0 %v5291_v58, 328  ;;  %v1515_v41 = vmul.f32 %v5363_v27, %v5363_v27  ;;  %v5374_v42 = vadd.f32 %v5360_v25, %v1002_v33  ;;  %v1579_v14 = vmul.f32 %v5409_v7, %v5409_v7 }
 0x154   : > { %v4145_v47 = vpop.f32.mrf.mxu0  ;;  %v4209_v15 = vpop.f32.mrf.mxu1 }
 0x155   : > { %v1643_v51 = vmul.f32 %v1515_v41, %v5363_v27  ;;  %v1513_v55 = vmul.f32 %v5374_v42, %v5374_v42  ;;  %v5381_v20 = vadd.f32 %v4145_v47, %v5360_v25  ;;  %v5493_v52 = vpop.permute.xlu1 %2901 }
 0x156   : > { %v1005_v38 = vpop.f32.mrf.mxu0  ;;  %v1261_v8 = vpop.f32.mrf.mxu1  ;;  %7038 = vst [vmem:[#allocation61_spill] sm:$0xff] %v5493_v52 }
 0x157   : > { %3181 = vbcast.lane.b32.xlu1 %v5291_v58, 336  ;;  %3051 = vbcast.lane.b32.xlu0 %v5271_v50, 344  ;;  %v1771_v6 = vmul.f32 0.044715, %v1643_v51  ;;  %v1641_v4 = vmul.f32 %v1513_v55, %v5374_v42  ;;  %v1516_v33 = vmul.f32 %v5381_v20, %v5381_v20  ;;  %v5388_v41 = vadd.f32 %v5360_v25, %v1005_v38 }
 0x158   : > { %v4148_v35 = vpop.f32.mrf.mxu0 }
 0x159   : > { %v1899_v47 = vadd.f32 %v1771_v6, %v5363_v27  ;;  %v1769_v17 = vmul.f32 0.044715, %v1641_v4  ;;  %v1644_v51 = vmul.f32 %v1516_v33, %v5381_v20  ;;  %v1514_v55 = vmul.f32 %v5388_v41, %v5388_v41 }
 0x15a   : > { %v1018_v38 = vpop.f32.mrf.mxu0  ;;  %v5402_v24 = vadd.f32 %v4148_v35, %v5360_v25 }
 0x15b   : > { %3055 = vbcast.lane.b32.xlu1 %v5271_v50, 352  ;;  %3118 = vbcast.lane.b32.xlu0 %v5281_v54, 344  ;;  %v2027_v21 = vmul.f32 0.7978846, %v1899_v47  ;;  %v1897_v16 = vadd.f32 %v1769_v17, %v5374_v42  ;;  %v1772_v34 = vmul.f32 0.044715, %v1644_v51  ;;  %v1642_v4 = vmul.f32 %v1514_v55, %v5388_v41  ;;  %v5417_v55 = vpop.permute.xlu0 %2873 }
 0x15c   : > { %v4149_v6 = vpop.f32.mrf.mxu0  ;;  %v1519_v33 = vmul.f32 %v5402_v24, %v5402_v24  ;;  %7033 = vst [vmem:[#allocation56_spill] sm:$0xff] %v5417_v55 }
 0x15d   : > { %v2025_v13 = vmul.f32 0.7978846, %v1897_v16  ;;  %4479 = vtanh.f32 %v2027_v21  ;;  %v1900_v47 = vadd.f32 %v1772_v34, %v5381_v20  ;;  %v1770_v17 = vmul.f32 0.044715, %v1642_v4 }
 0x15e   : > { %v1647_v35 = vmul.f32 %v1519_v33, %v5402_v24  ;;  %v5415_v16 = vadd.f32 %v5360_v25, %v1018_v38  ;;  %v1021_v51 = vpop.f32.mrf.mxu0  ;;  %v5422_v21 = vadd.f32 %v5360_v25, %v1258_v26  ;;  %v5425_v34 = vadd.f32 %v4209_v15, %v5360_v25 }
 0x15f   : > { %3122 = vbcast.lane.b32.xlu1 %v5281_v54, 352  ;;  %3185 = vbcast.lane.b32.xlu0 %v5291_v58, 344  ;;  %4481 = vtanh.f32 %v2025_v13  ;;  %v2028_v32 = vmul.f32 0.7978846, %v1900_v47  ;;  %v1898_v4 = vadd.f32 %v1770_v17, %v5388_v41  ;;  %v5431_v38 = vadd.f32 %v4149_v6, %v5360_v25  ;;  %v4212_v47 = vpop.f32.mrf.mxu1  ;;  %v5456_v0 = vpop.permute.xlu0 %2881 }
 0x160   : > { %v1775_v13 = vmul.f32 0.044715, %v1647_v35  ;;  %v1517_v33 = vmul.f32 %v5415_v16, %v5415_v16  ;;  %v5438_v15 = vadd.f32 %v5360_v25, %v1261_v8  ;;  %v4152_v55 = vpop.f32.mrf.mxu0  ;;  %v1577_v2 = vmul.f32 %v5422_v21, %v5422_v21  ;;  %7035 = vst [vmem:[#allocation58_spill] sm:$0xff] %v5456_v0 }
 0x161   : > { %4483 = vtanh.f32 %v2028_v32  ;;  %v2026_v26 = vmul.f32 0.7978846, %v1898_v4  ;;  %v1520_v6 = vmul.f32 %v5431_v38, %v5431_v38  ;;  %v1580_v32 = vmul.f32 %v5425_v34, %v5425_v34 }
 0x162   : > { %v1903_v17 = vadd.f32 %v1775_v13, %v5402_v24  ;;  %v1645_v35 = vmul.f32 %v1517_v33, %v5415_v16  ;;  %v5449_v4 = vadd.f32 %v5360_v25, %v1021_v51  ;;  %v5452_v8 = vadd.f32 %v4212_v47, %v5360_v25  ;;  %v1274_v47 = vpop.f32.mrf.mxu1  ;;  %v1034_v61 = vpop.f32.mrf.mxu0 }
 0x163   : > { %3189 = vbcast.lane.b32.xlu1 %v5291_v58, 352  ;;  %3059 = vbcast.lane.b32.xlu0 %v5271_v50, 360  ;;  %4485 = vtanh.f32 %v2026_v26  ;;  %v1648_v33 = vmul.f32 %v1520_v6, %v5431_v38  ;;  %v1578_v51 = vmul.f32 %v5438_v15, %v5438_v15  ;;  %v5467_v6 = vadd.f32 %v4152_v55, %v5360_v25 }
 0x164   : > { %v1773_v13 = vmul.f32 0.044715, %v1645_v35  ;;  %v2031_v3 = vmul.f32 0.7978846, %v1903_v17  ;;  %v1518_v63 = vmul.f32 %v5449_v4, %v5449_v4  ;;  %v1707_v0 = vmul.f32 %v1579_v14, %v5409_v7 }
 0x165   : > { %v1776_v35 = vmul.f32 0.044715, %v1648_v33  ;;  %v1705_v17 = vmul.f32 %v1577_v2, %v5422_v21  ;;  %v1708_v1 = vmul.f32 %v1580_v32, %v5425_v34  ;;  %v1583_v62 = vmul.f32 %v5452_v8, %v5452_v8 }
 0x166   : > { %v1901_v26 = vadd.f32 %v1773_v13, %v5415_v16  ;;  %v1646_v5 = vmul.f32 %v1518_v63, %v5449_v4  ;;  %v1523_v33 = vmul.f32 %v5467_v6, %v5467_v6  ;;  %4487 = vtanh.f32 %v2031_v3 }
 0x167   : > { %3063 = vbcast.lane.b32.xlu1 %v5271_v50, 368  ;;  %3126 = vbcast.lane.b32.xlu0 %v5281_v54, 360  ;;  %v1904_v13 = vadd.f32 %v1776_v35, %v5431_v38  ;;  %v5480_v14 = vadd.f32 %v5360_v25, %v1274_v47  ;;  %v5483_v55 = vadd.f32 %v5360_v25, %v1034_v61  ;;  %v1835_v56 = vmul.f32 0.044715, %v1707_v0 }
 0x168   : > { %v2029_v59 = vmul.f32 0.7978846, %v1901_v26  ;;  %v1774_v2 = vmul.f32 0.044715, %v1646_v5  ;;  %v1706_v32 = vmul.f32 %v1578_v51, %v5438_v15  ;;  %v1651_v35 = vmul.f32 %v1523_v33, %v5467_v6  ;;  %v5491_v5 = vpop.permute.xlu0 %2889  ;;  %v4213_v51 = vpop.f32.mrf.mxu1 }
 0x169   : > { %v2032_v26 = vmul.f32 0.7978846, %v1904_v13  ;;  %v1521_v47 = vmul.f32 %v5483_v55, %v5483_v55  ;;  %7037 = vst [vmem:[#allocation60_spill] sm:$0xff] %v5491_v5  ;;  %v1833_v57 = vmul.f32 0.044715, %v1705_v17  ;;  %v1711_v53 = vmul.f32 %v1583_v62, %v5452_v8 }
 0x16a   : > { %v4480_v63 = vpop.eup %4479  ;;  %4489 = vtanh.f32 %v2029_v59  ;;  %v1902_v3 = vadd.f32 %v1774_v2, %v5449_v4  ;;  %v1581_v0 = vmul.f32 %v5480_v14, %v5480_v14  ;;  %v4153_v2 = vpop.f32.mrf.mxu0  ;;  %v1836_v17 = vmul.f32 0.044715, %v1708_v1 }
 0x16b   : > { %3130 = vbcast.lane.b32.xlu1 %v5281_v54, 368  ;;  %3193 = vbcast.lane.b32.xlu0 %v5291_v58, 360  ;;  %4491 = vtanh.f32 %v2032_v26  ;;  %v2283_v59 = vadd.f32 1.0, %v4480_v63  ;;  %v1649_v33 = vmul.f32 %v1521_v47, %v5483_v55  ;;  %v1834_v5 = vmul.f32 0.044715, %v1706_v32 }
 0x16c   : > { %v4482_v60 = vpop.eup %4481  ;;  %v2030_v13 = vmul.f32 0.7978846, %v1902_v3  ;;  %v1779_v52 = vmul.f32 0.044715, %v1651_v35  ;;  %v5502_v63 = vadd.f32 %v1835_v56, %v5409_v7  ;;  %v5505_v45 = vadd.f32 %v1833_v57, %v5422_v21  ;;  %v5514_v56 = vpop.permute.xlu0 %2897 }
 0x16d   : > { %v2281_v61 = vadd.f32 1.0, %v4482_v60  ;;  %v1777_v26 = vmul.f32 0.044715, %v1649_v33  ;;  %v1839_v3 = vmul.f32 0.044715, %v1711_v53  ;;  %v5508_v47 = vadd.f32 %v4213_v51, %v5360_v25  ;;  %7039 = vst [vmem:[#allocation62_spill] sm:$0xff] %v5514_v56  ;;  %v1277_v33 = vpop.f32.mrf.mxu1 }
 0x16e   : > { %v4484_v60 = vpop.eup %4483  ;;  %4493 = vtanh.f32 %v2030_v13  ;;  %v1709_v32 = vmul.f32 %v1581_v0, %v5480_v14  ;;  %v5517_v57 = vadd.f32 %v1836_v17, %v5425_v34  ;;  %v1962_v53 = vadd.f32 %v1834_v5, %v5438_v15  ;;  %v5525_v13 = vpop.permute.xlu1 %2909 }
 0x16f   : > { %3197 = vbcast.lane.b32.xlu1 %v5291_v58, 368  ;;  %3067 = vbcast.lane.b32.xlu0 %v5271_v50, 376  ;;  %v2409_v48 = vmul.f32 0.5, %v2281_v61  ;;  %v2284_v62 = vadd.f32 1.0, %v4484_v60  ;;  %v2411_v50 = vmul.f32 0.5, %v2283_v59  ;;  %v1905_v35 = vadd.f32 %v1777_v26, %v5483_v55  ;;  %v1037_v61 = vpop.f32.mrf.mxu0  ;;  %7040 = vst [vmem:[#allocation63_spill] sm:$0xff] %v5525_v13 }
 0x170   : > { %v4486_v49 = vpop.eup %4485  ;;  %v1907_v51 = vadd.f32 %v1779_v52, %v5467_v6  ;;  %v5528_v60 = vadd.f32 %v1839_v3, %v5452_v8  ;;  %v1584_v17 = vmul.f32 %v5508_v47, %v5508_v47  ;;  %v5535_v5 = vadd.f32 %v5360_v25, %v1037_v61  ;;  %v5551_v46 = vpop.permute.xlu0 %2905 }
 0x171   : > { %v2282_v1 = vadd.f32 1.0, %v4486_v49  ;;  %v2537_v49 = vmul.f32 %v2409_v48, %v5374_v42  ;;  %v2412_v59 = vmul.f32 0.5, %v2284_v62  ;;  %v2539_v48 = vmul.f32 %v2411_v50, %v5363_v27  ;;  %7041 = vst [vmem:[#allocation64_spill] sm:$0xff] %v5551_v46 }
 0x172   : > { %v5540_v26 = vadd.f32 %v5360_v25, %v1277_v33  ;;  %v2035_v3 = vmul.f32 0.7978846, %v1907_v51  ;;  %v5553_v44 = vpop.permute.xlu1 %2917 }
 0x173   : > { %3201 = vbcast.lane.b32.xlu1 %v5291_v58, 376  ;;  %3134 = vbcast.lane.b32.xlu0 %v5281_v54, 376  ;;  %v5522_v58 = vadd.f32 %v4153_v2, %v5360_v25  ;;  %v2410_v0 = vmul.f32 0.5, %v2282_v1  ;;  %v2033_v54 = vmul.f32 0.7978846, %v1905_v35  ;;  %v4488_v62 = vpop.eup %4487  ;;  %v1522_v35 = vmul.f32 %v5535_v5, %v5535_v5  ;;  %7042 = vst [vmem:[#allocation65_spill] sm:$0xff] %v5553_v44 }
 0x174   : > { %v1837_v2 = vmul.f32 0.044715, %v1709_v32  ;;  %v3203_v61 = vmul.f32 %v5211_v10, %v2537_v49  ;;  %v2540_v56 = vmul.f32 %v2412_v59, %v5381_v20  ;;  %v1712_v32 = vmul.f32 %v1584_v17, %v5508_v47  ;;  %v4156_v49 = vpop.f32.mrf.mxu0 }
 0x175   : > { %v1524_v52 = vmul.f32 %v5522_v58, %v5522_v58  ;;  %v2538_v42 = vmul.f32 %v2410_v0, %v5388_v41  ;;  %4495 = vtanh.f32 %v2033_v54  ;;  %v2090_v41 = vmul.f32 0.7978846, %v1962_v53 }
 0x176   : > { %v1650_v33 = vmul.f32 %v1522_v35, %v5535_v5  ;;  %v3205_v54 = vmul.f32 %v5209_v9, %v2539_v48  ;;  %v2287_v43 = vadd.f32 1.0, %v4488_v62  ;;  %v1582_v10 = vmul.f32 %v5540_v26, %v5540_v26 }
 0x177   : > { %v1652_v1 = vmul.f32 %v1524_v52, %v5522_v58  ;;  %v4490_v13 = vpop.eup %4489  ;;  %v3204_v27 = vmul.f32 %v5215_v12, %v2538_v42  ;;  %4497 = vtanh.f32 %v2090_v41  ;;  %v4216_v12 = vpop.f32.mrf.mxu1  ;;  %v3206_v59 = vmul.f32 %v5213_v11, %v2540_v56 }
 0x178   : > { %v2285_v50 = vadd.f32 1.0, %v4490_v13  ;;  %v4492_v51 = vpop.eup %4491  ;;  %4499 = vtanh.f32 %v2035_v3  ;;  %v1778_v17 = vmul.f32 0.044715, %v1650_v33  ;;  %v5561_v62 = vadd.f32 %v1837_v2, %v5480_v14  ;;  %v5570_v2 = vpop.permute.xlu0 %2913 }
 0x179   : > { %v1780_v0 = vmul.f32 0.044715, %v1652_v1  ;;  %v3331_v52 = vadd.f32 %v3204_v27, %v3203_v61  ;;  %v2288_v9 = vadd.f32 1.0, %v4492_v51  ;;  %v2089_v35 = vmul.f32 0.7978846, %v5505_v45  ;;  %v1290_v56 = vpop.f32.mrf.mxu1  ;;  %7043 = vst [vmem:[#allocation66_spill] sm:$0xff] %v5570_v2 }
 0x17a   : > { %v2413_v20 = vmul.f32 0.5, %v2285_v50  ;;  %v2415_v61 = vmul.f32 0.5, %v2287_v43  ;;  %v1906_v41 = vadd.f32 %v1778_v17, %v5535_v5  ;;  %v1710_v11 = vmul.f32 %v1582_v10, %v5540_v26 }
 0x17b   : > { %v1908_v53 = vadd.f32 %v1780_v0, %v5522_v58  ;;  %v3332_v13 = vadd.f32 %v3331_v52, %v3205_v54  ;;  %v4494_v48 = vpop.eup %4493  ;;  %v5568_v0 = vadd.f32 %v4156_v49, %v5360_v25  ;;  %v2416_v33 = vmul.f32 0.5, %v2288_v9  ;;  %v5572_v52 = vpop.permute.xlu1 %2925 }
 0x17c   : > { %v2541_v42 = vmul.f32 %v2413_v20, %v5415_v16  ;;  %v2286_v27 = vadd.f32 1.0, %v4494_v48  ;;  %v1050_v16 = vpop.f32.mrf.mxu0  ;;  %v2034_v45 = vmul.f32 0.7978846, %v1906_v41  ;;  %v1840_v54 = vmul.f32 0.044715, %v1712_v32  ;;  %7044 = vst [vmem:[#allocation67_spill] sm:$0xff] %v5572_v52  ;;  %v4217_v9 = vpop.f32.mrf.mxu1 }
 0x17d   : > { %v2036_v1 = vmul.f32 0.7978846, %v1908_v53  ;;  %v3333_v3 = vadd.f32 %v3332_v13, %v3206_v59  ;;  %v1527_v20 = vmul.f32 %v5568_v0, %v5568_v0  ;;  %v2543_v10 = vmul.f32 %v2415_v61, %v5402_v24  ;;  %v5599_v41 = vpop.permute.xlu0 %2921 }
 0x17e   : > { %v3207_v50 = vmul.f32 %v5224_v19, %v2541_v42  ;;  %v2414_v51 = vmul.f32 0.5, %v2286_v27  ;;  %v5575_v19 = vadd.f32 %v4216_v12, %v5360_v25  ;;  %v5582_v49 = vadd.f32 %v5360_v25, %v1050_v16  ;;  %7045 = vst [vmem:[#allocation68_spill] sm:$0xff] %v5599_v41 }
 0x17f   : > { %4501 = vtanh.f32 %v2036_v1  ;;  %v1838_v13 = vmul.f32 0.044715, %v1710_v11  ;;  %v5585_v32 = vadd.f32 %v5360_v25, %v1290_v56  ;;  %v1655_v12 = vmul.f32 %v1527_v20, %v5568_v0  ;;  %v5605_v16 = vpop.permute.xlu1 %2933 }
 0x180   : > { %4503 = vtanh.f32 %v2089_v35  ;;  %v3334_v43 = vadd.f32 %v3333_v3, %v3207_v50  ;;  %v2542_v53 = vmul.f32 %v2414_v51, %v5449_v4  ;;  %v2092_v17 = vmul.f32 0.7978846, %v5517_v57  ;;  %v4157_v3 = vpop.f32.mrf.mxu0  ;;  %7046 = vst [vmem:[#allocation69_spill] sm:$0xff] %v5605_v16  ;;  %v1293_v51 = vpop.f32.mrf.mxu1  ;;  %v4735_v16 = vld [vmem:[%s5125_s15] sm:$0xff] }
 0x181   : > { %4505 = vtanh.f32 %v2034_v45  ;;  %v2544_v48 = vmul.f32 %v2416_v33, %v5431_v38  ;;  %v1525_v4 = vmul.f32 %v5582_v49, %v5582_v49  ;;  %v5594_v1 = vadd.f32 %v1840_v54, %v5508_v47 }
 0x182   : > { %v4496_v59 = vpop.eup %4495  ;;  %v3208_v24 = vmul.f32 %v5222_v18, %v2542_v53  ;;  %v1587_v35 = vmul.f32 %v5575_v19, %v5575_v19  ;;  %v1783_v61 = vmul.f32 0.044715, %v1655_v12  ;;  %4507 = vtanh.f32 %v2092_v17  ;;  %v1053_v12 = vpop.f32.mrf.mxu0 }
 0x183   : > { %v2289_v42 = vadd.f32 1.0, %v4496_v59  ;;  %v3209_v27 = vmul.f32 %v5229_v23, %v2543_v10  ;;  %v1653_v18 = vmul.f32 %v1525_v4, %v5582_v49  ;;  %v1966_v11 = vadd.f32 %v1838_v13, %v5540_v26 }
 0x184   : > { %v3335_v57 = vadd.f32 %v3334_v43, %v3208_v24  ;;  %v4498_v50 = vpop.eup %4497  ;;  %v1585_v56 = vmul.f32 %v5585_v32, %v5585_v32  ;;  %v5608_v33 = vadd.f32 %v4217_v9, %v5360_v25  ;;  %v2091_v23 = vmul.f32 0.7978846, %v5502_v63 }
 0x185   : > { %v2417_v38 = vmul.f32 0.5, %v2289_v42  ;;  %v4500_v45 = vpop.eup %4499  ;;  %v3210_v43 = vmul.f32 %v5227_v22, %v2544_v48  ;;  %v2346_v10 = vadd.f32 1.0, %v4498_v50  ;;  %v5614_v53 = vmul.f32 %v1587_v35, %v5575_v19 }
 0x186   : > { %v3336_v54 = vadd.f32 %v3335_v57, %v3209_v27  ;;  %v1911_v59 = vadd.f32 %v1783_v61, %v5568_v0  ;;  %v1781_v13 = vmul.f32 0.044715, %v1653_v18  ;;  %4509 = vtanh.f32 %v2091_v23  ;;  %v4220_v27 = vpop.f32.mrf.mxu1  ;;  %v5632_v18 = vpop.permute.xlu0 %2929 }
 0x187   : > { %v2545_v20 = vmul.f32 %v2417_v38, %v5483_v55  ;;  %v5619_v63 = vadd.f32 %v5360_v25, %v1293_v51  ;;  %v2474_v24 = vmul.f32 0.5, %v2346_v10  ;;  %v1713_v22 = vmul.f32 %v1585_v56, %v5585_v32  ;;  %7047 = vst [vmem:[#allocation70_spill] sm:$0xff] %v5632_v18  ;;  %v2945_v56 = vpop.permute.xlu1 %2944 }
 0x188   : > { %v3337_v17 = vadd.f32 %v3336_v54, %v3210_v43  ;;  %v1588_v55 = vmul.f32 %v5608_v33, %v5608_v33  ;;  %v1909_v48 = vadd.f32 %v1781_v13, %v5582_v49  ;;  %v5626_v42 = vadd.f32 %v4157_v3, %v5360_v25 }
 0x189   : > { %v3211_v9 = vmul.f32 %v5237_v29, %v2545_v20  ;;  %v2291_v35 = vadd.f32 1.0, %v4500_v45  ;;  %v2602_v29 = vmul.f32 %v2474_v24, %v5438_v15  ;;  %v5630_v57 = vadd.f32 %v5360_v25, %v1053_v12  ;;  %v1306_v24 = vpop.f32.mrf.mxu1 }
 0x18a   : > { %v2039_v51 = vmul.f32 0.7978846, %v1911_v59  ;;  %v2037_v23 = vmul.f32 0.7978846, %v1909_v48  ;;  %v1528_v3 = vmul.f32 %v5626_v42, %v5626_v42  ;;  %v1586_v45 = vmul.f32 %v5619_v63, %v5619_v63 }
 0x18b   : > { %v3338_v61 = vadd.f32 %v3337_v17, %v3211_v9  ;;  %v3268_v43 = vmul.f32 %v2945_v56, %v2602_v29  ;;  %v1526_v15 = vmul.f32 %v5630_v57, %v5630_v57  ;;  %v5640_v10 = vmul.f32 0.044715, %v1713_v22  ;;  %v4160_v56 = vpop.f32.mrf.mxu0 }
 0x18c   : > { %v4502_v4 = vpop.eup %4501  ;;  %v5643_v13 = vmul.f32 %v1588_v55, %v5608_v33  ;;  %4511 = vtanh.f32 %v2037_v23  ;;  %v1656_v59 = vmul.f32 %v1528_v3, %v5626_v42  ;;  %v2419_v12 = vmul.f32 0.5, %v2291_v35  ;;  %v2941_v35 = vpop.permute.xlu0 %2940 }
 0x18d   : > { %v4504_v38 = vpop.eup %4503  ;;  %v2292_v50 = vadd.f32 1.0, %v4502_v4  ;;  %v1654_v48 = vmul.f32 %v1526_v15, %v5630_v57  ;;  %4513 = vtanh.f32 %v2039_v51  ;;  %v1714_v55 = vmul.f32 %v1586_v45, %v5619_v63 }
 0x18e   : > { %v2345_v54 = vadd.f32 1.0, %v4504_v38  ;;  %v4506_v20 = vpop.eup %4505  ;;  %v1784_v29 = vmul.f32 0.044715, %v1656_v59  ;;  %v2094_v38 = vmul.f32 0.7978846, %v1966_v11  ;;  %v5654_v15 = vadd.f32 %v5360_v25, %v1306_v24 }
 0x18f   : > { %v2290_v9 = vadd.f32 1.0, %v4506_v20  ;;  %v2420_v4 = vmul.f32 0.5, %v2292_v50  ;;  %v4508_v22 = vpop.eup %4507  ;;  %v1782_v3 = vmul.f32 0.044715, %v1654_v48  ;;  %v2547_v51 = vmul.f32 %v2419_v12, %v5467_v6 }
 0x190   : > { %v2473_v17 = vmul.f32 0.5, %v2345_v54  ;;  %v5651_v54 = vadd.f32 %v4220_v27, %v5360_v25  ;;  %v2348_v50 = vadd.f32 1.0, %v4508_v22  ;;  %v1912_v11 = vadd.f32 %v1784_v29, %v5626_v42  ;;  %v1066_v27 = vpop.f32.mrf.mxu0 }
 0x191   : > { %v2418_v52 = vmul.f32 0.5, %v2290_v9  ;;  %v1910_v45 = vadd.f32 %v1782_v3, %v5630_v57  ;;  %4515 = vtanh.f32 %v2094_v38  ;;  %v2093_v29 = vmul.f32 0.7978846, %v5561_v62  ;;  %v4221_v38 = vpop.f32.mrf.mxu1 }
 0x192   : > { %3525 = vadd.xlane.f32.xlu0 %v4735_v16  ;;  %v2601_v23 = vmul.f32 %v2473_v17, %v5422_v21  ;;  %v2548_v21 = vmul.f32 %v2420_v4, %v5522_v58  ;;  %v2476_v59 = vmul.f32 0.5, %v2348_v50  ;;  %v2040_v9 = vmul.f32 0.7978846, %v1912_v11  ;;  %v2953_v4 = vpop.permute.xlu1 %2952 }
 0x193   : > { %v2546_v16 = vmul.f32 %v2418_v52, %v5535_v5  ;;  %v4510_v17 = vpop.eup %4509  ;;  %v2038_v22 = vmul.f32 0.7978846, %v1910_v45  ;;  %v5665_v5 = vadd.f32 %v4160_v56, %v5360_v25  ;;  %v3213_v58 = vmul.f32 %v5241_v31, %v2547_v51  ;;  %v1309_v45 = vpop.f32.mrf.mxu1 }
 0x194   : > { %v3267_v20 = vmul.f32 %v2941_v35, %v2601_v23  ;;  %v2604_v6 = vmul.f32 %v2476_v59, %v5425_v34  ;;  %v2347_v12 = vadd.f32 1.0, %v4510_v17  ;;  %4517 = vtanh.f32 %v2040_v9  ;;  %v4161_v9 = vpop.f32.mrf.mxu0 }
 0x195   : > { %v3212_v24 = vmul.f32 %v5235_v28, %v2546_v16  ;;  %4519 = vtanh.f32 %v2038_v22  ;;  %v5669_v23 = vadd.f32 %v5360_v25, %v1066_v27  ;;  %v1591_v28 = vmul.f32 %v5651_v54, %v5651_v54 }
 0x196   : > { %v3415_v48 = vadd.f32 %v3268_v43, %v3267_v20  ;;  %v3270_v62 = vmul.f32 %v2953_v4, %v2604_v6  ;;  %v2475_v43 = vmul.f32 0.5, %v2347_v12  ;;  %4521 = vtanh.f32 %v2093_v29  ;;  %v2949_v20 = vpop.permute.xlu0 %2948 }
 0x197   : > { %v3339_v52 = vadd.f32 %v3338_v61, %v3212_v24  ;;  %v3214_v34 = vmul.f32 %v5239_v30, %v2548_v21  ;;  %v1531_v56 = vmul.f32 %v5665_v5, %v5665_v5  ;;  %v1529_v31 = vmul.f32 %v5669_v23, %v5669_v23 }
 0x198   : > { %v5679_v61 = vmul.f32 0.044715, %v5614_v53  ;;  %v1842_v35 = vmul.f32 0.044715, %v1714_v55  ;;  %v2603_v50 = vmul.f32 %v2475_v43, %v5409_v7  ;;  %v2096_v11 = vmul.f32 0.7978846, %v5594_v1 }
 0x199   : > { %v3340_v3 = vadd.f32 %v3339_v52, %v3213_v58  ;;  %v4512_v51 = vpop.eup %4511  ;;  %v5685_v16 = vadd.f32 %v5640_v10, %v5585_v32  ;;  %v1659_v21 = vmul.f32 %v1531_v56, %v5665_v5  ;;  %v1657_v59 = vmul.f32 %v1529_v31, %v5669_v23  ;;  %v4224_v52 = vpop.f32.mrf.mxu1 }
 0x19a   : > { %v5690_v53 = vmul.f32 0.044715, %v5643_v13  ;;  %v2293_v55 = vadd.f32 1.0, %v4512_v51  ;;  %v1589_v7 = vmul.f32 %v5654_v15, %v5654_v15  ;;  %v3269_v1 = vmul.f32 %v2949_v20, %v2603_v50  ;;  %v4514_v27 = vpop.eup %4513 }
 0x19b   : > { %v3341_v30 = vadd.f32 %v3340_v3, %v3214_v34  ;;  %v1719_v10 = vmul.f32 %v1591_v28, %v5651_v54  ;;  %v1787_v17 = vmul.f32 0.044715, %v1659_v21  ;;  %v1785_v24 = vmul.f32 0.044715, %v1657_v59  ;;  %v1322_v59 = vpop.f32.mrf.mxu1 }
 0x19c   : > { %4523 = vtanh.f32 %v2096_v11  ;;  %v1970_v22 = vadd.f32 %v1842_v35, %v5619_v63  ;;  %v2421_v29 = vmul.f32 0.5, %v2293_v55  ;;  %v3416_v6 = vadd.f32 %v3415_v48, %v3269_v1 }
 0x19d   : > { %v5697_v12 = vadd.f32 %v4221_v38, %v5360_v25  ;;  %v5700_v13 = vadd.f32 %v5360_v25, %v1309_v45  ;;  %v1915_v58 = vadd.f32 %v1787_v17, %v5665_v5  ;;  %v1913_v4 = vadd.f32 %v1785_v24, %v5669_v23  ;;  %v1069_v38 = vpop.f32.mrf.mxu0 }
 0x19e   : > { %v2095_v28 = vmul.f32 0.7978846, %v5528_v60  ;;  %v2295_v43 = vadd.f32 1.0, %v4514_v27  ;;  %v2549_v34 = vmul.f32 %v2421_v29, %v5582_v49  ;;  %v5706_v3 = vadd.f32 %v3416_v6, %v3270_v62  ;;  %v4516_v56 = vpop.eup %4515 }
 0x19f   : > { %v5709_v48 = vadd.f32 %v4161_v9, %v5360_v25  ;;  %v5711_v31 = vmul.f32 0.044715, %v1719_v10  ;;  %v5714_v35 = vmul.f32 %v1589_v7, %v5654_v15  ;;  %v2041_v50 = vmul.f32 0.7978846, %v1913_v4 }
 0x1a0   : > { %4525 = vtanh.f32 %v2095_v28  ;;  %v3215_v11 = vmul.f32 %v5249_v37, %v2549_v34  ;;  %v5719_v60 = vmul.f32 %v5697_v12, %v5697_v12  ;;  %v2350_v49 = vadd.f32 1.0, %v4516_v56 }
 0x1a1   : > { %v1532_v62 = vmul.f32 %v5709_v48, %v5709_v48  ;;  %v4518_v51 = vpop.eup %4517  ;;  %v1590_v20 = vmul.f32 %v5700_v13, %v5700_v13  ;;  %v2043_v45 = vmul.f32 0.7978846, %v1915_v58  ;;  %v5726_v21 = vadd.f32 %v4224_v52, %v5360_v25 }
 0x1a2   : > { %v5729_v55 = vadd.f32 %v5360_v25, %v1069_v38  ;;  %v4520_v37 = vpop.eup %4519  ;;  %v2423_v7 = vmul.f32 0.5, %v2295_v43  ;;  %v3342_v1 = vadd.f32 %v3341_v30, %v3215_v11  ;;  %v2296_v9 = vadd.f32 1.0, %v4518_v51  ;;  %v2961_v43 = vpop.permute.xlu1 %2960 }
 0x1a3   : > { %v2478_v27 = vmul.f32 0.5, %v2350_v49  ;;  %v4522_v10 = vpop.eup %4521  ;;  %v2294_v17 = vadd.f32 1.0, %v4520_v37  ;;  %4527 = vtanh.f32 %v2041_v50  ;;  %v1660_v24 = vmul.f32 %v1532_v62, %v5709_v48 }
 0x1a4   : > { %v1530_v29 = vmul.f32 %v5729_v55, %v5729_v55  ;;  %v2424_v6 = vmul.f32 0.5, %v2296_v9  ;;  %v2349_v52 = vadd.f32 1.0, %v4522_v10  ;;  %v5736_v4 = vadd.f32 %v5360_v25, %v1322_v59  ;;  %v4164_v59 = vpop.f32.mrf.mxu0 }
 0x1a5   : > { %v2606_v58 = vmul.f32 %v2478_v27, %v5540_v26  ;;  %v2422_v28 = vmul.f32 0.5, %v2294_v17  ;;  %4529 = vtanh.f32 %v2043_v45  ;;  %v1788_v30 = vmul.f32 0.044715, %v1660_v24  ;;  %v2957_v27 = vpop.permute.xlu0 %2956 }
 0x1a6   : > { %v1658_v34 = vmul.f32 %v1530_v29, %v5729_v55  ;;  %v2551_v38 = vmul.f32 %v2423_v7, %v5568_v0  ;;  %v1718_v56 = vmul.f32 %v1590_v20, %v5700_v13  ;;  %v2477_v11 = vmul.f32 0.5, %v2349_v52 }
 0x1a7   : > { %v3272_v50 = vmul.f32 %v2961_v43, %v2606_v58  ;;  %v2550_v49 = vmul.f32 %v2422_v28, %v5630_v57  ;;  %v1595_v26 = vmul.f32 %v5726_v21, %v5726_v21  ;;  %v1916_v62 = vadd.f32 %v1788_v30, %v5709_v48  ;;  %v4225_v58 = vpop.f32.mrf.mxu1  ;;  %v1082_v28 = vpop.f32.mrf.mxu0 }
 0x1a8   : > { %v1786_v51 = vmul.f32 0.044715, %v1658_v34  ;;  %v2552_v45 = vmul.f32 %v2424_v6, %v5626_v42  ;;  %v2605_v9 = vmul.f32 %v2477_v11, %v5480_v14  ;;  %v1593_v0 = vmul.f32 %v5736_v4, %v5736_v4 }
 0x1a9   : > { %v4524_v37 = vpop.eup %4523  ;;  %v2098_v20 = vmul.f32 0.7978846, %v1970_v22  ;;  %v3216_v7 = vmul.f32 %v5247_v36, %v2550_v49  ;;  %v2044_v10 = vmul.f32 0.7978846, %v1916_v62  ;;  %v3217_v24 = vmul.f32 %v5253_v40, %v2551_v38  ;;  %v1325_v49 = vpop.f32.mrf.mxu1 }
 0x1aa   : > { %v2352_v57 = vadd.f32 1.0, %v4524_v37  ;;  %v1914_v17 = vadd.f32 %v1786_v51, %v5729_v55  ;;  %v3271_v29 = vmul.f32 %v2957_v27, %v2605_v9  ;;  %v2097_v42 = vmul.f32 0.7978846, %v5685_v16  ;;  %v2969_v16 = vpop.permute.xlu1 %2968 }
 0x1ab   : > { %4531 = vtanh.f32 %v2098_v20  ;;  %v3343_v6 = vadd.f32 %v3342_v1, %v3216_v7  ;;  %v3218_v36 = vmul.f32 %v5251_v39, %v2552_v45  ;;  %v5756_v30 = vadd.f32 %v4164_v59, %v5360_v25 }
 0x1ac   : > { %v2480_v14 = vmul.f32 0.5, %v2352_v57  ;;  %4533 = vtanh.f32 %v2044_v10  ;;  %v2042_v52 = vmul.f32 0.7978846, %v1914_v17  ;;  %v3418_v43 = vadd.f32 %v5706_v3, %v3271_v29  ;;  %v2965_v17 = vpop.permute.xlu0 %2964 }
 0x1ad   : > { %v4526_v22 = vpop.eup %4525  ;;  %4535 = vtanh.f32 %v2097_v42  ;;  %v3344_v40 = vadd.f32 %v3343_v6, %v3217_v24  ;;  %v5760_v11 = vadd.f32 %v4225_v58, %v5360_v25  ;;  %v1535_v39 = vmul.f32 %v5756_v30, %v5756_v30 }
 0x1ae   : > { %v2608_v34 = vmul.f32 %v2480_v14, %v5508_v47  ;;  %v2351_v38 = vadd.f32 1.0, %v4526_v22  ;;  %4537 = vtanh.f32 %v2042_v52  ;;  %v3419_v1 = vadd.f32 %v3418_v43, %v3272_v50 }
 0x1af   : > { %v5765_v3 = vadd.f32 %v5360_v25, %v1082_v28  ;;  %v1845_v62 = vmul.f32 0.044715, %v5714_v35  ;;  %v5768_v51 = vadd.f32 %v3344_v40, %v3218_v36  ;;  %v1720_v50 = vmul.f32 %v5719_v60, %v5697_v12  ;;  %v4165_v36 = vpop.f32.mrf.mxu0 }
 0x1b0   : > { %v3274_v59 = vmul.f32 %v2969_v16, %v2608_v34  ;;  %v2479_v47 = vmul.f32 0.5, %v2351_v38  ;;  %v4528_v37 = vpop.eup %4527  ;;  %v1846_v45 = vmul.f32 0.044715, %v1718_v56  ;;  %v1663_v9 = vmul.f32 %v1535_v39, %v5756_v30 }
 0x1b1   : > { %v1533_v20 = vmul.f32 %v5765_v3, %v5765_v3  ;;  %v1971_v7 = vadd.f32 %v5679_v61, %v5575_v19  ;;  %v1723_v27 = vmul.f32 %v1595_v26, %v5726_v21  ;;  %v5780_v57 = vadd.f32 %v5360_v25, %v1325_v49 }
 0x1b2   : > { %v2607_v35 = vmul.f32 %v2479_v47, %v5452_v8  ;;  %v4530_v10 = vpop.eup %4529  ;;  %v1972_v60 = vadd.f32 %v5690_v53, %v5608_v33  ;;  %v1721_v56 = vmul.f32 %v1593_v0, %v5736_v4  ;;  %v1596_v24 = vmul.f32 %v5760_v11, %v5760_v11 }
 0x1b3   : > { %v1661_v29 = vmul.f32 %v1533_v20, %v5765_v3  ;;  %v5790_v61 = vadd.f32 %v5711_v31, %v5651_v54  ;;  %v2297_v8 = vadd.f32 1.0, %v4528_v37  ;;  %v1791_v58 = vmul.f32 0.044715, %v1663_v9  ;;  %v4228_v31 = vpop.f32.mrf.mxu1 }
 0x1b4   : > { %v3273_v26 = vmul.f32 %v2965_v17, %v2607_v35  ;;  %v5793_v42 = vadd.f32 %v1845_v62, %v5654_v15  ;;  %v5795_v6 = vmul.f32 0.044715, %v1720_v50  ;;  %v1974_v53 = vadd.f32 %v1846_v45, %v5700_v13  ;;  %v1085_v17 = vpop.f32.mrf.mxu0 }
 0x1b5   : > { %v1789_v0 = vmul.f32 0.044715, %v1661_v29  ;;  %v2299_v14 = vadd.f32 1.0, %v4530_v10  ;;  %v5798_v52 = vmul.f32 0.044715, %v1723_v27  ;;  %v1594_v22 = vmul.f32 %v5780_v57, %v5780_v57 }
 0x1b6   : > { %v3420_v28 = vadd.f32 %v3419_v1, %v3273_v26  ;;  %v5802_v43 = vmul.f32 0.044715, %v1721_v56  ;;  %v5805_v40 = vmul.f32 %v1596_v24, %v5760_v11  ;;  %v2100_v38 = vmul.f32 0.7978846, %v1972_v60 }
 0x1b7   : > { %v1917_v34 = vadd.f32 %v1789_v0, %v5765_v3  ;;  %v2425_v49 = vmul.f32 0.5, %v2297_v8  ;;  %v1919_v62 = vadd.f32 %v1791_v58, %v5756_v30  ;;  %v2099_v47 = vmul.f32 0.7978846, %v1971_v7 }
 0x1b8   : > { %v4532_v16 = vpop.eup %4531  ;;  %v3421_v39 = vadd.f32 %v3420_v28, %v3274_v59  ;;  %v5810_v50 = vadd.f32 %v4228_v31, %v5360_v25  ;;  %v5813_v9 = vadd.f32 %v4165_v36, %v5360_v25  ;;  %v2427_v27 = vmul.f32 0.5, %v2299_v14  ;;  %v1338_v25 = vpop.f32.mrf.mxu1 }
 0x1b9   : > { %v4534_v1 = vpop.eup %4533  ;;  %v2354_v37 = vadd.f32 1.0, %v4532_v16  ;;  %v2045_v45 = vmul.f32 0.7978846, %v1917_v34  ;;  %v1722_v10 = vmul.f32 %v1594_v22, %v5780_v57  ;;  %4539 = vtanh.f32 %v2100_v38  ;;  %v2977_v34 = vpop.permute.xlu1 %2976 }
 0x1ba   : > { %v4536_v20 = vpop.eup %4535  ;;  %v2300_v35 = vadd.f32 1.0, %v4534_v1  ;;  %v1536_v7 = vmul.f32 %v5813_v9, %v5813_v9  ;;  %v2553_v24 = vmul.f32 %v2425_v49, %v5669_v23  ;;  %v2047_v8 = vmul.f32 0.7978846, %v1919_v62  ;;  %v5827_v23 = vld [vmem:[%s6958_s3] ss:$0 sm:$0xff]  ;;  %v7048_v62 = vld [vmem:[#allocation24_spill] sm:$0xff] }
 0x1bb   : > { %v4538_v60 = vpop.eup %4537  ;;  %v2482_v59 = vmul.f32 0.5, %v2354_v37  ;;  %v2353_v56 = vadd.f32 1.0, %v4536_v20  ;;  %4541 = vtanh.f32 %v2045_v45  ;;  %v1599_v0 = vmul.f32 %v5810_v50, %v5810_v50  ;;  %v2973_v37 = vpop.permute.xlu0 %2972 }
 0x1bc   : > { %v2298_v29 = vadd.f32 1.0, %v4538_v60  ;;  %4543 = vtanh.f32 %v2099_v47  ;;  %v1664_v14 = vmul.f32 %v1536_v7, %v5813_v9  ;;  %v3346_v28 = vrot.slane %v5768_v51, 4  ;;  %v4168_v20 = vpop.f32.mrf.mxu0 }
 0x1bd   : > { %v2610_v26 = vmul.f32 %v2482_v59, %v5619_v63  ;;  %v2481_v58 = vmul.f32 0.5, %v2353_v56  ;;  %v2428_v22 = vmul.f32 0.5, %v2300_v35  ;;  %v5830_v36 = vadd.f32 %v5827_v23, %v1085_v17  ;;  %v7049_v59 = vld [vmem:[#allocation23_spill] sm:$0xff] }
 0x1be   : > { %v2426_v31 = vmul.f32 0.5, %v2298_v29  ;;  %v2555_v63 = vmul.f32 %v2427_v27, %v5665_v5  ;;  %v5835_v16 = vadd.f32 %v5827_v23, %v1338_v25  ;;  %v1792_v49 = vmul.f32 0.044715, %v1664_v14  ;;  %v1098_v14 = vpop.f32.mrf.mxu0 }
 0x1bf   : > { %v2609_v38 = vmul.f32 %v2481_v58, %v5585_v32  ;;  %v3219_v47 = vmul.f32 %v7048_v62, %v2553_v24  ;;  %4545 = vtanh.f32 %v2047_v8  ;;  %v1534_v45 = vmul.f32 %v5830_v36, %v5830_v36  ;;  %v7050_v8 = vld [vmem:[#allocation26_spill] sm:$0xff] }
 0x1c0   : > { %v2554_v1 = vmul.f32 %v2426_v31, %v5729_v55  ;;  %v3276_v35 = vmul.f32 %v2977_v34, %v2610_v26  ;;  %v1920_v5 = vadd.f32 %v1792_v49, %v5813_v9  ;;  %v2102_v27 = vmul.f32 0.7978846, %v1974_v53 }
 0x1c1   : > { %v3275_v60 = vmul.f32 %v2973_v37, %v2609_v38  ;;  %v2556_v32 = vmul.f32 %v2428_v22, %v5709_v48  ;;  %v1662_v7 = vmul.f32 %v1534_v45, %v5830_v36  ;;  %v2101_v17 = vmul.f32 0.7978846, %v5793_v42  ;;  %v4229_v45 = vpop.f32.mrf.mxu1 }
 0x1c2   : > { %v3220_v56 = vmul.f32 %v7049_v59, %v2554_v1  ;;  %v1727_v24 = vmul.f32 %v1599_v0, %v5810_v50  ;;  %v2048_v29 = vmul.f32 0.7978846, %v1920_v5  ;;  %4547 = vtanh.f32 %v2102_v27 }
 0x1c3   : > { %v3422_v55 = vadd.f32 %v3421_v39, %v3275_v60  ;;  %v3221_v25 = vmul.f32 %v7050_v8, %v2555_v63  ;;  %v1790_v58 = vmul.f32 0.044715, %v1662_v7  ;;  %4549 = vtanh.f32 %v2101_v17  ;;  %v7051_v39 = vld [vmem:[#allocation25_spill] sm:$0xff] }
 0x1c4   : > { %v3352_v26 = vadd.f32 %v3220_v56, %v3219_v47  ;;  %v3347_v53 = vadd.f32 %v3346_v28, %v5768_v51  ;;  %v1597_v48 = vmul.f32 %v5835_v16, %v5835_v16  ;;  %v5854_v42 = vadd.f32 %v5827_v23, %v4168_v20 }
 0x1c5   : > { %v5851_v22 = vadd.f32 %v3422_v55, %v3276_v35  ;;  %v3222_v0 = vmul.f32 %v7051_v39, %v2556_v32  ;;  %4551 = vtanh.f32 %v2048_v29  ;;  %v1918_v63 = vadd.f32 %v1790_v58, %v5830_v36  ;;  %v4169_v39 = vpop.f32.mrf.mxu0 }
 0x1c6   : > { %v3353_v31 = vadd.f32 %v3352_v26, %v3221_v25  ;;  %v4540_v34 = vpop.eup %4539  ;;  %v1852_v38 = vmul.f32 0.044715, %v5805_v40  ;;  %v1850_v49 = vmul.f32 0.044715, %v1722_v10  ;;  %v1539_v51 = vmul.f32 %v5854_v42, %v5854_v42  ;;  %v1341_v25 = vpop.f32.mrf.mxu1 }
 0x1c7   : > { %v5862_v28 = vadd.f32 %v5827_v23, %v1098_v14  ;;  %v1855_v47 = vmul.f32 0.044715, %v1727_v24  ;;  %v2356_v37 = vadd.f32 1.0, %v4540_v34  ;;  %v2046_v20 = vmul.f32 0.7978846, %v1918_v63  ;;  %v7052_v34 = vld [vmem:[#allocation28_spill] sm:$0xff] }
 0x1c8   : > { %v4542_v62 = vpop.eup %4541  ;;  %v3354_v1 = vadd.f32 %v3353_v31, %v3222_v0  ;;  %v3348_v60 = vrot.slane %v3347_v53, 2  ;;  %v1667_v27 = vmul.f32 %v1539_v51, %v5854_v42  ;;  %v1725_v10 = vmul.f32 %v1597_v48, %v5835_v16  ;;  %v2981_v51 = vpop.permute.xlu0 %2980 }
 0x1c9   : > { %v4544_v35 = vpop.eup %4543  ;;  %v2301_v5 = vadd.f32 1.0, %v4542_v62  ;;  %v1537_v40 = vmul.f32 %v5862_v28, %v5862_v28  ;;  %v2484_v32 = vmul.f32 0.5, %v2356_v37  ;;  %4553 = vtanh.f32 %v2046_v20  ;;  %v2985_v37 = vpop.permute.xlu1 %2984 }
 0x1ca   : > { %v2355_v59 = vadd.f32 1.0, %v4544_v35  ;;  %v1976_v56 = vadd.f32 %v5795_v6, %v5697_v12  ;;  %v5872_v7 = vadd.f32 %v5798_v52, %v5726_v21  ;;  %v5877_v24 = vadd.f32 %v5802_v43, %v5736_v4  ;;  %v4232_v35 = vpop.f32.mrf.mxu1 }
 0x1cb   : > { %v2429_v17 = vmul.f32 0.5, %v2301_v5  ;;  %v1665_v55 = vmul.f32 %v1537_v40, %v5862_v28  ;;  %v5880_v29 = vadd.f32 %v1852_v38, %v5760_v11  ;;  %v1795_v26 = vmul.f32 0.044715, %v1667_v27 }
 0x1cc   : > { %v2483_v8 = vmul.f32 0.5, %v2355_v59  ;;  %v4546_v58 = vpop.eup %4545  ;;  %v1978_v6 = vadd.f32 %v1850_v49, %v5780_v57  ;;  %v5884_v14 = vadd.f32 %v1855_v47, %v5810_v50  ;;  %v5887_v0 = vadd.f32 %v3348_v60, %v3347_v53 }
 0x1cd   : > { %v2557_v52 = vmul.f32 %v2429_v17, %v5765_v3  ;;  %v1793_v48 = vmul.f32 0.044715, %v1665_v55  ;;  %v5889_v43 = vmul.f32 0.044715, %v1725_v10  ;;  %v2612_v31 = vmul.f32 %v2484_v32, %v5608_v33 }
 0x1ce   : > { %v2611_v63 = vmul.f32 %v2483_v8, %v5575_v19  ;;  %v5895_v49 = vadd.f32 %v5827_v23, %v4229_v45  ;;  %v2104_v47 = vmul.f32 0.7978846, %v1976_v56  ;;  %v1923_v53 = vadd.f32 %v1795_v26, %v5854_v42  ;;  %v1101_v56 = vpop.f32.mrf.mxu0 }
 0x1cf   : > { %v3223_v38 = vmul.f32 %v7052_v34, %v2557_v52  ;;  %v1921_v62 = vadd.f32 %v1793_v48, %v5862_v28  ;;  %v4548_v3 = vpop.eup %4547  ;;  %v2103_v60 = vmul.f32 0.7978846, %v5790_v61  ;;  %v5901_v33 = vadd.f32 %v5827_v23, %v4169_v39  ;;  %v2993_v34 = vpop.permute.xlu1 %2992 }
 0x1d0   : > { %v3277_v20 = vmul.f32 %v2981_v51, %v2611_v63  ;;  %v4550_v19 = vpop.eup %4549  ;;  %v5906_v45 = vadd.f32 %v5827_v23, %v1341_v25  ;;  %v2358_v27 = vadd.f32 1.0, %v4548_v3  ;;  %v3278_v10 = vmul.f32 %v2985_v37, %v2612_v31  ;;  %v1354_v25 = vpop.f32.mrf.mxu1 }
 0x1d1   : > { %v5903_v5 = vadd.f32 %v3354_v1, %v3223_v38  ;;  %v2049_v40 = vmul.f32 0.7978846, %v1921_v62  ;;  %v2357_v59 = vadd.f32 1.0, %v4550_v19  ;;  %4555 = vtanh.f32 %v2104_v47  ;;  %v2989_v37 = vpop.permute.xlu0 %2988 }
 0x1d2   : > { %v3424_v32 = vadd.f32 %v5851_v22, %v3277_v20  ;;  %v4552_v17 = vpop.eup %4551  ;;  %v2303_v55 = vadd.f32 1.0, %v4546_v58  ;;  %v2486_v61 = vmul.f32 0.5, %v2358_v27  ;;  %v1540_v8 = vmul.f32 %v5901_v33, %v5901_v33 }
 0x1d3   : > { %4557 = vtanh.f32 %v2049_v40  ;;  %v2485_v1 = vmul.f32 0.5, %v2357_v59  ;;  %v2051_v52 = vmul.f32 0.7978846, %v1923_v53  ;;  %v1600_v48 = vmul.f32 %v5895_v49, %v5895_v49  ;;  %v4172_v53 = vpop.f32.mrf.mxu0  ;;  %v4233_v40 = vpop.f32.mrf.mxu1 }
 0x1d4   : > { %v3425_v26 = vadd.f32 %v3424_v32, %v3278_v10  ;;  %4559 = vtanh.f32 %v2103_v60  ;;  %v2614_v22 = vmul.f32 %v2486_v61, %v5700_v13  ;;  %v1668_v39 = vmul.f32 %v1540_v8, %v5901_v33 }
 0x1d5   : > { %v5916_v31 = vadd.f32 %v5827_v23, %v1101_v56  ;;  %v3350_v58 = vrot.slane %v5887_v0, 1  ;;  %v2304_v63 = vadd.f32 1.0, %v4552_v17  ;;  %v2613_v38 = vmul.f32 %v2485_v1, %v5654_v15 }
 0x1d6   : > { %v2106_v51 = vmul.f32 0.7978846, %v1978_v6  ;;  %v4554_v62 = vpop.eup %4553  ;;  %v2431_v47 = vmul.f32 0.5, %v2303_v55  ;;  %v1598_v3 = vmul.f32 %v5906_v45, %v5906_v45  ;;  %v1796_v20 = vmul.f32 0.044715, %v1668_v39 }
 0x1d7   : > { %v1538_v13 = vmul.f32 %v5916_v31, %v5916_v31  ;;  %v2302_v60 = vadd.f32 1.0, %v4554_v62  ;;  %v3280_v19 = vmul.f32 %v2993_v34, %v2614_v22  ;;  %v3279_v27 = vmul.f32 %v2989_v37, %v2613_v38 }
 0x1d8   : > { %4561 = vtanh.f32 %v2051_v52  ;;  %v1728_v10 = vmul.f32 %v1600_v48, %v5895_v49  ;;  %v5926_v15 = vadd.f32 %v5827_v23, %v4232_v35  ;;  %v1924_v6 = vadd.f32 %v1796_v20, %v5901_v33  ;;  %v1114_v52 = vpop.f32.mrf.mxu0 }
 0x1d9   : > { %v1666_v32 = vmul.f32 %v1538_v13, %v5916_v31  ;;  %v2432_v59 = vmul.f32 0.5, %v2304_v63  ;;  %v2430_v56 = vmul.f32 0.5, %v2302_v60  ;;  %v3426_v17 = vadd.f32 %v3425_v26, %v3279_v27  ;;  %v1357_v63 = vpop.f32.mrf.mxu1  ;;  %v7055_v13 = vld [vmem:[#allocation30_spill] sm:$0xff] }
 0x1da   : > { %7053 = vst [vmem:[#allocation24_spill] sm:$0xff] %v5926_v15  ;;  %4563 = vtanh.f32 %v2106_v51  ;;  %v2052_v55 = vmul.f32 0.7978846, %v1924_v6  ;;  %v2105_v8 = vmul.f32 0.7978846, %v5877_v24  ;;  %v5932_v1 = vadd.f32 %v5827_v23, %v4172_v53  ;;  %v7054_v51 = vld [vmem:[#allocation27_spill] sm:$0xff] }
 0x1db   : > { %v1794_v61 = vmul.f32 0.044715, %v1666_v32  ;;  %v2559_v48 = vmul.f32 %v2431_v47, %v5756_v30  ;;  %v2558_v35 = vmul.f32 %v2430_v56, %v5830_v36  ;;  %v1726_v22 = vmul.f32 %v1598_v3, %v5906_v45  ;;  %v7056_v56 = vld [vmem:[#allocation29_spill] sm:$0xff] }
 0x1dc   : > { %v5937_v39 = vadd.f32 %v3426_v17, %v3280_v19  ;;  %v5940_v26 = vadd.f32 %v5827_v23, %v1354_v25  ;;  %4565 = vtanh.f32 %v2052_v55  ;;  %v1543_v24 = vmul.f32 %v5932_v1, %v5932_v1  ;;  %v4236_v19 = vpop.f32.mrf.mxu1 }
 0x1dd   : > { %v1922_v34 = vadd.f32 %v1794_v61, %v5916_v31  ;;  %v2560_v38 = vmul.f32 %v2432_v59, %v5813_v9  ;;  %v3224_v30 = vmul.f32 %v7054_v51, %v2558_v35  ;;  %4567 = vtanh.f32 %v2105_v8 }
 0x1de   : > { %v5948_v36 = vadd.f32 %v5827_v23, %v1114_v52  ;;  %v4556_v62 = vpop.eup %4555  ;;  %v1856_v47 = vmul.f32 0.044715, %v1728_v10  ;;  %v1603_v25 = vmul.f32 %v5926_v15, %v5926_v15  ;;  %v1671_v37 = vmul.f32 %v1543_v24, %v5932_v1 }
 0x1df   : > { %v2050_v3 = vmul.f32 0.7978846, %v1922_v34  ;;  %v3225_v53 = vmul.f32 %v7055_v13, %v2559_v48  ;;  %v3356_v60 = vadd.f32 %v5903_v5, %v3224_v30  ;;  %v2360_v9 = vadd.f32 1.0, %v4556_v62  ;;  %v5973_v30 = vpop.f32.mrf.mxu1 }
 0x1e0   : > { %v4558_v20 = vpop.eup %4557  ;;  %v1541_v27 = vmul.f32 %v5948_v36, %v5948_v36  ;;  %v1601_v10 = vmul.f32 %v5940_v26, %v5940_v26  ;;  %v1799_v59 = vmul.f32 0.044715, %v1671_v37  ;;  %v3226_v17 = vmul.f32 %v7056_v56, %v2560_v38 }
 0x1e1   : > { %v4560_v6 = vpop.eup %4559  ;;  %v2305_v32 = vadd.f32 1.0, %v4558_v20  ;;  %4569 = vtanh.f32 %v2050_v3  ;;  %v3357_v55 = vadd.f32 %v3356_v60, %v3225_v53  ;;  %v2488_v61 = vmul.f32 0.5, %v2360_v9  ;;  %v4173_v20 = vpop.f32.mrf.mxu0  ;;  %v7059_v60 = vld [vmem:[#allocation32_spill] sm:$0xff] }
 0x1e2   : > { %v2359_v8 = vadd.f32 1.0, %v4560_v6  ;;  %v5962_v5 = vadd.f32 %v5889_v43, %v5835_v16  ;;  %v5965_v48 = vadd.f32 %v5827_v23, %v4233_v40  ;;  %v1669_v35 = vmul.f32 %v1541_v27, %v5948_v36  ;;  %v2997_v27 = vpop.permute.xlu0 %2996 }
 0x1e3   : > { %v2433_v52 = vmul.f32 0.5, %v2305_v32  ;;  %v5971_v34 = vadd.f32 %v3350_v58, %v5887_v0  ;;  %v1854_v24 = vmul.f32 0.044715, %v1726_v22  ;;  %v3358_v38 = vadd.f32 %v3357_v55, %v3226_v17  ;;  %v3001_v32 = vpop.permute.xlu1 %3000 }
 0x1e4   : > { %7057 = vst [vmem:[#allocation23_spill] sm:$0xff] %v5965_v48  ;;  %v2487_v51 = vmul.f32 0.5, %v2359_v8  ;;  %v2616_v3 = vmul.f32 %v2488_v61, %v5697_v12  ;;  %v1927_v40 = vadd.f32 %v1799_v59, %v5932_v1  ;;  %v1797_v37 = vmul.f32 0.044715, %v1669_v35 }
 0x1e5   : > { %7058 = vst [vmem:[#allocation26_spill] sm:$0xff] %v5971_v34  ;;  %v4562_v62 = vpop.eup %4561  ;;  %v2561_v43 = vmul.f32 %v2433_v52, %v5862_v28  ;;  %v5979_v13 = vadd.f32 %v1856_v47, %v5895_v49  ;;  %v1731_v0 = vmul.f32 %v1603_v25, %v5926_v15  ;;  %v1729_v58 = vmul.f32 %v1601_v10, %v5940_v26 }
 0x1e6   : > { %v2615_v22 = vmul.f32 %v2487_v51, %v5651_v54  ;;  %v1604_v12 = vmul.f32 %v5965_v48, %v5965_v48  ;;  %v5988_v28 = vadd.f32 %v5827_v23, %v1357_v63  ;;  %v1925_v6 = vadd.f32 %v1797_v37, %v5948_v36  ;;  %v5995_v54 = vpop.f32.mrf.mxu1  ;;  %v1117_v51 = vpop.f32.mrf.mxu0 }
 0x1e7   : > { %v4564_v53 = vpop.eup %4563  ;;  %v3227_v9 = vmul.f32 %v7059_v60, %v2561_v43  ;;  %v2307_v47 = vadd.f32 1.0, %v4562_v62  ;;  %v2107_v25 = vmul.f32 0.7978846, %v5872_v7  ;;  %v5993_v10 = vadd.f32 %v5827_v23, %v4173_v20 }
 0x1e8   : > { %7060 = vst [vmem:[#allocation25_spill] sm:$0xff] %v5988_v28  ;;  %v3281_v59 = vmul.f32 %v2997_v27, %v2615_v22  ;;  %v3282_v17 = vmul.f32 %v3001_v32, %v2616_v3  ;;  %v2055_v55 = vmul.f32 0.7978846, %v1927_v40  ;;  %v2053_v61 = vmul.f32 0.7978846, %v1925_v6  ;;  %v6010_v20 = vpop.f32.mrf.mxu1 }
 0x1e9   : > { %v5997_v56 = vadd.f32 %v3358_v38, %v3227_v9  ;;  %v4566_v8 = vpop.eup %4565  ;;  %v2362_v52 = vadd.f32 1.0, %v4564_v53  ;;  %4571 = vtanh.f32 %v2107_v25  ;;  %v1544_v35 = vmul.f32 %v5993_v10, %v5993_v10 }
 0x1ea   : > { %v3428_v63 = vadd.f32 %v5937_v39, %v3281_v59  ;;  %v4568_v7 = vpop.eup %4567  ;;  %v1859_v62 = vmul.f32 0.044715, %v1731_v0  ;;  %v1857_v43 = vmul.f32 0.044715, %v1729_v58  ;;  %v1602_v37 = vmul.f32 %v5988_v28, %v5988_v28 }
 0x1eb   : > { %4573 = vtanh.f32 %v2053_v61  ;;  %v2308_v3 = vadd.f32 1.0, %v4566_v8  ;;  %v6007_v40 = vadd.f32 %v5827_v23, %v4236_v19  ;;  %v1672_v39 = vmul.f32 %v1544_v35, %v5993_v10  ;;  %v4240_v61 = vpop.f32.mrf.mxu1 }
 0x1ec   : > { %v6004_v38 = vadd.f32 %v3428_v63, %v3282_v17  ;;  %v6013_v22 = vadd.f32 %v1854_v24, %v5906_v45  ;;  %v1732_v0 = vmul.f32 %v1604_v12, %v5965_v48  ;;  %v2361_v58 = vadd.f32 1.0, %v4568_v7  ;;  %v4176_v12 = vpop.f32.mrf.mxu0 }
 0x1ed   : > { %7061 = vst [vmem:[#allocation28_spill] sm:$0xff] %v6007_v40  ;;  %v6017_v53 = vadd.f32 %v5827_v23, %v1117_v51  ;;  %v2435_v9 = vmul.f32 0.5, %v2307_v47  ;;  %v2490_v27 = vmul.f32 0.5, %v2362_v52  ;;  %4575 = vtanh.f32 %v2055_v55 }
 0x1ee   : > { %v4570_v60 = vpop.eup %4569  ;;  %v1800_v6 = vmul.f32 0.044715, %v1672_v39  ;;  %v6020_v19 = vadd.f32 %v1859_v62, %v5926_v15  ;;  %v6023_v32 = vadd.f32 %v1857_v43, %v5940_v26  ;;  %v2436_v25 = vmul.f32 0.5, %v2308_v3 }
 0x1ef   : > { %v2306_v59 = vadd.f32 1.0, %v4570_v60  ;;  %v1542_v24 = vmul.f32 %v6017_v53, %v6017_v53  ;;  %v1730_v17 = vmul.f32 %v1602_v37, %v5988_v28  ;;  %v1607_v47 = vmul.f32 %v6007_v40, %v6007_v40 }
 0x1f0   : > { %v1928_v55 = vadd.f32 %v1800_v6, %v5993_v10  ;;  %v6031_v8 = vmul.f32 0.044715, %v1732_v0  ;;  %v2489_v52 = vmul.f32 0.5, %v2361_v58  ;;  %v2563_v51 = vmul.f32 %v2435_v9, %v5854_v42  ;;  %v1130_v58 = vpop.f32.mrf.mxu0 }
 0x1f1   : > { %v2434_v63 = vmul.f32 0.5, %v2306_v59  ;;  %v1670_v35 = vmul.f32 %v1542_v24, %v6017_v53  ;;  %v2618_v7 = vmul.f32 %v2490_v27, %v5780_v57  ;;  %v6038_v62 = vadd.f32 %v5827_v23, %v5973_v30  ;;  %v7063_v30 = vld [vmem:[#allocation31_spill] sm:$0xff]  ;;  %v7064_v59 = vld [vmem:[#allocation34_spill] sm:$0xff] }
 0x1f2   : > { %v2056_v43 = vmul.f32 0.7978846, %v1928_v55  ;;  %v6042_v39 = vadd.f32 %v5827_v23, %v4176_v12  ;;  %v6045_v0 = vadd.f32 %v5827_v23, %v4240_v61  ;;  %v2564_v60 = vmul.f32 %v2436_v25, %v5901_v33  ;;  %v3012_v12 = vpop.permute.xlu1 %3011  ;;  %v4177_v44 = vpop.f32.mrf.mxu0 }
 0x1f3   : > { %7062 = vst [vmem:[#allocation27_spill] sm:$0xff] %v6038_v62  ;;  %v2562_v37 = vmul.f32 %v2434_v63, %v5916_v31  ;;  %v1798_v3 = vmul.f32 0.044715, %v1670_v35  ;;  %v6048_v42 = vmul.f32 0.044715, %v1730_v17  ;;  %v6051_v57 = vmul.f32 %v1607_v47, %v6007_v40  ;;  %v1386_v47 = vpop.f32.mrf.mxu1  ;;  %v3008_v63 = vpop.permute.xlu0 %3007 }
 0x1f4   : > { %4577 = vtanh.f32 %v2056_v43  ;;  %v2617_v31 = vmul.f32 %v2489_v52, %v5736_v4  ;;  %v1547_v6 = vmul.f32 %v6042_v39, %v6042_v39  ;;  %v3229_v24 = vmul.f32 %v7064_v59, %v2563_v51  ;;  %v7065_v43 = vld [vmem:[#allocation33_spill] sm:$0xff] }
 0x1f5   : > { %v3228_v9 = vmul.f32 %v7063_v30, %v2562_v37  ;;  %v1926_v27 = vadd.f32 %v1798_v3, %v6017_v53  ;;  %v1605_v33 = vmul.f32 %v6038_v62, %v6038_v62  ;;  %v1611_v25 = vmul.f32 %v6045_v0, %v6045_v0 }
 0x1f6   : > { %v6064_v17 = vadd.f32 %v5827_v23, %v1130_v58  ;;  %v4572_v55 = vpop.eup %4571  ;;  %v3284_v61 = vmul.f32 %v3012_v12, %v2618_v7  ;;  %v1675_v35 = vmul.f32 %v1547_v6, %v6042_v39  ;;  %v3230_v37 = vmul.f32 %v7065_v43, %v2564_v60  ;;  %v4241_v6 = vpop.f32.mrf.mxu1 }
 0x1f7   : > { %v3360_v4 = vadd.f32 %v5997_v56, %v3228_v9  ;;  %v2054_v52 = vmul.f32 0.7978846, %v1926_v27  ;;  %v2363_v3 = vadd.f32 1.0, %v4572_v55  ;;  %v1739_v30 = vmul.f32 %v1611_v25, %v6045_v0 }
 0x1f8   : > { %v4574_v51 = vpop.eup %4573  ;;  %v1545_v59 = vmul.f32 %v6064_v17, %v6064_v17  ;;  %v3283_v18 = vmul.f32 %v3008_v63, %v2617_v31  ;;  %v1803_v7 = vmul.f32 0.044715, %v1675_v35  ;;  %v6075_v25 = vadd.f32 %v5827_v23, %v5995_v54  ;;  %v3016_v35 = vpop.permute.xlu0 %3015 }
 0x1f9   : > { %v3361_v58 = vadd.f32 %v3360_v4, %v3229_v24  ;;  %v2309_v41 = vadd.f32 1.0, %v4574_v51  ;;  %4579 = vtanh.f32 %v2054_v52  ;;  %v2491_v56 = vmul.f32 0.5, %v2363_v3 }
 0x1fa   : > { %v1867_v9 = vmul.f32 0.044715, %v1739_v30  ;;  %v1673_v27 = vmul.f32 %v1545_v59, %v6064_v17  ;;  %v4576_v12 = vpop.eup %4575  ;;  %v3436_v34 = vadd.f32 %v3284_v61, %v3283_v18  ;;  %7066 = vst [vmem:[#allocation30_spill] sm:$0xff] %v6075_v25  ;;  %v6078_v55 = vadd.f32 %v5827_v23, %v1386_v47  ;;  %v1133_v47 = vpop.f32.mrf.mxu0 }
 0x1fb   : > { %v2437_v60 = vmul.f32 0.5, %v2309_v41  ;;  %v3362_v31 = vadd.f32 %v3361_v58, %v3230_v37  ;;  %v2619_v24 = vmul.f32 %v2491_v56, %v5726_v21  ;;  %v1931_v4 = vadd.f32 %v1803_v7, %v6042_v39  ;;  %v7067_v37 = vld [vmem:[#allocation36_spill] sm:$0xff] }
 0x1fc   : > { %v1801_v63 = vmul.f32 0.044715, %v1673_v27  ;;  %v1609_v18 = vmul.f32 %v6078_v55, %v6078_v55  ;;  %v6086_v41 = vadd.f32 %v5827_v23, %v4177_v44  ;;  %v6089_v54 = vadd.f32 %v5827_v23, %v4241_v6  ;;  %v6144_v15 = vpop.permute.xlu0 %3078 }
 0x1fd   : > { %v2565_v52 = vmul.f32 %v2437_v60, %v5948_v36  ;;  %v2311_v61 = vadd.f32 1.0, %v4576_v12  ;;  %v3285_v51 = vmul.f32 %v3016_v35, %v2619_v24  ;;  %v2059_v43 = vmul.f32 0.7978846, %v1931_v4  ;;  %v4180_v60 = vpop.f32.mrf.mxu0 }
 0x1fe   : > { %v1995_v21 = vadd.f32 %v1867_v9, %v6045_v0  ;;  %v6094_v36 = vmul.f32 %v1605_v33, %v6038_v62  ;;  %v1737_v30 = vmul.f32 %v1609_v18, %v6078_v55  ;;  %v1548_v44 = vmul.f32 %v6086_v41, %v6086_v41  ;;  %v1389_v9 = vpop.f32.mrf.mxu1 }
 0x1ff   : > { %v3231_v3 = vmul.f32 %v7067_v37, %v2565_v52  ;;  %v6099_v59 = vadd.f32 %v3436_v34, %v3285_v51  ;;  %v6103_v58 = vmul.f32 %v6075_v25, %v6075_v25  ;;  %v1929_v56 = vadd.f32 %v1801_v63, %v6064_v17 }
 0x200   : > { %v6107_v7 = vadd.f32 %v5827_v23, %v1133_v47  ;;  %v1865_v6 = vmul.f32 0.044715, %v1737_v30  ;;  %v1676_v12 = vmul.f32 %v1548_v44, %v6086_v41  ;;  %v1612_v34 = vmul.f32 %v6089_v54, %v6089_v54  ;;  %v6132_v44 = vpop.permute.xlu1 %3074 }
 0x201   : > { %v4578_v27 = vpop.eup %4577  ;;  %v6109_v33 = vadd.f32 %v3362_v31, %v3231_v3  ;;  %v2439_v24 = vmul.f32 0.5, %v2311_v61  ;;  %4581 = vtanh.f32 %v2059_v43  ;;  %v2123_v4 = vmul.f32 0.7978846, %v1995_v21 }
 0x202   : > { %v1546_v63 = vmul.f32 %v6107_v7, %v6107_v7  ;;  %v1993_v52 = vadd.f32 %v1865_v6, %v6078_v55  ;;  %v1804_v35 = vmul.f32 0.044715, %v1676_v12  ;;  %v6118_v18 = vadd.f32 %v5827_v23, %v1389_v9  ;;  %v1146_v6 = vpop.f32.mrf.mxu0 }
 0x203   : > { %v2108_v31 = vmul.f32 0.7978846, %v5880_v29  ;;  %v2312_v47 = vadd.f32 1.0, %v4578_v27  ;;  %v2057_v51 = vmul.f32 0.7978846, %v1929_v56  ;;  %v6123_v3 = vadd.f32 %v5827_v23, %v4180_v60 }
 0x204   : > { %v1674_v37 = vmul.f32 %v1546_v63, %v6107_v7  ;;  %v6127_v61 = vadd.f32 %v5827_v23, %v6010_v20  ;;  %v1740_v43 = vmul.f32 %v1612_v34, %v6089_v54  ;;  %v1610_v21 = vmul.f32 %v6118_v18, %v6118_v18 }
 0x205   : > { %4583 = vtanh.f32 %v2108_v31  ;;  %v2121_v29 = vmul.f32 0.7978846, %v1993_v52  ;;  %v1932_v56 = vadd.f32 %v1804_v35, %v6086_v41  ;;  %v1551_v27 = vmul.f32 %v6123_v3, %v6123_v3  ;;  %v4244_v52 = vpop.f32.mrf.mxu1 }
 0x206   : > { %7068 = vst [vmem:[#allocation29_spill] sm:$0xff] %v6127_v61  ;;  %v4580_v30 = vpop.eup %4579  ;;  %v1802_v9 = vmul.f32 0.044715, %v1674_v37  ;;  %v2567_v20 = vmul.f32 %v2439_v24, %v5932_v1  ;;  %4585 = vtanh.f32 %v2123_v4  ;;  %v1738_v34 = vmul.f32 %v1610_v21, %v6118_v18 }
 0x207   : > { %v2310_v12 = vadd.f32 1.0, %v4580_v30  ;;  %v2440_v60 = vmul.f32 0.5, %v2312_v47  ;;  %4587 = vtanh.f32 %v2057_v51  ;;  %v1679_v31 = vmul.f32 %v1551_v27, %v6123_v3 }
 0x208   : > { %v1930_v63 = vadd.f32 %v1802_v9, %v6107_v7  ;;  %v1868_v35 = vmul.f32 0.044715, %v1740_v43  ;;  %v1866_v37 = vmul.f32 0.044715, %v1738_v34  ;;  %v6142_v46 = vadd.f32 %v5827_v23, %v1146_v6  ;;  %v7069_v43 = vld [vmem:[#allocation38_spill] sm:$0xff] }
 0x209   : > { %v2438_v2 = vmul.f32 0.5, %v2310_v12  ;;  %4589 = vtanh.f32 %v2121_v29  ;;  %v2060_v1 = vmul.f32 0.7978846, %v1932_v56  ;;  %v1807_v4 = vmul.f32 0.044715, %v1679_v31  ;;  %v6155_v29 = vpop.permute.xlu1 %3141  ;;  %v1402_v56 = vpop.f32.mrf.mxu1  ;;  %v7070_v12 = vld [vmem:[#allocation35_spill] sm:$0xff] }
 0x20a   : > { %v2058_v24 = vmul.f32 0.7978846, %v1930_v63  ;;  %v1994_v51 = vadd.f32 %v1866_v37, %v6118_v18  ;;  %v1549_v21 = vmul.f32 %v6142_v46, %v6142_v46  ;;  %v2109_v30 = vmul.f32 0.7978846, %v5962_v5 }
 0x20b   : > { %v2566_v47 = vmul.f32 %v2438_v2, %v6017_v53  ;;  %v3233_v9 = vmul.f32 %v7069_v43, %v2567_v20  ;;  %v2568_v27 = vmul.f32 %v2440_v60, %v5993_v10  ;;  %v1606_v6 = vmul.f32 %v6127_v61, %v6127_v61 }
 0x20c   : > { %4591 = vtanh.f32 %v2058_v24  ;;  %v2122_v53 = vmul.f32 0.7978846, %v1994_v51  ;;  %v1677_v34 = vmul.f32 %v1549_v21, %v6142_v46  ;;  %v1996_v5 = vadd.f32 %v1868_v35, %v6089_v54  ;;  %v4181_v24 = vpop.f32.mrf.mxu0 }
 0x20d   : > { %v3232_v2 = vmul.f32 %v7070_v12, %v2566_v47  ;;  %4593 = vtanh.f32 %v2109_v30  ;;  %v1935_v20 = vadd.f32 %v1807_v4, %v6123_v3  ;;  %v6162_v10 = vadd.f32 %v5827_v23, %v4244_v52  ;;  %v6176_v4 = vpop.permute.xlu0 %3145  ;;  %v7073_v12 = vld [vmem:[#allocation37_spill] sm:$0xff] }
 0x20e   : > { %4595 = vtanh.f32 %v2060_v1  ;;  %v4582_v60 = vpop.eup %4581  ;;  %v1805_v31 = vmul.f32 0.044715, %v1677_v34  ;;  %v6166_v37 = vadd.f32 %v5827_v23, %v1402_v56  ;;  %v6170_v47 = vadd.f32 %v6031_v8, %v5965_v48  ;;  %7072 = vst [vmem:[#allocation31_spill] sm:$0xff] %v6176_v4 }
 0x20f   : > { %v3364_v63 = vadd.f32 %v6109_v33, %v3232_v2  ;;  %4597 = vtanh.f32 %v2122_v53  ;;  %v1863_v35 = vmul.f32 0.044715, %v6051_v57  ;;  %v1861_v1 = vmul.f32 0.044715, %v6094_v36  ;;  %v6185_v57 = vpop.permute.xlu1 %3082 }
 0x210   : > { %7071 = vst [vmem:[#allocation32_spill] sm:$0xff] %v6170_v47  ;;  %v1736_v52 = vmul.f32 %v6103_v58, %v6075_v25  ;;  %v3430_v33 = vrot.slane %v6004_v38, 4  ;;  %v1734_v21 = vmul.f32 %v1606_v6, %v6127_v61  ;;  %v1933_v30 = vadd.f32 %v1805_v31, %v6142_v46 }
 0x211   : > { %v3365_v51 = vadd.f32 %v3364_v63, %v3233_v9  ;;  %v6183_v8 = vadd.f32 %v6048_v42, %v5988_v28  ;;  %v2063_v36 = vmul.f32 0.7978846, %v1935_v20  ;;  %v1615_v58 = vmul.f32 %v6162_v10, %v6162_v10  ;;  %v3020_v4 = vpop.permute.xlu0 %3019 }
 0x212   : > { %v4584_v43 = vpop.eup %4583  ;;  %v6190_v56 = vadd.f32 %v5827_v23, %v4181_v24  ;;  %v3234_v9 = vmul.f32 %v7073_v12, %v2568_v27  ;;  %v1613_v6 = vmul.f32 %v6166_v37, %v6166_v37  ;;  %v2124_v53 = vmul.f32 0.7978846, %v1996_v5  ;;  %v1149_v12 = vpop.f32.mrf.mxu0 }
 0x213   : > { %v2364_v2 = vadd.f32 1.0, %v4584_v43  ;;  %v4586_v34 = vpop.eup %4585  ;;  %v6196_v42 = vadd.f32 %v1863_v35, %v6007_v40  ;;  %v6199_v63 = vadd.f32 %v1861_v1, %v6038_v62  ;;  %v1864_v20 = vmul.f32 0.044715, %v1736_v52 }
 0x214   : > { %v2061_v31 = vmul.f32 0.7978846, %v1933_v30  ;;  %v4588_v48 = vpop.eup %4587  ;;  %v6202_v24 = vadd.f32 %v3430_v33, %v6004_v38  ;;  %v3366_v47 = vadd.f32 %v3365_v51, %v3234_v9  ;;  %v1862_v27 = vmul.f32 0.044715, %v1734_v21  ;;  %v6209_v33 = vpop.permute.xlu1 %3149 }
 0x215   : > { %7074 = vst [vmem:[#allocation34_spill] sm:$0xff] %v6196_v42  ;;  %7075 = vst [vmem:[#allocation33_spill] sm:$0xff] %v6199_v63  ;;  %v2492_v43 = vmul.f32 0.5, %v2364_v2  ;;  %v2315_v28 = vadd.f32 1.0, %v4582_v60  ;;  %4599 = vtanh.f32 %v2063_v36  ;;  %v1743_v5 = vmul.f32 %v1615_v58, %v6162_v10 }
 0x216   : > { %7076 = vst [vmem:[#allocation36_spill] sm:$0xff] %v6202_v24  ;;  %v1552_v35 = vmul.f32 %v6190_v56, %v6190_v56  ;;  %v4590_v1 = vpop.eup %4589  ;;  %v2379_v40 = vadd.f32 1.0, %v4586_v34  ;;  %v1741_v30 = vmul.f32 %v1613_v6, %v6166_v37  ;;  %4601 = vtanh.f32 %v2124_v53 }
 0x217   : > { %v2620_v52 = vmul.f32 %v2492_v43, %v5760_v11  ;;  %v2313_v38 = vadd.f32 1.0, %v4588_v48  ;;  %4603 = vtanh.f32 %v2061_v31  ;;  %v6213_v51 = vadd.f32 %v5827_v23, %v1149_v12  ;;  %v4245_v43 = vpop.f32.mrf.mxu1 }
 0x218   : > { %v1680_v60 = vmul.f32 %v1552_v35, %v6190_v56  ;;  %v6217_v58 = vadd.f32 %v1864_v20, %v6075_v25  ;;  %v3367_v9 = vrot.slane %v3366_v47, 4  ;;  %v2443_v6 = vmul.f32 0.5, %v2315_v28 }
 0x219   : > { %v4592_v21 = vpop.eup %4591  ;;  %v3286_v11 = vmul.f32 %v3020_v4, %v2620_v52  ;;  %v1871_v48 = vmul.f32 0.044715, %v1743_v5  ;;  %v2507_v62 = vmul.f32 0.5, %v2379_v40  ;;  %v1550_v42 = vmul.f32 %v6213_v51, %v6213_v51 }
 0x21a   : > { %7077 = vst [vmem:[#allocation38_spill] sm:$0xff] %v6217_v58  ;;  %v4594_v2 = vpop.eup %4593  ;;  %v2314_v53 = vadd.f32 1.0, %v4592_v21  ;;  %v1808_v34 = vmul.f32 0.044715, %v1680_v60  ;;  %v6223_v20 = vadd.f32 %v1862_v27, %v6127_v61  ;;  %v2441_v24 = vmul.f32 0.5, %v2313_v38  ;;  %v4184_v58 = vpop.f32.mrf.mxu0 }
 0x21b   : > { %v4596_v31 = vpop.eup %4595  ;;  %v3438_v35 = vadd.f32 %v6099_v59, %v3286_v11  ;;  %v2365_v12 = vadd.f32 1.0, %v4594_v2  ;;  %v2377_v4 = vadd.f32 1.0, %v4590_v1  ;;  %v1869_v52 = vmul.f32 0.044715, %v1741_v30  ;;  %v3024_v2 = vpop.permute.xlu1 %3023 }
 0x21c   : > { %v4598_v36 = vpop.eup %4597  ;;  %7078 = vst [vmem:[#allocation35_spill] sm:$0xff] %v6223_v20  ;;  %v3368_v28 = vadd.f32 %v3367_v9, %v3366_v47  ;;  %v6226_v60 = vadd.f32 %v5827_v23, %v4245_v43  ;;  %v2571_v40 = vmul.f32 %v2443_v6, %v6042_v39  ;;  %v2316_v59 = vadd.f32 1.0, %v4596_v31  ;;  %v1405_v6 = vpop.f32.mrf.mxu1 }
 0x21d   : > { %v2378_v21 = vadd.f32 1.0, %v4598_v36  ;;  %v2493_v5 = vmul.f32 0.5, %v2365_v12  ;;  %v2442_v11 = vmul.f32 0.5, %v2314_v53  ;;  %v1936_v25 = vadd.f32 %v1808_v34, %v6190_v56 }
 0x21e   : > { %v2635_v27 = vmul.f32 %v2507_v62, %v6045_v0  ;;  %v6232_v38 = vadd.f32 %v1871_v48, %v6162_v10  ;;  %v1678_v1 = vmul.f32 %v1550_v42, %v6213_v51  ;;  %v2569_v30 = vmul.f32 %v2441_v24, %v6064_v17  ;;  %v7079_v0 = vld [vmem:[#allocation42_spill] sm:$0xff]  ;;  %v1162_v42 = vpop.f32.mrf.mxu0 }
 0x21f   : > { %v2621_v47 = vmul.f32 %v2493_v5, %v5835_v16  ;;  %v2505_v36 = vmul.f32 0.5, %v2377_v4  ;;  %v2506_v9 = vmul.f32 0.5, %v2378_v21  ;;  %v1997_v39 = vadd.f32 %v1869_v52, %v6166_v37 }
 0x220   : > { %v3369_v53 = vrot.slane %v3368_v28, 2  ;;  %v1616_v34 = vmul.f32 %v6226_v60, %v6226_v60  ;;  %v1806_v62 = vmul.f32 0.044715, %v1678_v1  ;;  %v3237_v48 = vmul.f32 %v7079_v0, %v2571_v40 }
 0x221   : > { %v3287_v43 = vmul.f32 %v3024_v2, %v2621_v47  ;;  %v2444_v31 = vmul.f32 0.5, %v2316_v59  ;;  %v2570_v16 = vmul.f32 %v2442_v11, %v6107_v7  ;;  %v2064_v12 = vmul.f32 0.7978846, %v1936_v25  ;;  %v7080_v2 = vld [vmem:[#allocation40_spill] sm:$0xff] }
 0x222   : > { %v4600_v5 = vpop.eup %4599  ;;  %v6243_v17 = vmul.f32 %v6185_v57, %v2635_v27  ;;  %v1934_v4 = vadd.f32 %v1806_v62, %v6213_v51  ;;  %v6249_v52 = vadd.f32 %v5827_v23, %v1405_v6  ;;  %v3235_v47 = vmul.f32 %v7080_v2, %v2569_v30  ;;  %v7081_v6 = vld [vmem:[#allocation39_spill] sm:$0xff]  ;;  %v4185_v30 = vpop.f32.mrf.mxu0 }
 0x223   : > { %v6245_v24 = vadd.f32 %v3438_v35, %v3287_v43  ;;  %v4602_v21 = vpop.eup %4601  ;;  %v2633_v40 = vmul.f32 %v2505_v36, %v6078_v55  ;;  %v2634_v7 = vmul.f32 %v2506_v9, %v6118_v18  ;;  %v2125_v25 = vmul.f32 0.7978846, %v1997_v39 }
 0x224   : > { %v4604_v59 = vpop.eup %4603  ;;  %v3370_v11 = vadd.f32 %v3369_v53, %v3368_v28  ;;  %v1744_v57 = vmul.f32 %v1616_v34, %v6226_v60  ;;  %v2062_v27 = vmul.f32 0.7978846, %v1934_v4  ;;  %v6256_v35 = vadd.f32 %v5827_v23, %v4184_v58  ;;  %v6268_v23 = vld [vmem:[%s6958_s3] ss:$0 sm:$0xff] }
 0x225   : > { %v2572_v1 = vmul.f32 %v2444_v31, %v6086_v41  ;;  %v3236_v43 = vmul.f32 %v7081_v6, %v2570_v16  ;;  %v2319_v62 = vadd.f32 1.0, %v4600_v5  ;;  %4605 = vtanh.f32 %v2064_v12  ;;  %v4248_v16 = vpop.f32.mrf.mxu1  ;;  %v1165_v5 = vpop.f32.mrf.mxu0 }
 0x226   : > { %v2380_v0 = vadd.f32 1.0, %v4602_v21  ;;  %4607 = vtanh.f32 %v2062_v27  ;;  %v1614_v55 = vmul.f32 %v6249_v52, %v6249_v52  ;;  %v1555_v18 = vmul.f32 %v6256_v35, %v6256_v35  ;;  %v7083_v27 = vld [vmem:[#allocation41_spill] sm:$0xff] }
 0x227   : > { %v2317_v28 = vadd.f32 1.0, %v4604_v59  ;;  %v3300_v36 = vmul.f32 %v6144_v15, %v2634_v7  ;;  %4609 = vtanh.f32 %v2125_v25  ;;  %v6271_v41 = vadd.f32 %v6268_v23, %v1162_v42 }
 0x228   : > { %v3299_v58 = vmul.f32 %v6132_v44, %v2633_v40  ;;  %v1683_v9 = vmul.f32 %v1555_v18, %v6256_v35  ;;  %v2110_v39 = vmul.f32 0.7978846, %v6013_v22  ;;  %v6277_v53 = vadd.f32 %v6268_v23, %v4185_v30  ;;  %v1418_v30 = vpop.f32.mrf.mxu1 }
 0x229   : > { %v3373_v34 = vadd.f32 %v3236_v43, %v3235_v47  ;;  %v2447_v15 = vmul.f32 0.5, %v2319_v62  ;;  %v1872_v31 = vmul.f32 0.044715, %v1744_v57  ;;  %v1553_v12 = vmul.f32 %v6271_v41, %v6271_v41 }
 0x22a   : > { %v2508_v4 = vmul.f32 0.5, %v2380_v0  ;;  %v1811_v42 = vmul.f32 0.044715, %v1683_v9  ;;  %4611 = vtanh.f32 %v2110_v39  ;;  %v1556_v44 = vmul.f32 %v6277_v53, %v6277_v53 }
 0x22b   : > { %v2445_v21 = vmul.f32 0.5, %v2317_v28  ;;  %v3457_v2 = vadd.f32 %v3300_v36, %v3299_v58  ;;  %v1742_v22 = vmul.f32 %v1614_v55, %v6249_v52  ;;  %v1681_v40 = vmul.f32 %v1553_v12, %v6271_v41  ;;  %v3087_v58 = vpop.permute.xlu0 %3086 }
 0x22c   : > { %v1939_v47 = vadd.f32 %v1811_v42, %v6256_v35  ;;  %v6287_v7 = vadd.f32 %v6268_v23, %v4248_v16  ;;  %v1684_v25 = vmul.f32 %v1556_v44, %v6277_v53  ;;  %v6291_v59 = vadd.f32 %v6268_v23, %v1165_v5  ;;  %v4249_v5 = vpop.f32.mrf.mxu1 }
 0x22d   : > { %v3371_v57 = vrot.slane %v3370_v11, 1  ;;  %v3238_v6 = vmul.f32 %v7083_v27, %v2572_v1  ;;  %v2575_v43 = vmul.f32 %v2447_v15, %v6123_v3  ;;  %v1809_v62 = vmul.f32 0.044715, %v1681_v40  ;;  %v7086_v40 = vld [vmem:[#allocation44_spill] sm:$0xff] }
 0x22e   : > { %7082 = vst [vmem:[#allocation37_spill] sm:$0xff] %v6287_v7  ;;  %v3374_v0 = vadd.f32 %v3373_v34, %v3237_v48  ;;  %v2636_v55 = vmul.f32 %v2508_v4, %v6089_v54  ;;  %v1812_v18 = vmul.f32 0.044715, %v1684_v25  ;;  %v1554_v28 = vmul.f32 %v6291_v59, %v6291_v59  ;;  %v4188_v34 = vpop.f32.mrf.mxu0 }
 0x22f   : > { %v2573_v36 = vmul.f32 %v2445_v21, %v6142_v46  ;;  %v6300_v9 = vadd.f32 %v1872_v31, %v6226_v60  ;;  %v1870_v39 = vmul.f32 0.044715, %v1742_v22  ;;  %v1937_v1 = vadd.f32 %v1809_v62, %v6271_v41  ;;  %v7085_v46 = vld [vmem:[#allocation46_spill] sm:$0xff] }
 0x230   : > { %v3458_v3 = vadd.f32 %v3457_v2, %v6243_v17  ;;  %v2067_v15 = vmul.f32 0.7978846, %v1939_v47  ;;  %v1619_v48 = vmul.f32 %v6287_v7, %v6287_v7  ;;  %v6307_v54 = vadd.f32 %v6268_v23, %v1418_v30  ;;  %v1178_v62 = vpop.f32.mrf.mxu0 }
 0x231   : > { %v6309_v16 = vadd.f32 %v3371_v57, %v3370_v11  ;;  %v6312_v12 = vmul.f32 %v7085_v46, %v2575_v43  ;;  %v2065_v31 = vmul.f32 0.7978846, %v1937_v1  ;;  %v1682_v4 = vmul.f32 %v1554_v28, %v6291_v59 }
 0x232   : > { %v4606_v42 = vpop.eup %4605  ;;  %v3375_v44 = vadd.f32 %v3374_v0, %v3238_v6  ;;  %v3302_v17 = vmul.f32 %v3087_v58, %v2636_v55  ;;  %v1940_v21 = vadd.f32 %v1812_v18, %v6277_v53  ;;  %v2111_v2 = vmul.f32 0.7978846, %v5884_v14  ;;  %v6324_v0 = vpop.permute.xlu0 %3153 }
 0x233   : > { %7084 = vst [vmem:[#allocation42_spill] sm:$0xff] %v6309_v16  ;;  %v4608_v22 = vpop.eup %4607  ;;  %v3239_v47 = vmul.f32 %v7086_v40, %v2573_v36  ;;  %v1998_v11 = vadd.f32 %v1870_v39, %v6249_v52  ;;  %4613 = vtanh.f32 %v2065_v31  ;;  %v1810_v25 = vmul.f32 0.044715, %v1682_v4  ;;  %v1421_v55 = vpop.f32.mrf.mxu1 }
 0x234   : > { %v4610_v57 = vpop.eup %4609  ;;  %v6319_v27 = vadd.f32 %v3458_v3, %v3302_v17  ;;  %4615 = vtanh.f32 %v2067_v15  ;;  %v1747_v43 = vmul.f32 %v1619_v48, %v6287_v7  ;;  %v1617_v6 = vmul.f32 %v6307_v54, %v6307_v54 }
 0x235   : > { %v2318_v30 = vadd.f32 1.0, %v4608_v22  ;;  %v1938_v14 = vadd.f32 %v1810_v25, %v6291_v59  ;;  %4617 = vtanh.f32 %v2111_v2  ;;  %v6328_v18 = vadd.f32 %v6268_v23, %v4188_v34  ;;  %v3091_v22 = vpop.permute.xlu1 %3090  ;;  %v4252_v25 = vpop.f32.mrf.mxu1 }
 0x236   : > { %v6330_v28 = vadd.f32 %v3375_v44, %v3239_v47  ;;  %v2320_v36 = vadd.f32 1.0, %v4606_v42  ;;  %v2068_v58 = vmul.f32 0.7978846, %v1940_v21  ;;  %v6333_v39 = vadd.f32 %v6268_v23, %v4249_v5  ;;  %v4189_v42 = vpop.f32.mrf.mxu0 }
 0x237   : > { %v4612_v1 = vpop.eup %4611  ;;  %v2381_v3 = vadd.f32 1.0, %v4610_v57  ;;  %v2066_v15 = vmul.f32 0.7978846, %v1938_v14  ;;  %v1559_v48 = vmul.f32 %v6328_v18, %v6328_v18  ;;  %v6338_v46 = vadd.f32 %v6268_v23, %v1178_v62 }
 0x238   : > { %7087 = vst [vmem:[#allocation40_spill] sm:$0xff] %v6333_v39  ;;  %v1875_v31 = vmul.f32 0.044715, %v1747_v43  ;;  %v1745_v34 = vmul.f32 %v1617_v6, %v6307_v54  ;;  %v2366_v4 = vadd.f32 1.0, %v4612_v1  ;;  %v6342_v44 = vadd.f32 %v6268_v23, %v1421_v55  ;;  %v3028_v43 = vpop.permute.xlu0 %3027 }
 0x239   : > { %v2446_v17 = vmul.f32 0.5, %v2318_v30  ;;  %4619 = vtanh.f32 %v2066_v15  ;;  %v1687_v5 = vmul.f32 %v1559_v48, %v6328_v18  ;;  %v1557_v21 = vmul.f32 %v6338_v46, %v6338_v46 }
 0x23a   : > { %7088 = vst [vmem:[#allocation39_spill] sm:$0xff] %v6342_v44  ;;  %v2448_v2 = vmul.f32 0.5, %v2320_v36  ;;  %v2494_v40 = vmul.f32 0.5, %v2366_v4  ;;  %4621 = vtanh.f32 %v2068_v58  ;;  %v1620_v47 = vmul.f32 %v6333_v39, %v6333_v39 }
 0x23b   : > { %v2509_v57 = vmul.f32 0.5, %v2381_v3  ;;  %v1815_v6 = vmul.f32 0.044715, %v1687_v5  ;;  %v1685_v62 = vmul.f32 %v1557_v21, %v6338_v46  ;;  %v6351_v30 = vadd.f32 %v6268_v23, %v4189_v42 }
 0x23c   : > { %v1873_v14 = vmul.f32 0.044715, %v1745_v34  ;;  %v2622_v55 = vmul.f32 %v2494_v40, %v5906_v45  ;;  %v1618_v36 = vmul.f32 %v6342_v44, %v6342_v44  ;;  %v2126_v1 = vmul.f32 0.7978846, %v1998_v11  ;;  %v1434_v45 = vpop.f32.mrf.mxu1 }
 0x23d   : > { %v2574_v58 = vmul.f32 %v2446_v17, %v6213_v51  ;;  %v1943_v15 = vadd.f32 %v1815_v6, %v6328_v18  ;;  %v1813_v48 = vmul.f32 0.044715, %v1685_v62  ;;  %v1560_v3 = vmul.f32 %v6351_v30, %v6351_v30 }
 0x23e   : > { %v2576_v4 = vmul.f32 %v2448_v2, %v6190_v56  ;;  %v3288_v5 = vmul.f32 %v3028_v43, %v2622_v55  ;;  %v1748_v42 = vmul.f32 %v1620_v47, %v6333_v39  ;;  %v6363_v34 = vadd.f32 %v6268_v23, %v4252_v25  ;;  %v6374_v56 = vpop.permute.xlu1 %3157  ;;  %v1181_v55 = vpop.f32.mrf.mxu0 }
 0x23f   : > { %v2637_v21 = vmul.f32 %v2509_v57, %v6166_v37  ;;  %v6367_v11 = vadd.f32 %v1875_v31, %v6287_v7  ;;  %v1941_v51 = vadd.f32 %v1813_v48, %v6338_v46  ;;  %v1688_v17 = vmul.f32 %v1560_v3, %v6351_v30  ;;  %7090 = vst [vmem:[#allocation46_spill] sm:$0xff] %v6374_v56  ;;  %v7091_v37 = vld [vmem:[#allocation43_spill] sm:$0xff]  ;;  %v7092_v3 = vld [vmem:[#allocation45_spill] sm:$0xff] }
 0x240   : > { %7089 = vst [vmem:[#allocation41_spill] sm:$0xff] %v6363_v34  ;;  %v4614_v40 = vpop.eup %4613  ;;  %v6372_v6 = vadd.f32 %v1873_v14, %v6307_v54  ;;  %v3440_v2 = vadd.f32 %v6245_v24, %v3288_v5  ;;  %v1746_v47 = vmul.f32 %v1618_v36, %v6342_v44  ;;  %4623 = vtanh.f32 %v2126_v1  ;;  %v4253_v24 = vpop.f32.mrf.mxu1 }
 0x241   : > { %v4616_v25 = vpop.eup %4615  ;;  %v3240_v57 = vmul.f32 %v7091_v37, %v2574_v58  ;;  %v2071_v31 = vmul.f32 0.7978846, %v1943_v15  ;;  %v2069_v43 = vmul.f32 0.7978846, %v1941_v51  ;;  %v1816_v62 = vmul.f32 0.044715, %v1688_v17 }
 0x242   : > { %v4618_v48 = vpop.eup %4617  ;;  %v3242_v61 = vmul.f32 %v7092_v3, %v2576_v4  ;;  %v1876_v16 = vmul.f32 0.044715, %v1748_v42  ;;  %v1623_v14 = vmul.f32 %v6363_v34, %v6363_v34  ;;  %v6383_v20 = vadd.f32 %v6268_v23, %v1434_v45 }
 0x243   : > { %v3303_v36 = vmul.f32 %v3091_v22, %v2637_v21  ;;  %v2321_v1 = vadd.f32 1.0, %v4614_v40  ;;  %v2367_v5 = vadd.f32 1.0, %v4618_v48  ;;  %4625 = vtanh.f32 %v2069_v43  ;;  %v3032_v22 = vpop.permute.xlu1 %3031 }
 0x244   : > { %v2323_v58 = vadd.f32 1.0, %v4616_v25  ;;  %v1874_v15 = vmul.f32 0.044715, %v1746_v47  ;;  %v1944_v51 = vadd.f32 %v1816_v62, %v6351_v30  ;;  %v6387_v17 = vadd.f32 %v6268_v23, %v1181_v55  ;;  %v1437_v25 = vpop.f32.mrf.mxu1 }
 0x245   : > { %v3377_v4 = vadd.f32 %v6330_v28, %v3240_v57  ;;  %v2495_v42 = vmul.f32 0.5, %v2367_v5  ;;  %4627 = vtanh.f32 %v2071_v31  ;;  %v2127_v37 = vmul.f32 0.7978846, %v6232_v38 }
 0x246   : > { %v4620_v45 = vpop.eup %4619  ;;  %v6392_v3 = vadd.f32 %v1876_v16, %v6333_v39  ;;  %v1751_v21 = vmul.f32 %v1623_v14, %v6363_v34  ;;  %v1621_v40 = vmul.f32 %v6383_v20, %v6383_v20  ;;  %v1558_v47 = vmul.f32 %v6387_v17, %v6387_v17  ;;  %v4192_v14 = vpop.f32.mrf.mxu0 }
 0x247   : > { %v4622_v43 = vpop.eup %4621  ;;  %v6400_v28 = vadd.f32 %v6319_v27, %v3303_v36  ;;  %v2449_v57 = vmul.f32 0.5, %v2321_v1  ;;  %v2322_v38 = vadd.f32 1.0, %v4620_v45  ;;  %v2623_v31 = vmul.f32 %v2495_v42, %v5810_v50  ;;  %v4256_v45 = vpop.f32.mrf.mxu1 }
 0x248   : > { %7093 = vst [vmem:[#allocation44_spill] sm:$0xff] %v6392_v3  ;;  %v2451_v16 = vmul.f32 0.5, %v2323_v58  ;;  %v6404_v62 = vadd.f32 %v1874_v15, %v6342_v44  ;;  %v2072_v55 = vmul.f32 0.7978846, %v1944_v51  ;;  %v1686_v48 = vmul.f32 %v1558_v47, %v6387_v17 }
 0x249   : > { %v3378_v5 = vadd.f32 %v3377_v4, %v6312_v12  ;;  %v2450_v39 = vmul.f32 0.5, %v2322_v38  ;;  %v3289_v3 = vmul.f32 %v3032_v22, %v2623_v31  ;;  %4629 = vtanh.f32 %v2127_v37  ;;  %v1194_v37 = vpop.f32.mrf.mxu0 }
 0x24a   : > { %v2324_v7 = vadd.f32 1.0, %v4622_v43  ;;  %v1879_v27 = vmul.f32 0.044715, %v1751_v21  ;;  %v1749_v36 = vmul.f32 %v1621_v40, %v6383_v20  ;;  %v1814_v1 = vmul.f32 0.044715, %v1686_v48  ;;  %v7095_v40 = vld [vmem:[#allocation48_spill] sm:$0xff] }
 0x24b   : > { %v2577_v50 = vmul.f32 %v2449_v57, %v6271_v41  ;;  %v6410_v58 = vadd.f32 %v3440_v2, %v3289_v3  ;;  %v6413_v15 = vadd.f32 %v6268_v23, %v4253_v24  ;;  %v2112_v51 = vmul.f32 0.7978846, %v5979_v13  ;;  %v7096_v57 = vld [vmem:[#allocation50_spill] sm:$0xff]  ;;  %v7097_v48 = vld [vmem:[#allocation47_spill] sm:$0xff] }
 0x24c   : > { %v2579_v12 = vmul.f32 %v2451_v16, %v6256_v35  ;;  %4631 = vtanh.f32 %v2072_v55  ;;  %v1942_v4 = vadd.f32 %v1814_v1, %v6387_v17  ;;  %v6419_v42 = vadd.f32 %v6268_v23, %v4192_v14 }
 0x24d   : > { %v4624_v22 = vpop.eup %4623  ;;  %v3379_v21 = vadd.f32 %v3378_v5, %v3242_v61  ;;  %v2578_v41 = vmul.f32 %v2450_v39, %v6291_v59  ;;  %4633 = vtanh.f32 %v2112_v51  ;;  %v6423_v2 = vadd.f32 %v6268_v23, %v4256_v45  ;;  %v1450_v39 = vpop.f32.mrf.mxu1 }
 0x24e   : > { %v2452_v24 = vmul.f32 0.5, %v2324_v7  ;;  %v6426_v13 = vadd.f32 %v1879_v27, %v6363_v34  ;;  %v2070_v35 = vmul.f32 0.7978846, %v1942_v4  ;;  %v1563_v3 = vmul.f32 %v6419_v42, %v6419_v42 }
 0x24f   : > { %v3243_v47 = vmul.f32 %v7095_v40, %v2577_v50  ;;  %v1624_v43 = vmul.f32 %v6413_v15, %v6413_v15  ;;  %v1627_v61 = vmul.f32 %v6423_v2, %v6423_v2  ;;  %v6436_v59 = vadd.f32 %v6268_v23, %v1194_v37  ;;  %v4193_v40 = vpop.f32.mrf.mxu0 }
 0x250   : > { %7094 = vst [vmem:[#allocation43_spill] sm:$0xff] %v6426_v13  ;;  %v4626_v7 = vpop.eup %4625  ;;  %v3245_v38 = vmul.f32 %v7096_v57, %v2579_v12  ;;  %v6439_v31 = vmul.f32 0.044715, %v1749_v36  ;;  %4635 = vtanh.f32 %v2070_v35  ;;  %v1691_v16 = vmul.f32 %v1563_v3, %v6419_v42 }
 0x251   : > { %v3380_v55 = vadd.f32 %v3379_v21, %v3243_v47  ;;  %v3244_v14 = vmul.f32 %v7097_v48, %v2578_v41  ;;  %v2382_v5 = vadd.f32 1.0, %v4624_v22  ;;  %v1755_v27 = vmul.f32 %v1627_v61, %v6423_v2  ;;  %v7098_v48 = vld [vmem:[#allocation49_spill] sm:$0xff] }
 0x252   : > { %v4628_v1 = vpop.eup %4627  ;;  %v2325_v45 = vadd.f32 1.0, %v4626_v7  ;;  %v1819_v50 = vmul.f32 0.044715, %v1691_v16  ;;  %v1561_v51 = vmul.f32 %v6436_v59, %v6436_v59  ;;  %v6447_v4 = vadd.f32 %v6268_v23, %v1450_v39 }
 0x253   : > { %v2580_v36 = vmul.f32 %v2452_v24, %v6277_v53  ;;  %v1752_v12 = vmul.f32 %v1624_v43, %v6413_v15  ;;  %v6452_v37 = vadd.f32 %v6268_v23, %v1437_v25  ;;  %v1883_v21 = vmul.f32 0.044715, %v1755_v27  ;;  %v4257_v24 = vpop.f32.mrf.mxu1 }
 0x254   : > { %v1947_v22 = vadd.f32 %v1819_v50, %v6419_v42  ;;  %v1689_v41 = vmul.f32 %v1561_v51, %v6436_v59  ;;  %v1625_v35 = vmul.f32 %v6447_v4, %v6447_v4  ;;  %v2113_v3 = vmul.f32 0.7978846, %v6023_v32  ;;  %v6462_v50 = vpop.permute.xlu0 %3094 }
 0x255   : > { %v3381_v47 = vadd.f32 %v3380_v55, %v3244_v14  ;;  %v2510_v61 = vmul.f32 0.5, %v2382_v5  ;;  %v2327_v39 = vadd.f32 1.0, %v4628_v1  ;;  %v2011_v53 = vadd.f32 %v1883_v21, %v6423_v2 }
 0x256   : > { %v4630_v43 = vpop.eup %4629  ;;  %v2453_v25 = vmul.f32 0.5, %v2325_v45  ;;  %v2075_v7 = vmul.f32 0.7978846, %v1947_v22  ;;  %v1817_v57 = vmul.f32 0.044715, %v1689_v41  ;;  %v1753_v16 = vmul.f32 %v1625_v35, %v6447_v4  ;;  %v1197_v45 = vpop.f32.mrf.mxu0 }
 0x257   : > { %v3246_v27 = vmul.f32 %v7098_v48, %v2580_v36  ;;  %v2139_v51 = vmul.f32 0.7978846, %v2011_v53  ;;  %4637 = vtanh.f32 %v2113_v3  ;;  %v6465_v32 = vadd.f32 %v6268_v23, %v4193_v40  ;;  %v1453_v3 = vpop.f32.mrf.mxu1 }
 0x258   : > { %v6467_v55 = vmul.f32 0.044715, %v1752_v12  ;;  %v1945_v14 = vadd.f32 %v1817_v57, %v6436_v59  ;;  %v1881_v5 = vmul.f32 0.044715, %v1753_v16  ;;  %v2128_v1 = vmul.f32 0.7978846, %v6300_v9 }
 0x259   : > { %v4632_v21 = vpop.eup %4631  ;;  %v3382_v22 = vadd.f32 %v3381_v47, %v3245_v38  ;;  %v6472_v41 = vmul.f32 %v2510_v61, %v6249_v52  ;;  %v1564_v36 = vmul.f32 %v6465_v32, %v6465_v32  ;;  %v6477_v35 = vadd.f32 %v6268_v23, %v4257_v24  ;;  %v6484_v47 = vpop.permute.xlu1 %3098 }
 0x25a   : > { %v4634_v12 = vpop.eup %4633  ;;  %v2455_v40 = vmul.f32 0.5, %v2327_v39  ;;  %v2581_v53 = vmul.f32 %v2453_v25, %v6338_v46  ;;  %4639 = vtanh.f32 %v2075_v7  ;;  %v2073_v57 = vmul.f32 0.7978846, %v1945_v14  ;;  %v6492_v25 = vpop.permute.xlu0 %3161 }
 0x25b   : > { %v2368_v9 = vadd.f32 1.0, %v4634_v12  ;;  %4641 = vtanh.f32 %v2139_v51  ;;  %v2009_v38 = vadd.f32 %v1881_v5, %v6447_v4  ;;  %v6482_v52 = vadd.f32 %v6268_v23, %v1197_v45  ;;  %7099 = vst [vmem:[#allocation45_spill] sm:$0xff] %v6492_v25  ;;  %v4196_v51 = vpop.f32.mrf.mxu0  ;;  %v7100_v45 = vld [vmem:[#allocation52_spill] sm:$0xff] }
 0x25c   : > { %v6486_v61 = vadd.f32 1.0, %v4630_v43  ;;  %4643 = vtanh.f32 %v2128_v1  ;;  %v1692_v24 = vmul.f32 %v1564_v36, %v6465_v32  ;;  %v6490_v39 = vadd.f32 %v6268_v23, %v1453_v3 }
 0x25d   : > { %v4636_v46 = vpop.eup %4635  ;;  %v2328_v7 = vadd.f32 1.0, %v4632_v21  ;;  %4645 = vtanh.f32 %v2073_v57  ;;  %v1628_v16 = vmul.f32 %v6477_v35, %v6477_v35  ;;  %v1562_v48 = vmul.f32 %v6482_v52, %v6482_v52  ;;  %v4260_v57 = vpop.f32.mrf.mxu1 }
 0x25e   : > { %v2583_v43 = vmul.f32 %v2455_v40, %v6328_v18  ;;  %v3383_v14 = vadd.f32 %v3382_v22, %v3246_v27  ;;  %v2326_v5 = vadd.f32 1.0, %v4636_v46  ;;  %v1626_v1 = vmul.f32 %v6490_v39, %v6490_v39  ;;  %v1210_v56 = vpop.f32.mrf.mxu0 }
 0x25f   : > { %v3247_v36 = vmul.f32 %v7100_v45, %v2581_v53  ;;  %v2496_v3 = vmul.f32 0.5, %v2368_v9  ;;  %v2137_v12 = vmul.f32 0.7978846, %v2009_v38  ;;  %v1690_v21 = vmul.f32 %v1562_v48, %v6482_v52  ;;  %v6510_v9 = vpop.permute.xlu1 %3165 }
 0x260   : > { %v2454_v34 = vmul.f32 0.5, %v2326_v5  ;;  %v1820_v13 = vmul.f32 0.044715, %v1692_v24  ;;  %v1754_v63 = vmul.f32 %v1626_v1, %v6490_v39  ;;  %v6505_v25 = vadd.f32 %v6268_v23, %v4196_v51  ;;  %7101 = vst [vmem:[#allocation48_spill] sm:$0xff] %v6510_v9  ;;  %v3036_v51 = vpop.permute.xlu0 %3035 }
 0x261   : > { %v2456_v18 = vmul.f32 0.5, %v2328_v7  ;;  %v1756_v27 = vmul.f32 %v1628_v16, %v6477_v35  ;;  %v1818_v22 = vmul.f32 0.044715, %v1690_v21  ;;  %v2129_v40 = vmul.f32 0.7978846, %v6372_v6  ;;  %v7102_v6 = vld [vmem:[#allocation51_spill] sm:$0xff] }
 0x262   : > { %v2582_v53 = vmul.f32 %v2454_v34, %v6387_v17  ;;  %v1882_v38 = vmul.f32 0.044715, %v1754_v63  ;;  %v1567_v46 = vmul.f32 %v6505_v25, %v6505_v25  ;;  %v6515_v24 = vadd.f32 %v6268_v23, %v4260_v57 }
 0x263   : > { %v3384_v48 = vadd.f32 %v3383_v14, %v3247_v36  ;;  %v2624_v7 = vmul.f32 %v2496_v3, %v5895_v49  ;;  %4647 = vtanh.f32 %v2137_v12  ;;  %v1946_v16 = vadd.f32 %v1818_v22, %v6482_v52 }
 0x264   : > { %v4638_v5 = vpop.eup %4637  ;;  %v3248_v1 = vmul.f32 %v7102_v6, %v2582_v53  ;;  %v1948_v34 = vadd.f32 %v1820_v13, %v6465_v32  ;;  %v2010_v63 = vadd.f32 %v1882_v38, %v6490_v39  ;;  %v1695_v17 = vmul.f32 %v1567_v46, %v6505_v25  ;;  %v7103_v46 = vld [vmem:[#allocation54_spill] sm:$0xff] }
 0x265   : > { %v2369_v45 = vadd.f32 1.0, %v4638_v5  ;;  %v1884_v21 = vmul.f32 0.044715, %v1756_v27  ;;  %v2074_v57 = vmul.f32 0.7978846, %v1946_v16  ;;  %v1631_v14 = vmul.f32 %v6515_v24, %v6515_v24  ;;  %v3040_v5 = vpop.permute.xlu1 %3039 }
 0x266   : > { %v1622_v49 = vmul.f32 %v6452_v37, %v6452_v37  ;;  %v3290_v36 = vmul.f32 %v3036_v51, %v2624_v7  ;;  %v2138_v3 = vmul.f32 0.7978846, %v2010_v63  ;;  %4649 = vtanh.f32 %v2129_v40 }
 0x267   : > { %v4640_v12 = vpop.eup %4639  ;;  %v3304_v13 = vmul.f32 %v6462_v50, %v6472_v41  ;;  %v3385_v22 = vadd.f32 %v3384_v48, %v3248_v1  ;;  %v2497_v53 = vmul.f32 0.5, %v2369_v45  ;;  %4651 = vtanh.f32 %v2074_v57  ;;  %v1466_v57 = vpop.f32.mrf.mxu1 }
 0x268   : > { %v4642_v38 = vpop.eup %4641  ;;  %v3249_v27 = vmul.f32 %v7103_v46, %v2583_v43  ;;  %v2584_v16 = vmul.f32 %v2456_v18, %v6351_v30  ;;  %v2076_v6 = vmul.f32 0.7978846, %v1948_v34  ;;  %v1823_v44 = vmul.f32 0.044715, %v1695_v17 }
 0x269   : > { %v4644_v9 = vpop.eup %4643  ;;  %v2625_v51 = vmul.f32 %v2497_v53, %v5940_v26  ;;  %v2012_v40 = vadd.f32 %v1884_v21, %v6477_v35  ;;  %4653 = vtanh.f32 %v2138_v3  ;;  %v1759_v50 = vmul.f32 %v1631_v14, %v6515_v24  ;;  %v7104_v26 = vld [vmem:[#allocation53_spill] sm:$0xff] }
 0x26a   : > { %v4646_v41 = vpop.eup %4645  ;;  %v2511_v48 = vmul.f32 0.5, %v6486_v61  ;;  %v1750_v7 = vmul.f32 %v1622_v49, %v6452_v37  ;;  %v3442_v43 = vadd.f32 %v6410_v58, %v3290_v36  ;;  %v2331_v30 = vadd.f32 1.0, %v4640_v12 }
 0x26b   : > { %v3386_v18 = vadd.f32 %v3385_v22, %v3249_v27  ;;  %v2395_v1 = vadd.f32 1.0, %v4642_v38  ;;  %v3291_v34 = vmul.f32 %v3040_v5, %v2625_v51  ;;  %v6538_v63 = vadd.f32 %v6268_v23, %v1210_v56  ;;  %v4197_v51 = vpop.f32.mrf.mxu0 }
 0x26c   : > { %v3250_v17 = vmul.f32 %v7104_v26, %v2584_v16  ;;  %v2384_v45 = vadd.f32 1.0, %v4644_v9  ;;  %4655 = vtanh.f32 %v2076_v6  ;;  %v1951_v21 = vadd.f32 %v1823_v44, %v6505_v25 }
 0x26d   : > { %v2329_v14 = vadd.f32 1.0, %v4646_v41  ;;  %v6542_v61 = vadd.f32 %v3442_v43, %v3291_v34  ;;  %v2140_v49 = vmul.f32 0.7978846, %v2012_v40  ;;  %v1887_v3 = vmul.f32 0.044715, %v1759_v50  ;;  %v4261_v34 = vpop.f32.mrf.mxu1 }
 0x26e   : > { %v6546_v58 = vadd.f32 %v6439_v31, %v6383_v20  ;;  %v2639_v36 = vmul.f32 %v2511_v48, %v6162_v10  ;;  %v1878_v56 = vmul.f32 0.044715, %v1750_v7  ;;  %v2459_v12 = vmul.f32 0.5, %v2331_v30 }
 0x26f   : > { %v3387_v22 = vadd.f32 %v3386_v18, %v3250_v17  ;;  %v2523_v53 = vmul.f32 0.5, %v2395_v1  ;;  %v1565_v9 = vmul.f32 %v6538_v63, %v6538_v63  ;;  %v6552_v44 = vadd.f32 %v6268_v23, %v1466_v57 }
 0x270   : > { %v4648_v38 = vpop.eup %4647  ;;  %v3461_v46 = vadd.f32 %v6400_v28, %v3304_v13  ;;  %v6557_v27 = vadd.f32 %v6467_v55, %v6413_v15  ;;  %v2512_v31 = vmul.f32 0.5, %v2384_v45  ;;  %v2079_v16 = vmul.f32 0.7978846, %v1951_v21 }
 0x271   : > { %v2457_v10 = vmul.f32 0.5, %v2329_v14  ;;  %4657 = vtanh.f32 %v2140_v49  ;;  %v2015_v5 = vadd.f32 %v1887_v3, %v6515_v24  ;;  %v1693_v6 = vmul.f32 %v1565_v9, %v6538_v63 }
 0x272   : > { %v3305_v40 = vmul.f32 %v6484_v47, %v2639_v36  ;;  %v6563_v50 = vadd.f32 %v1878_v56, %v6452_v37  ;;  %v2587_v28 = vmul.f32 %v2459_v12, %v6419_v42  ;;  %v1629_v55 = vmul.f32 %v6552_v44, %v6552_v44  ;;  %v3103_v12 = vpop.permute.xlu0 %3102 }
 0x273   : > { %v4650_v13 = vpop.eup %4649  ;;  %v3388_v41 = vrot.slane %v3387_v22, 4  ;;  %v2651_v48 = vmul.f32 %v2523_v53, %v6423_v2  ;;  %v2393_v7 = vadd.f32 1.0, %v4648_v38  ;;  %v1821_v43 = vmul.f32 0.044715, %v1693_v6  ;;  %v7105_v2 = vld [vmem:[#allocation58_spill] sm:$0xff] }
 0x274   : > { %v4652_v30 = vpop.eup %4651  ;;  %v2640_v18 = vmul.f32 %v2512_v31, %v6226_v60  ;;  %4659 = vtanh.f32 %v2079_v16  ;;  %v1757_v47 = vmul.f32 %v1629_v55, %v6552_v44  ;;  %v6572_v1 = vadd.f32 %v6268_v23, %v4197_v51  ;;  %v1469_v16 = vpop.f32.mrf.mxu1 }
 0x275   : > { %v3462_v42 = vadd.f32 %v3461_v46, %v3305_v40  ;;  %v2585_v26 = vmul.f32 %v2457_v10, %v6436_v59  ;;  %v2143_v17 = vmul.f32 0.7978846, %v2015_v5  ;;  %v1949_v45 = vadd.f32 %v1821_v43, %v6538_v63  ;;  %v1213_v59 = vpop.f32.mrf.mxu0  ;;  %v7106_v5 = vld [vmem:[#allocation56_spill] sm:$0xff] }
 0x276   : > { %v4654_v21 = vpop.eup %4653  ;;  %v6577_v57 = vmul.f32 %v7105_v2, %v2587_v28  ;;  %v2330_v14 = vadd.f32 1.0, %v4652_v30  ;;  %v2385_v49 = vadd.f32 1.0, %v4650_v13  ;;  %v1885_v60 = vmul.f32 0.044715, %v1757_v47 }
 0x277   : > { %v6579_v3 = vadd.f32 %v3388_v41, %v3387_v22  ;;  %v6582_v36 = vmul.f32 %v6209_v33, %v2651_v48  ;;  %v2521_v56 = vmul.f32 0.5, %v2393_v7  ;;  %v2114_v53 = vmul.f32 0.7978846, %v6183_v8  ;;  %v4200_v2 = vpop.f32.mrf.mxu0 }
 0x278   : > { %v3306_v9 = vmul.f32 %v3103_v12, %v2640_v18  ;;  %v2077_v38 = vmul.f32 0.7978846, %v1949_v45  ;;  %v2013_v46 = vadd.f32 %v1885_v60, %v6552_v44  ;;  %v1568_v31 = vmul.f32 %v6572_v1, %v6572_v1  ;;  %v6613_v60 = vpop.permute.xlu0 %3169 }
 0x279   : > { %v4656_v10 = vpop.eup %4655  ;;  %v6589_v22 = vmul.f32 %v7106_v5, %v2585_v26  ;;  %v2394_v6 = vadd.f32 1.0, %v4654_v21  ;;  %4661 = vtanh.f32 %v2143_v17  ;;  %v6592_v33 = vadd.f32 %v6268_v23, %v4261_v34 }
 0x27a   : > { %v2458_v51 = vmul.f32 0.5, %v2330_v14  ;;  %v2513_v8 = vmul.f32 0.5, %v2385_v49  ;;  %v1696_v40 = vmul.f32 %v1568_v31, %v6572_v1  ;;  %v6596_v28 = vadd.f32 %v6268_v23, %v1213_v59  ;;  %v4264_v14 = vpop.f32.mrf.mxu1 }
 0x27b   : > { %v2141_v55 = vmul.f32 0.7978846, %v2013_v46  ;;  %4663 = vtanh.f32 %v2114_v53  ;;  %v1632_v13 = vmul.f32 %v6592_v33, %v6592_v33  ;;  %v6601_v41 = vadd.f32 %v6268_v23, %v1469_v16  ;;  %v3107_v16 = vpop.permute.xlu1 %3106 }
 0x27c   : > { %v2649_v48 = vmul.f32 %v2521_v56, %v6447_v4  ;;  %4665 = vtanh.f32 %v2077_v38  ;;  %v1824_v7 = vmul.f32 0.044715, %v1696_v40  ;;  %v1566_v43 = vmul.f32 %v6596_v28, %v6596_v28 }
 0x27d   : > { %v2332_v30 = vadd.f32 1.0, %v4656_v10  ;;  %v2522_v18 = vmul.f32 0.5, %v2394_v6  ;;  %v1760_v47 = vmul.f32 %v1632_v13, %v6592_v33  ;;  %v1630_v34 = vmul.f32 %v6601_v41, %v6601_v41 }
 0x27e   : > { %v4658_v26 = vpop.eup %4657  ;;  %v3463_v17 = vadd.f32 %v3462_v42, %v3306_v9  ;;  %v2641_v45 = vmul.f32 %v2513_v8, %v6307_v54  ;;  %v1952_v21 = vadd.f32 %v1824_v7, %v6572_v1  ;;  %v1694_v4 = vmul.f32 %v1566_v43, %v6596_v28  ;;  %v7108_v43 = vld [vmem:[#allocation31_spill] sm:$0xff] }
 0x27f   : > { %v2586_v49 = vmul.f32 %v2458_v51, %v6482_v52  ;;  %4667 = vtanh.f32 %v2141_v55  ;;  %v1888_v56 = vmul.f32 0.044715, %v1760_v47  ;;  %v2115_v12 = vmul.f32 0.7978846, %v6020_v19  ;;  %v1226_v19 = vpop.f32.mrf.mxu0  ;;  %v1482_v51 = vpop.f32.mrf.mxu1 }
 0x280   : > { %v3315_v53 = vmul.f32 %v6155_v29, %v2649_v48  ;;  %v2080_v59 = vmul.f32 0.7978846, %v1952_v21  ;;  %v1822_v42 = vmul.f32 0.044715, %v1694_v4  ;;  %v1758_v54 = vmul.f32 %v1630_v34, %v6601_v41  ;;  %v7107_v29 = vld [vmem:[#allocation55_spill] sm:$0xff] }
 0x281   : > { %v4660_v9 = vpop.eup %4659  ;;  %v2460_v38 = vmul.f32 0.5, %v2332_v30  ;;  %v2396_v46 = vadd.f32 1.0, %v4658_v26  ;;  %v2650_v31 = vmul.f32 %v2522_v18, %v6490_v39  ;;  %v2016_v52 = vadd.f32 %v1888_v56, %v6592_v33  ;;  %v6628_v18 = vpop.permute.xlu0 %3043 }
 0x282   : > { %v3307_v10 = vmul.f32 %v3107_v16, %v2641_v45  ;;  %4669 = vtanh.f32 %v2080_v59  ;;  %v1950_v5 = vadd.f32 %v1822_v42, %v6596_v28  ;;  %v1886_v6 = vmul.f32 0.044715, %v1758_v54 }
 0x283   : > { %v3252_v8 = vmul.f32 %v7107_v29, %v2586_v49  ;;  %v2144_v40 = vmul.f32 0.7978846, %v2016_v52  ;;  %4671 = vtanh.f32 %v2115_v12  ;;  %v2130_v55 = vmul.f32 0.7978846, %v6404_v62 }
 0x284   : > { %v2335_v13 = vadd.f32 1.0, %v4660_v9  ;;  %v2078_v48 = vmul.f32 0.7978846, %v1950_v5  ;;  %v2014_v39 = vadd.f32 %v1886_v6, %v6601_v41  ;;  %v6625_v7 = vadd.f32 %v6268_v23, %v4200_v2  ;;  %v4201_v5 = vpop.f32.mrf.mxu0  ;;  %v7109_v6 = vld [vmem:[#allocation57_spill] sm:$0xff] }
 0x285   : > { %v3316_v30 = vmul.f32 %v7108_v43, %v2650_v31  ;;  %4673 = vtanh.f32 %v2144_v40  ;;  %v6631_v47 = vadd.f32 %v6268_v23, %v1226_v19  ;;  %v6634_v34 = vadd.f32 %v6268_v23, %v1482_v51 }
 0x286   : > { %v4662_v26 = vpop.eup %4661  ;;  %v2588_v62 = vmul.f32 %v2460_v38, %v6465_v32  ;;  %4675 = vtanh.f32 %v2078_v48  ;;  %v2142_v45 = vmul.f32 0.7978846, %v2014_v39  ;;  %v1571_v21 = vmul.f32 %v6625_v7, %v6625_v7 }
 0x287   : > { %v2524_v4 = vmul.f32 0.5, %v2396_v46  ;;  %v3394_v2 = vadd.f32 %v3252_v8, %v6589_v22  ;;  %4677 = vtanh.f32 %v2130_v55  ;;  %v1569_v49 = vmul.f32 %v6631_v47, %v6631_v47 }
 0x288   : > { %v4664_v56 = vpop.eup %4663  ;;  %v2463_v12 = vmul.f32 0.5, %v2335_v13  ;;  %4679 = vtanh.f32 %v2142_v45  ;;  %v1699_v59 = vmul.f32 %v1571_v21, %v6625_v7  ;;  %v1633_v32 = vmul.f32 %v6634_v34, %v6634_v34  ;;  %v1229_v21 = vpop.f32.mrf.mxu0 }
 0x289   : > { %v4666_v42 = vpop.eup %4665  ;;  %v3478_v54 = vadd.f32 %v3316_v30, %v3315_v53  ;;  %v6645_v9 = vadd.f32 %v3463_v17, %v3307_v10  ;;  %v2399_v38 = vadd.f32 1.0, %v4662_v26  ;;  %v1697_v46 = vmul.f32 %v1569_v49, %v6631_v47  ;;  %v6656_v17 = vpop.permute.xlu0 %3110 }
 0x28a   : > { %v1827_v22 = vmul.f32 0.044715, %v1699_v59  ;;  %v6649_v31 = vadd.f32 %v6268_v23, %v4264_v14  ;;  %v1761_v16 = vmul.f32 %v1633_v32, %v6634_v34  ;;  %v2131_v52 = vmul.f32 0.7978846, %v6367_v11 }
 0x28b   : > { %v3254_v19 = vmul.f32 %v7109_v6, %v2588_v62  ;;  %v2652_v51 = vmul.f32 %v2524_v4, %v6477_v35  ;;  %v3395_v53 = vadd.f32 %v3394_v2, %v6577_v57  ;;  %v1825_v10 = vmul.f32 0.044715, %v1697_v46 }
 0x28c   : > { %v4668_v29 = vpop.eup %4667  ;;  %v2591_v8 = vmul.f32 %v2463_v12, %v6505_v25  ;;  %v2333_v40 = vadd.f32 1.0, %v4666_v42  ;;  %v2370_v14 = vadd.f32 1.0, %v4664_v56  ;;  %v1889_v55 = vmul.f32 0.044715, %v1761_v16  ;;  %v4265_v25 = vpop.f32.mrf.mxu1 }
 0x28d   : > { %v3479_v13 = vadd.f32 %v3478_v54, %v6582_v36  ;;  %v1955_v11 = vadd.f32 %v1827_v22, %v6625_v7  ;;  %v1953_v48 = vadd.f32 %v1825_v10, %v6631_v47  ;;  %v6663_v39 = vadd.f32 %v6268_v23, %v4201_v5  ;;  %v7110_v23 = vld [vmem:[#allocation62_spill] sm:$0xff]  ;;  %v6678_v42 = vpop.permute.xlu0 %3177  ;;  %v6684_v54 = vld [vmem:[%s6958_s3] ss:$0 sm:$0xff] }
 0x28e   : > { %v2527_v35 = vmul.f32 0.5, %v2399_v38  ;;  %v1635_v57 = vmul.f32 %v6649_v31, %v6649_v31  ;;  %v2017_v43 = vadd.f32 %v1889_v55, %v6634_v34  ;;  %4681 = vtanh.f32 %v2131_v52  ;;  %v1485_v10 = vpop.f32.mrf.mxu1 }
 0x28f   : > { %v4670_v30 = vpop.eup %4669  ;;  %v3318_v26 = vmul.f32 %v6324_v0, %v2652_v51  ;;  %v2397_v62 = vadd.f32 1.0, %v4668_v29  ;;  %v2081_v36 = vmul.f32 0.7978846, %v1953_v48  ;;  %v1572_v45 = vmul.f32 %v6663_v39, %v6663_v39 }
 0x290   : > { %v4672_v4 = vpop.eup %4671  ;;  %v6672_v2 = vmul.f32 %v7110_v23, %v2591_v8  ;;  %v2461_v49 = vmul.f32 0.5, %v2333_v40  ;;  %v6674_v56 = vadd.f32 %v3395_v53, %v3254_v19  ;;  %v2498_v12 = vmul.f32 0.5, %v2370_v14  ;;  %v6695_v40 = vpop.permute.xlu1 %3173  ;;  %v7111_v14 = vld [vmem:[#allocation25_spill] sm:$0xff] }
 0x291   : > { %v6676_v59 = vadd.f32 %v3479_v13, %v3318_v26  ;;  %v2083_v32 = vmul.f32 0.7978846, %v1955_v11  ;;  %v1700_v0 = vmul.f32 %v1572_v45, %v6663_v39  ;;  %v6687_v38 = vadd.f32 %v6684_v54, %v4265_v25  ;;  %v6706_v45 = vpop.permute.xlu0 %3051 }
 0x292   : > { %v4674_v46 = vpop.eup %4673  ;;  %v2655_v22 = vmul.f32 %v2527_v35, %v6515_v24  ;;  %v1763_v16 = vmul.f32 %v1635_v57, %v6649_v31  ;;  %v2145_v52 = vmul.f32 0.7978846, %v2017_v43  ;;  %v6692_v5 = vadd.f32 %v6684_v54, %v1229_v21  ;;  %v7112_v21 = vld [vmem:[#allocation48_spill] sm:$0xff] }
 0x293   : > { %v4676_v6 = vpop.eup %4675  ;;  %v2525_v19 = vmul.f32 0.5, %v2397_v62  ;;  %v2336_v51 = vadd.f32 1.0, %v4670_v30  ;;  %v2371_v53 = vadd.f32 1.0, %v4672_v4  ;;  %4683 = vtanh.f32 %v2081_v36 }
 0x294   : > { %v4678_v29 = vpop.eup %4677  ;;  %v2589_v8 = vmul.f32 %v2461_v49, %v6538_v63  ;;  %v2626_v55 = vmul.f32 %v2498_v12, %v7111_v14  ;;  %v2334_v24 = vadd.f32 1.0, %v4676_v6  ;;  %v1570_v13 = vmul.f32 %v6692_v5, %v6692_v5 }
 0x295   : > { %v4680_v11 = vpop.eup %4679  ;;  %v2386_v48 = vadd.f32 1.0, %v4678_v29  ;;  %4685 = vtanh.f32 %v2083_v32  ;;  %v1828_v35 = vmul.f32 0.044715, %v1700_v0  ;;  %v1636_v57 = vmul.f32 %v6687_v38, %v6687_v38  ;;  %v7113_v32 = vld [vmem:[#allocation60_spill] sm:$0xff] }
 0x296   : > { %v2398_v43 = vadd.f32 1.0, %v4680_v11  ;;  %v1891_v25 = vmul.f32 0.044715, %v1763_v16  ;;  %4687 = vtanh.f32 %v2145_v52  ;;  %v6703_v63 = vadd.f32 %v6684_v54, %v1485_v10  ;;  %v7114_v10 = vld [vmem:[#allocation46_spill] sm:$0xff] }
 0x297   : > { %v2653_v30 = vmul.f32 %v2525_v19, %v6552_v44  ;;  %v2464_v26 = vmul.f32 0.5, %v2336_v51  ;;  %v2400_v62 = vadd.f32 1.0, %v4674_v46  ;;  %v2499_v36 = vmul.f32 0.5, %v2371_v53  ;;  %v3048_v46 = vpop.permute.xlu1 %3047 }
 0x298   : > { %v6709_v4 = vmul.f32 %v7112_v21, %v2655_v22  ;;  %v2462_v23 = vmul.f32 0.5, %v2334_v24  ;;  %v2514_v49 = vmul.f32 0.5, %v2386_v48  ;;  %v1698_v12 = vmul.f32 %v1570_v13, %v6692_v5  ;;  %v7115_v24 = vld [vmem:[#allocation24_spill] sm:$0xff]  ;;  %v7116_v13 = vld [vmem:[#allocation39_spill] sm:$0xff] }
 0x299   : > { %v3255_v0 = vmul.f32 %v7113_v32, %v2589_v8  ;;  %v3292_v16 = vmul.f32 %v6628_v18, %v2626_v55  ;;  %v1956_v52 = vadd.f32 %v1828_v35, %v6663_v39  ;;  %v1764_v44 = vmul.f32 %v1636_v57, %v6687_v38  ;;  %v4204_v57 = vpop.f32.mrf.mxu0 }
 0x29a   : > { %v2526_v6 = vmul.f32 0.5, %v2398_v43  ;;  %v2019_v19 = vadd.f32 %v1891_v25, %v6649_v31  ;;  %v1826_v51 = vmul.f32 0.044715, %v1698_v12  ;;  %v1634_v22 = vmul.f32 %v6703_v63, %v6703_v63  ;;  %v7117_v12 = vld [vmem:[#allocation32_spill] sm:$0xff] }
 0x29b   : > { %v4682_v53 = vpop.eup %4681  ;;  %v3319_v29 = vmul.f32 %v7114_v10, %v2653_v30  ;;  %v2592_v14 = vmul.f32 %v2464_v26, %v6572_v1  ;;  %v2528_v8 = vmul.f32 0.5, %v2400_v62  ;;  %v2627_v18 = vmul.f32 %v2499_v36, %v7115_v24  ;;  %v6727_v30 = vpop.permute.xlu0 %3118 }
 0x29c   : > { %v2590_v55 = vmul.f32 %v2462_v23, %v6596_v28  ;;  %v2642_v11 = vmul.f32 %v2514_v49, %v7116_v13  ;;  %v1954_v48 = vadd.f32 %v1826_v51, %v6692_v5  ;;  %v1762_v35 = vmul.f32 %v1634_v22, %v6703_v63  ;;  %v4268_v28 = vpop.f32.mrf.mxu1 }
 0x29d   : > { %v3293_v43 = vmul.f32 %v3048_v46, %v2627_v18  ;;  %v2084_v25 = vmul.f32 0.7978846, %v1956_v52  ;;  %v1892_v21 = vmul.f32 0.044715, %v1764_v44  ;;  %v2116_v32 = vmul.f32 0.7978846, %v7117_v12 }
 0x29e   : > { %v2654_v1 = vmul.f32 %v2526_v6, %v6601_v41  ;;  %v2387_v26 = vadd.f32 1.0, %v4682_v53  ;;  %v2082_v62 = vmul.f32 0.7978846, %v1954_v48  ;;  %v1890_v36 = vmul.f32 0.044715, %v1762_v35  ;;  %v7118_v44 = vld [vmem:[#allocation59_spill] sm:$0xff]  ;;  %v1242_v41 = vpop.f32.mrf.mxu0 }
 0x29f   : > { %v3397_v23 = vadd.f32 %v6674_v56, %v3255_v0  ;;  %v3481_v49 = vadd.f32 %v6676_v59, %v3319_v29  ;;  %v3444_v51 = vadd.f32 %v6542_v61, %v3292_v16  ;;  %4689 = vtanh.f32 %v2116_v32  ;;  %v7119_v6 = vld [vmem:[#allocation61_spill] sm:$0xff] }
 0x2a0   : > { %v4684_v46 = vpop.eup %4683  ;;  %v2656_v52 = vmul.f32 %v2528_v8, %v6592_v33  ;;  %v3256_v22 = vmul.f32 %v7118_v44, %v2590_v55  ;;  %v3308_v10 = vmul.f32 %v6656_v17, %v2642_v11  ;;  %4691 = vtanh.f32 %v2082_v62  ;;  %v7120_v0 = vld [vmem:[#allocation45_spill] sm:$0xff]  ;;  %v1498_v17 = vpop.f32.mrf.mxu1 }
 0x2a1   : > { %v3258_v53 = vmul.f32 %v7119_v6, %v2592_v14  ;;  %v6737_v24 = vadd.f32 %v3444_v51, %v3293_v43  ;;  %v6740_v56 = vadd.f32 %v1892_v21, %v6687_v38  ;;  %v2018_v59 = vadd.f32 %v1890_v36, %v6703_v63  ;;  %v6750_v11 = vpop.permute.xlu0 %3185  ;;  %v4205_v51 = vpop.f32.mrf.mxu0  ;;  %v7122_v44 = vld [vmem:[#allocation37_spill] sm:$0xff] }
 0x2a2   : > { %v4686_v61 = vpop.eup %4685  ;;  %v3320_v16 = vmul.f32 %v7120_v0, %v2654_v1  ;;  %v2515_v29 = vmul.f32 0.5, %v2387_v26  ;;  %4693 = vtanh.f32 %v2084_v25  ;;  %v6745_v33 = vadd.f32 %v6684_v54, %v4204_v57  ;;  %v7121_v26 = vld [vmem:[#allocation33_spill] sm:$0xff] }
 0x2a3   : > { %v4688_v8 = vpop.eup %4687  ;;  %v2337_v18 = vadd.f32 1.0, %v4684_v46  ;;  %v2146_v55 = vmul.f32 0.7978846, %v2018_v59  ;;  %v2147_v14 = vmul.f32 0.7978846, %v2019_v19  ;;  %v6748_v13 = vadd.f32 %v6684_v54, %v1242_v41 }
 0x2a4   : > { %v3398_v48 = vadd.f32 %v3397_v23, %v3256_v22  ;;  %v6753_v35 = vadd.f32 %v6645_v9, %v3308_v10  ;;  %v3322_v43 = vmul.f32 %v6613_v60, %v2656_v52  ;;  %v1575_v57 = vmul.f32 %v6745_v33, %v6745_v33  ;;  %v3115_v52 = vpop.permute.xlu1 %3114 }
 0x2a5   : > { %v2339_v25 = vadd.f32 1.0, %v4686_v61  ;;  %4695 = vtanh.f32 %v2146_v55  ;;  %v1573_v21 = vmul.f32 %v6748_v13, %v6748_v13  ;;  %v6761_v19 = vadd.f32 %v6684_v54, %v1498_v17  ;;  %v6774_v59 = vpop.permute.xlu0 %3059 }
 0x2a6   : > { %v2401_v12 = vadd.f32 1.0, %v4688_v8  ;;  %v3482_v32 = vadd.f32 %v3481_v49, %v3320_v16  ;;  %v1703_v1 = vmul.f32 %v1575_v57, %v6745_v33  ;;  %v2117_v9 = vmul.f32 0.7978846, %v7121_v26  ;;  %v7123_v57 = vld [vmem:[#allocation44_spill] sm:$0xff]  ;;  %v1245_v26 = vpop.f32.mrf.mxu0 }
 0x2a7   : > { %v2465_v62 = vmul.f32 0.5, %v2337_v18  ;;  %v6766_v60 = vadd.f32 %v6684_v54, %v4268_v28  ;;  %v1701_v36 = vmul.f32 %v1573_v21, %v6748_v13  ;;  %v1637_v23 = vmul.f32 %v6761_v19, %v6761_v19  ;;  %v4269_v28 = vpop.f32.mrf.mxu1 }
 0x2a8   : > { %v3399_v46 = vadd.f32 %v3398_v48, %v6672_v2  ;;  %v2643_v22 = vmul.f32 %v2515_v29, %v7122_v44  ;;  %v1831_v49 = vmul.f32 0.044715, %v1703_v1  ;;  %4697 = vtanh.f32 %v2117_v9 }
 0x2a9   : > { %v2467_v10 = vmul.f32 0.5, %v2339_v25  ;;  %4699 = vtanh.f32 %v2147_v14  ;;  %v1829_v41 = vmul.f32 0.044715, %v1701_v36  ;;  %v1765_v6 = vmul.f32 %v1637_v23, %v6761_v19  ;;  %v1501_v9 = vpop.f32.mrf.mxu1 }
 0x2aa   : > { %v2529_v61 = vmul.f32 0.5, %v2401_v12  ;;  %v3483_v0 = vadd.f32 %v3482_v32, %v6709_v4  ;;  %v1959_v16 = vadd.f32 %v1831_v49, %v6745_v33  ;;  %v6779_v2 = vadd.f32 %v6684_v54, %v4205_v51 }
 0x2ab   : > { %v2593_v29 = vmul.f32 %v2465_v62, %v6631_v47  ;;  %v6782_v17 = vmul.f32 %v3115_v52, %v2643_v22  ;;  %v1639_v8 = vmul.f32 %v6766_v60, %v6766_v60  ;;  %v1957_v18 = vadd.f32 %v1829_v41, %v6748_v13  ;;  %v6804_v22 = vpop.permute.xlu0 %3126 }
 0x2ac   : > { %v4690_v55 = vpop.eup %4689  ;;  %v3400_v14 = vadd.f32 %v3399_v46, %v3258_v53  ;;  %v1893_v48 = vmul.f32 0.044715, %v1765_v6  ;;  %v2132_v25 = vmul.f32 0.7978846, %v7123_v57  ;;  %v1576_v4 = vmul.f32 %v6779_v2, %v6779_v2  ;;  %v7124_v46 = vld [vmem:[#allocation64_spill] sm:$0xff] }
 0x2ad   : > { %v4692_v21 = vpop.eup %4691  ;;  %v6791_v12 = vmul.f32 %v2467_v10, %v6625_v7  ;;  %v2372_v47 = vadd.f32 1.0, %v4690_v55  ;;  %v2087_v32 = vmul.f32 0.7978846, %v1959_v16  ;;  %v2085_v1 = vmul.f32 0.7978846, %v1957_v18 }
 0x2ae   : > { %v6794_v62 = vmul.f32 %v2529_v61, %v6634_v34  ;;  %v2338_v36 = vadd.f32 1.0, %v4692_v21  ;;  %v6796_v53 = vadd.f32 %v3483_v0, %v3322_v43  ;;  %v1704_v23 = vmul.f32 %v1576_v4, %v6779_v2  ;;  %v7125_v21 = vld [vmem:[#allocation23_spill] sm:$0xff] }
 0x2af   : > { %v4694_v51 = vpop.eup %4693  ;;  %v3259_v52 = vmul.f32 %v7124_v46, %v2593_v29  ;;  %v1767_v44 = vmul.f32 %v1639_v8, %v6766_v60  ;;  %4701 = vtanh.f32 %v2085_v1  ;;  %v6802_v7 = vadd.f32 %v6684_v54, %v4269_v28  ;;  %v6814_v28 = vpop.permute.xlu1 %3181 }
 0x2b0   : > { %4703 = vtanh.f32 %v2132_v25  ;;  %v1832_v49 = vmul.f32 0.044715, %v1704_v23  ;;  %v6807_v34 = vadd.f32 %v6684_v54, %v1245_v26  ;;  %v6810_v43 = vadd.f32 %v6684_v54, %v1501_v9  ;;  %v6827_v9 = vpop.permute.xlu0 %3193 }
 0x2b1   : > { %v2500_v10 = vmul.f32 0.5, %v2372_v47  ;;  %4705 = vtanh.f32 %v2087_v32  ;;  %v2021_v41 = vadd.f32 %v1893_v48, %v6761_v19  ;;  %v2133_v6 = vmul.f32 0.7978846, %v6546_v58 }
 0x2b2   : > { %v4696_v61 = vpop.eup %4695  ;;  %v2466_v0 = vmul.f32 0.5, %v2338_v36  ;;  %v1960_v16 = vadd.f32 %v1832_v49, %v6779_v2  ;;  %v1574_v29 = vmul.f32 %v6807_v34, %v6807_v34  ;;  %v1638_v8 = vmul.f32 %v6810_v43, %v6810_v43 }
 0x2b3   : > { %v3401_v54 = vadd.f32 %v3400_v14, %v3259_v52  ;;  %v2340_v18 = vadd.f32 1.0, %v4694_v51  ;;  %v2402_v55 = vadd.f32 1.0, %v4696_v61  ;;  %v1895_v57 = vmul.f32 0.044715, %v1767_v44  ;;  %v7126_v44 = vld [vmem:[#allocation35_spill] sm:$0xff] }
 0x2b4   : > { %v2088_v25 = vmul.f32 0.7978846, %v1960_v16  ;;  %v1702_v48 = vmul.f32 %v1574_v29, %v6807_v34  ;;  %v1766_v58 = vmul.f32 %v1638_v8, %v6810_v43  ;;  %4707 = vtanh.f32 %v2133_v6  ;;  %v3056_v6 = vpop.permute.xlu1 %3055 }
 0x2b5   : > { %v4698_v4 = vpop.eup %4697  ;;  %v2628_v47 = vmul.f32 %v2500_v10, %v7125_v21  ;;  %v1640_v32 = vmul.f32 %v6802_v7, %v6802_v7  ;;  %v2148_v1 = vmul.f32 0.7978846, %v6740_v56  ;;  %v2149_v26 = vmul.f32 0.7978846, %v2021_v41  ;;  %v7130_v21 = vld [vmem:[#allocation43_spill] sm:$0xff] }
 0x2b6   : > { %v4700_v14 = vpop.eup %4699  ;;  %v2594_v36 = vmul.f32 %v2466_v0, %v6692_v5  ;;  %v2373_v23 = vadd.f32 1.0, %v4698_v4  ;;  %4709 = vtanh.f32 %v2088_v25  ;;  %v1830_v51 = vmul.f32 0.044715, %v1702_v48  ;;  %v7127_v5 = vld [vmem:[#allocation34_spill] sm:$0xff] }
 0x2b7   : > { %v3294_v46 = vmul.f32 %v6706_v45, %v2628_v47  ;;  %v1894_v52 = vmul.f32 0.044715, %v1766_v58  ;;  %4711 = vtanh.f32 %v2148_v1  ;;  %v2118_v49 = vmul.f32 0.7978846, %v7126_v44  ;;  %v7128_v45 = vld [vmem:[#allocation27_spill] sm:$0xff]  ;;  %v6840_v1 = vpop.permute.xlu0 %3067 }
 0x2b8   : > { %v2530_v10 = vmul.f32 0.5, %v2402_v55  ;;  %v2501_v61 = vmul.f32 0.5, %v2373_v23  ;;  %v1958_v56 = vadd.f32 %v1830_v51, %v6807_v34  ;;  %4713 = vtanh.f32 %v2149_v26  ;;  %v7129_v58 = vld [vmem:[#allocation63_spill] sm:$0xff] }
 0x2b9   : > { %v1768_v41 = vmul.f32 %v1640_v32, %v6802_v7  ;;  %v2022_v16 = vadd.f32 %v1894_v52, %v6810_v43  ;;  %4715 = vtanh.f32 %v2118_v49  ;;  %v2119_v0 = vmul.f32 0.7978846, %v7127_v5 }
 0x2ba   : > { %v2468_v29 = vmul.f32 0.5, %v2340_v18  ;;  %v2403_v8 = vadd.f32 1.0, %v4700_v14  ;;  %v2629_v25 = vmul.f32 %v2501_v61, %v7128_v45  ;;  %v2086_v48 = vmul.f32 0.7978846, %v1958_v56  ;;  %v6849_v56 = vpop.permute.xlu1 %3122  ;;  %v7133_v45 = vld [vmem:[#allocation26_spill] sm:$0xff] }
 0x2bb   : > { %v3260_v4 = vmul.f32 %v7129_v58, %v2594_v36  ;;  %4717 = vtanh.f32 %v2119_v0  ;;  %v2134_v55 = vmul.f32 0.7978846, %v6563_v50  ;;  %v2135_v47 = vmul.f32 0.7978846, %v7130_v21  ;;  %v7132_v0 = vld [vmem:[#allocation38_spill] sm:$0xff] }
 0x2bc   : > { %v4702_v32 = vpop.eup %4701  ;;  %v2658_v26 = vmul.f32 %v2530_v10, %v6703_v63  ;;  %v3446_v23 = vadd.f32 %v6737_v24, %v3294_v46  ;;  %v3295_v51 = vmul.f32 %v3056_v6, %v2629_v25  ;;  %4719 = vtanh.f32 %v2086_v48  ;;  %v7131_v46 = vld [vmem:[#allocation66_spill] sm:$0xff]  ;;  %v7135_v48 = vld [vmem:[#allocation65_spill] sm:$0xff] }
 0x2bd   : > { %v4704_v18 = vpop.eup %4703  ;;  %v3323_v14 = vmul.f32 %v6695_v40, %v6794_v62  ;;  %v1896_v52 = vmul.f32 0.044715, %v1768_v41  ;;  %4721 = vtanh.f32 %v2134_v55  ;;  %v2150_v36 = vmul.f32 0.7978846, %v2022_v16 }
 0x2be   : > { %v4706_v44 = vpop.eup %4705  ;;  %v2596_v50 = vmul.f32 %v2468_v29, %v6663_v39  ;;  %v2341_v49 = vadd.f32 1.0, %v4702_v32  ;;  %v6847_v61 = vadd.f32 %v3446_v23, %v3295_v51  ;;  %4723 = vtanh.f32 %v2135_v47 }
 0x2bf   : > { %v3402_v63 = vadd.f32 %v3401_v54, %v3260_v4  ;;  %v2531_v24 = vmul.f32 0.5, %v2403_v8  ;;  %4725 = vtanh.f32 %v2150_v36  ;;  %v3261_v10 = vmul.f32 %v7131_v46, %v6791_v12  ;;  %v6858_v54 = vpop.permute.xlu0 %3134  ;;  %v3524_v36 = vld [vmem:[#allocation3] sm:$0xff] }
 0x2c0   : > { %v3324_v40 = vmul.f32 %v6678_v42, %v2658_v26  ;;  %v3485_v62 = vadd.f32 %v6796_v53, %v3323_v14  ;;  %v2023_v6 = vadd.f32 %v1895_v57, %v6766_v60  ;;  %v2343_v41 = vadd.f32 1.0, %v4706_v44  ;;  %v7134_v53 = vld [vmem:[#allocation42_spill] sm:$0xff]  ;;  %v6871_v26 = vpop.permute.xlu1 %3189 }
 0x2c1   : > { %v4708_v39 = vpop.eup %4707  ;;  %v2388_v16 = vadd.f32 1.0, %v4704_v18  ;;  %v2024_v5 = vadd.f32 %v1896_v52, %v6802_v7  ;;  %v2120_v29 = vmul.f32 0.7978846, %v7132_v0  ;;  %v3390_v8 = vrot.slane %v6579_v3, 2 }
 0x2c2   : > { %v6863_v12 = vadd.f32 %v6753_v35, %v6782_v17  ;;  %v2469_v42 = vmul.f32 0.5, %v2341_v49  ;;  %v6867_v25 = vsel %vm3507_vm1, %v7134_v53, %v7133_v45  ;;  %v3262_v58 = vmul.f32 %v7135_v48, %v2596_v50  ;;  %v7137_v48 = vld [vmem:[#allocation68_spill] sm:$0xff] }
 0x2c3   : > { %v4710_v57 = vpop.eup %4709  ;;  %v3403_v4 = vadd.f32 %v3402_v63, %v3261_v10  ;;  %v2659_v55 = vmul.f32 %v2531_v24, %v6649_v31  ;;  %4727 = vtanh.f32 %v2120_v29  ;;  %v3486_v47 = vadd.f32 %v3485_v62, %v3324_v40  ;;  %v3526_v44 = vpop.xlane.xlu0 %3525 }
 0x2c4   : > { %v4712_v21 = vpop.eup %4711  ;;  %v2389_v32 = vadd.f32 1.0, %v4708_v39  ;;  %v2136_v35 = vmul.f32 0.7978846, %v6557_v27  ;;  %v2151_v17 = vmul.f32 0.7978846, %v2023_v6  ;;  %v2471_v51 = vmul.f32 0.5, %v2343_v41 }
 0x2c5   : > { %v4714_v23 = vpop.eup %4713  ;;  %v2516_v18 = vmul.f32 0.5, %v2388_v16  ;;  %v2404_v14 = vadd.f32 1.0, %v4712_v21  ;;  %v2152_v52 = vmul.f32 0.7978846, %v2024_v5  ;;  %v2597_v49 = vmul.f32 %v2469_v42, %v6748_v13  ;;  %v7136_v42 = vld [vmem:[#allocation40_spill] sm:$0xff] }
 0x2c6   : > { %v4716_v50 = vpop.eup %4715  ;;  %v2344_v31 = vadd.f32 1.0, %v4710_v57  ;;  %v2405_v63 = vadd.f32 1.0, %v4714_v23  ;;  %4729 = vtanh.f32 %v2136_v35  ;;  %v3325_v27 = vmul.f32 %v6814_v28, %v2659_v55  ;;  %v3064_v57 = vpop.permute.xlu1 %3063 }
 0x2c7   : > { %v2532_v24 = vmul.f32 0.5, %v2404_v14  ;;  %v2374_v46 = vadd.f32 1.0, %v4716_v50  ;;  %4731 = vtanh.f32 %v2151_v17  ;;  %v2517_v40 = vmul.f32 0.5, %v2389_v32  ;;  %v7138_v50 = vld [vmem:[#allocation70_spill] sm:$0xff] }
 0x2c8   : > { %v4718_v10 = vpop.eup %4717  ;;  %4733 = vtanh.f32 %v2152_v52  ;;  %v3527_v62 = vadd.f32 %v3526_v44, %v3524_v36  ;;  %v3404_v39 = vadd.f32 %v3403_v4, %v3262_v58  ;;  %v2533_v16 = vmul.f32 0.5, %v2405_v63  ;;  %v7139_v63 = vld [vmem:[#allocation29_spill] sm:$0xff] }
 0x2c9   : > { %v4720_v6 = vpop.eup %4719  ;;  %v2660_v41 = vmul.f32 %v2532_v24, %v6687_v38  ;;  %v2375_v5 = vadd.f32 1.0, %v4718_v10  ;;  %v3487_v0 = vadd.f32 %v3486_v47, %v3325_v27  ;;  %v2599_v29 = vmul.f32 %v2471_v51, %v6745_v33 }
 0x2ca   : > { %v4722_v13 = vpop.eup %4721  ;;  %v2644_v45 = vmul.f32 %v2516_v18, %v7136_v42  ;;  %v2342_v53 = vadd.f32 1.0, %v4720_v6  ;;  %3529 = vst.msk [vmem:[#allocation3] sm:$0xff] %vm3528_vm2, %v3527_v62  ;;  %v3263_v55 = vmul.f32 %v7137_v48, %v2597_v49  ;;  %v2472_v21 = vmul.f32 0.5, %v2344_v31  ;;  %v7141_v62 = vld [vmem:[#allocation28_spill] sm:$0xff] }
 0x2cb   : > { %v4724_v28 = vpop.eup %4723  ;;  %v2502_v32 = vmul.f32 0.5, %v2374_v46  ;;  %v2390_v58 = vadd.f32 1.0, %v4722_v13  ;;  %v2645_v47 = vmul.f32 %v2517_v40, %v6383_v20  ;;  %v3326_v23 = vmul.f32 %v6750_v11, %v2660_v41  ;;  %v7140_v11 = vld [vmem:[#allocation67_spill] sm:$0xff] }
 0x2cc   : > { %v4726_v4 = vpop.eup %4725  ;;  %v3310_v38 = vmul.f32 %v6727_v30, %v2644_v45  ;;  %v2470_v35 = vmul.f32 0.5, %v2342_v53  ;;  %v2391_v17 = vadd.f32 1.0, %v4724_v28  ;;  %v3405_v33 = vadd.f32 %v3404_v39, %v3263_v55 }
 0x2cd   : > { %v2661_v51 = vmul.f32 %v2533_v16, %v6761_v19  ;;  %v2503_v18 = vmul.f32 0.5, %v2375_v5  ;;  %v3311_v52 = vmul.f32 %v6849_v56, %v2645_v47  ;;  %v2518_v36 = vmul.f32 0.5, %v2390_v58  ;;  %v3131_v19 = vpop.permute.xlu1 %3130 }
 0x2ce   : > { %v2598_v14 = vmul.f32 %v2470_v35, %v6807_v34  ;;  %v2406_v44 = vadd.f32 1.0, %v4726_v4  ;;  %v3265_v49 = vmul.f32 %v7138_v50, %v2599_v29  ;;  %v2600_v30 = vmul.f32 %v2472_v21, %v6779_v2 }
 0x2cf   : > { %v3488_v31 = vadd.f32 %v3487_v0, %v3326_v23  ;;  %v2630_v20 = vmul.f32 %v2502_v32, %v7139_v63  ;;  %v3467_v46 = vadd.f32 %v6863_v12, %v3310_v38  ;;  %v2519_v27 = vmul.f32 0.5, %v2391_v17  ;;  %v7142_v12 = vld [vmem:[#allocation69_spill] sm:$0xff] }
 0x2d0   : > { %v4728_v24 = vpop.eup %4727  ;;  %v3264_v10 = vmul.f32 %v7140_v11, %v2598_v14  ;;  %v2534_v40 = vmul.f32 0.5, %v2406_v44  ;;  %v3327_v34 = vmul.f32 %v6871_v26, %v2661_v51  ;;  %v2631_v6 = vmul.f32 %v2503_v18, %v7141_v62 }
 0x2d1   : > { %v3296_v56 = vmul.f32 %v6774_v59, %v2630_v20  ;;  %v2376_v39 = vadd.f32 1.0, %v4728_v24  ;;  %v3468_v2 = vadd.f32 %v3467_v46, %v3311_v52  ;;  %v2646_v16 = vmul.f32 %v2518_v36, %v6452_v37  ;;  %v7143_v59 = vld [vmem:[#allocation41_spill] sm:$0xff]  ;;  %v3198_v21 = vpop.permute.xlu1 %3197 }
 0x2d2   : > { %v3406_v41 = vadd.f32 %v3405_v33, %v3264_v10  ;;  %v2662_v5 = vmul.f32 %v2534_v40, %v6810_v43  ;;  %v3266_v0 = vmul.f32 %v7142_v12, %v2600_v30  ;;  %v3489_v29 = vadd.f32 %v3488_v31, %v3327_v34  ;;  %v7144_v43 = vld [vmem:[#allocation30_spill] sm:$0xff] }
 0x2d3   : > { %v4730_v13 = vpop.eup %4729  ;;  %v3297_v42 = vmul.f32 %v3064_v57, %v2631_v6  ;;  %v2504_v45 = vmul.f32 0.5, %v2376_v39  ;;  %v3312_v26 = vmul.f32 %v6804_v22, %v2646_v16  ;;  %v2647_v48 = vmul.f32 %v2519_v27, %v7143_v59 }
 0x2d4   : > { %v4732_v53 = vpop.eup %4731  ;;  %v3407_v28 = vadd.f32 %v3406_v41, %v3265_v49  ;;  %v2392_v55 = vadd.f32 1.0, %v4730_v13  ;;  %v3448_v58 = vadd.f32 %v6847_v61, %v3296_v56  ;;  %v3328_v37 = vmul.f32 %v6827_v9, %v2662_v5 }
 0x2d5   : > { %v4734_v32 = vpop.eup %4733  ;;  %v2632_v4 = vmul.f32 %v2504_v45, %v7144_v43  ;;  %v2407_v38 = vadd.f32 1.0, %v4732_v53  ;;  %v3313_v47 = vmul.f32 %v3131_v19, %v2647_v48  ;;  %v3391_v22 = vadd.f32 %v3390_v8, %v6579_v3  ;;  %v3202_v31 = vpop.permute.xlu1 %3201  ;;  %v7145_v8 = vld [vmem:[#allocation36_spill] sm:$0xff] }
 0x2d6   : > { %v3408_v35 = vadd.f32 %v3407_v28, %v3266_v0  ;;  %v2520_v57 = vmul.f32 0.5, %v2392_v55  ;;  %v2408_v17 = vadd.f32 1.0, %v4734_v32  ;;  %v3449_v33 = vadd.f32 %v3448_v58, %v3297_v42  ;;  %v2666_v58 = vld [vmem:[#allocation2] sm:$0xff] }
 0x2d7   : > { %v3298_v23 = vmul.f32 %v6840_v1, %v2632_v4  ;;  %v2535_v51 = vmul.f32 0.5, %v2407_v38  ;;  %v3469_v14 = vadd.f32 %v3468_v2, %v3312_v26  ;;  %v3490_v52 = vadd.f32 %v3489_v29, %v3328_v37 }
 0x2d8   : > { %v3409_v18 = vrot.slane %v3408_v35, 4  ;;  %v2648_v61 = vmul.f32 %v2520_v57, %v6413_v15  ;;  %v2536_v9 = vmul.f32 0.5, %v2408_v17  ;;  %v7146_v1 = vrot.slane %v7145_v8, 2 }
 0x2d9   : > { %v3450_v36 = vadd.f32 %v3449_v33, %v3298_v23  ;;  %v2663_v44 = vmul.f32 %v2535_v51, %v6766_v60  ;;  %v3470_v49 = vadd.f32 %v3469_v14, %v3313_v47  ;;  %v3392_v20 = vrot.slane %v3391_v22, 1 }
 0x2da   : > { %v3410_v50 = vadd.f32 %v3409_v18, %v3408_v35  ;;  %v3314_v30 = vmul.f32 %v6858_v54, %v2648_v61  ;;  %v2664_v3 = vmul.f32 %v2536_v9, %v6802_v7  ;;  %v3433_v63 = vadd.f32 %v7146_v1, %v7145_v8 }
 0x2db   : > { %v3451_v24 = vrot.slane %v3450_v36, 4  ;;  %v3329_v46 = vmul.f32 %v3198_v21, %v2663_v44  ;;  %v3393_v56 = vadd.f32 %v3392_v20, %v3391_v22 }
 0x2dc   : > { %v3411_v15 = vrot.slane %v3410_v50, 2  ;;  %v3471_v11 = vadd.f32 %v3470_v49, %v3314_v30  ;;  %v3330_v27 = vmul.f32 %v3202_v31, %v2664_v3  ;;  %v3434_v34 = vrot.slane %v3433_v63, 1 }
 0x2dd   : > { %v3452_v10 = vadd.f32 %v3451_v24, %v3450_v36  ;;  %v3491_v19 = vadd.f32 %v3490_v52, %v3329_v46  ;;  %v3510_v12 = vsel %vm3509_vm3, %v3393_v56, %v6867_v25 }
 0x2de   : > { %v3412_v60 = vadd.f32 %v3411_v15, %v3410_v50  ;;  %v3472_v40 = vrot.slane %v3471_v11, 4  ;;  %v3435_v5 = vadd.f32 %v3434_v34, %v3433_v63 }
 0x2df   : > { %v3453_v54 = vrot.slane %v3452_v10, 2  ;;  %v3492_v62 = vadd.f32 %v3491_v19, %v3330_v27 }
 0x2e0   : > { %v3413_v6 = vrot.slane %v3412_v60, 1  ;;  %v3473_v7 = vadd.f32 %v3472_v40, %v3471_v11 }
 0x2e1   : > { %v3454_v39 = vadd.f32 %v3453_v54, %v3452_v10  ;;  %v3493_v41 = vrot.slane %v3492_v62, 4 }
 0x2e2   : > { %v3414_v2 = vadd.f32 %v3413_v6, %v3412_v60  ;;  %v3474_v16 = vrot.slane %v3473_v7, 2 }
 0x2e3   : > { %v3455_v13 = vrot.slane %v3454_v39, 1  ;;  %v3494_v0 = vadd.f32 %v3493_v41, %v3492_v62 }
 0x2e4   : > { %v3512_v29 = vsel %vm3511_vm4, %v3414_v2, %v3510_v12  ;;  %v3475_v42 = vadd.f32 %v3474_v16, %v3473_v7 }
 0x2e5   : > { %v3456_v45 = vadd.f32 %v3455_v13, %v3454_v39  ;;  %v3514_v53 = vsel %vm3513_vm5, %v3435_v5, %v3512_v29  ;;  %v3495_v28 = vrot.slane %v3494_v0, 2 }
 0x2e6   : > { %v3476_v26 = vrot.slane %v3475_v42, 1 }
 0x2e7   : > { %v3516_v59 = vsel %vm3515_vm6, %v3456_v45, %v3514_v53  ;;  %v3496_v48 = vadd.f32 %v3495_v28, %v3494_v0 }
 0x2e8   : > { %v3477_v55 = vadd.f32 %v3476_v26, %v3475_v42 }
 0x2e9   : > { %v3497_v21 = vrot.slane %v3496_v48, 1 }
 0x2ea   : > { %v3518_v32 = vsel %vm3517_vm7, %v3477_v55, %v3516_v59 }
 0x2eb   : > { %v3498_v37 = vadd.f32 %v3497_v21, %v3496_v48 }
 0x2ec   : > { %3533 = sbr.rel (%p4015_p6) target bundleno = 1097 (0x449), region = 68 }
 0x2ed   : > { %v3520_v43 = vsel %vm3519_vm8, %v3498_v37, %v3518_v32 }
 0x2ee   : > { %v3522_v4 = vadd.f32 %v3520_v43, %v2666_v58 }
 0x2f0   : > { %3523 = vst [vmem:[#allocation2] sm:$0xff] %v3522_v4 }
 0x2f1   : > { %v3535_v25 = vld [vmem:[#allocation3] sm:$0xff]  ;;  %v4958_v38 = vmov 0   ;;  %v4959_v57 = vmov 0.0   ;;  %v4743_v22 = vld [vmem:[#allocation10 + $0xb0] ss:$12 sps:$4 sm:$0xff]   ;;  %vm4960_vm9 = vmmov 0  }
 0x2f2   : > { %4739 = vset.pattern.permute.xlu0 %v4958_v38  ;;  %v3536_v35 = vmax.f32 %v3535_v25, 1e-09  ;;  %v4740_v47 = vld [vmem:[#allocation10 + $0xac] ss:$12 sps:$4 sm:$0xff]   ;;  %4270 = vmatprep.subr.bf16.mxu1 %v4959_v57  ;;  %v4742_v17 = vld [vmem:[#allocation10 + $0xa8] ss:$12 sps:$4 sm:$0xff]  }
 0x2f3   : > { %3754 = vmatprep.mubr.bf16.mxu0 %v4958_v38  ;;  %4286 = vmatprep.mubr.msk.bf16.mxu1 %vm4960_vm9, %v4959_v57  ;;  %v4744_v33 = vld [vmem:[#allocation10 + $0x94] ss:$12 sps:$4 sm:$0xff]   ;;  %v4746_v23 = vld [vmem:[#allocation10 + $0x90] ss:$12 sps:$4 sm:$0xff]   ;;  %v4747_v51 = vld [vmem:[#allocation10 + $0x98] ss:$12 sps:$4 sm:$0xff]  }
 0x2f4   : > { %3539 = vperm.xlu0 %4739, %v3536_v35   ;;  %3722 = vmatprep.subr.bf16.mxu0 %v4740_v47  ;;  %v4748_v18 = vld [vmem:[#allocation10 + $0x7c] ss:$12 sps:$4 sm:$0xff]   ;;  %v4750_v14 = vld [vmem:[#allocation10 + $0x78] ss:$12 sps:$4 sm:$0xff]   ;;  %v4751_v61 = vld [vmem:[#allocation10 + $0x80] ss:$12 sps:$4 sm:$0xff]  }
 0x2f5   : > { %3723 = vmatpush1.bf16.msra.mxu0 %v4742_v17  ;;  %4271 = vmatpush3.bf16.msra.mxu1 %v4743_v22  ;;  %v4752_v9 = vld [vmem:[#allocation10 + $0x64] ss:$12 sps:$4 sm:$0xff]   ;;  %v4754_v52 = vld [vmem:[#allocation10 + $0x60] ss:$12 sps:$4 sm:$0xff]   ;;  %v4755_v36 = vld [vmem:[#allocation10 + $0x68] ss:$12 sps:$4 sm:$0xff]  }
 0x2f6   : > { %3724 = vmatprep.subr.bf16.mxu0 %v4744_v33  ;;  %4272 = vmatprep.subr.bf16.mxu1 %v4959_v57  ;;  %v4756_v44 = vld [vmem:[#allocation10 + $0x4c] ss:$12 sps:$4 sm:$0xff]   ;;  %v4758_v50 = vld [vmem:[#allocation10 + $0x48] ss:$12 sps:$4 sm:$0xff]   ;;  %v4759_v49 = vld [vmem:[#allocation10 + $0x50] ss:$12 sps:$4 sm:$0xff]  }
 0x2f7   : > { %v4760_v30 = vld [vmem:[#allocation10 + $0x34] ss:$12 sps:$4 sm:$0xff]   ;;  %v4762_v31 = vld [vmem:[#allocation10 + $0x30] ss:$12 sps:$4 sm:$0xff]   ;;  %v4763_v3 = vld [vmem:[#allocation10 + $0x38] ss:$12 sps:$4 sm:$0xff]  }
 0x2f8   : > { %v4764_v8 = vld [vmem:[#allocation10 + $0x1c] ss:$12 sps:$4 sm:$0xff]   ;;  %v4766_v1 = vld [vmem:[#allocation10 + $0x18] ss:$12 sps:$4 sm:$0xff]   ;;  %v4767_v63 = vld [vmem:[#allocation10 + $0x20] ss:$12 sps:$4 sm:$0xff]  }
 0x2f9   : > { %3725 = vmatpush1.bf16.msra.mxu0 %v4746_v23  ;;  %4273 = vmatpush3.bf16.msra.mxu1 %v4747_v51  ;;  %v4768_v20 = vld [vmem:[#allocation10 + $0x4] ss:$12 sps:$4 sm:$0xff]   ;;  %v4770_v24 = vld [vmem:[#allocation10] ss:$12 sps:$4 sm:$0xff]   ;;  %v4771_v46 = vld [vmem:[#allocation10 + $0x8] ss:$12 sps:$4 sm:$0xff]  }
 0x2fa   : > { %3726 = vmatprep.subr.bf16.mxu0 %v4748_v18  ;;  %4274 = vmatprep.subr.bf16.mxu1 %v4959_v57  ;;  %v3534_v11 = vld [vmem:[#allocation2] sm:$0xff]  ;;  %v7147_v40 = vld [vmem:[#allocation22_spill] sm:$0xff] }
 0x2fb   : > { %v3577_v60 = vld [vmem:[%s6960_s5] sm:$0x7]  ;;  %v7148_v34 = vsub.s32 0, %v7147_v40  ;;  %v7149_v54 = vsub.s32 2, %v7147_v40  ;;  %v7150_v6 = vsub.s32 1, %v7147_v40 }
 0x2fd   : > { %3727 = vmatpush1.bf16.msra.mxu0 %v4750_v14  ;;  %4275 = vmatpush3.bf16.msra.mxu1 %v4751_v61  ;;  %v3582_v56 = vrot.slane %v3577_v60, %v7148_v34  ;;  %v3590_v62 = vrot.slane %v3577_v60, %v7149_v54  ;;  %v3586_v7 = vrot.slane %v3577_v60, %v7150_v6 }
 0x2fe   : > { %3728 = vmatprep.subr.bf16.mxu0 %v4752_v9  ;;  %4276 = vmatprep.subr.bf16.mxu1 %v4959_v57 }
 0x301   : > { %3729 = vmatpush1.bf16.msra.mxu0 %v4754_v52  ;;  %4277 = vmatpush3.bf16.msra.mxu1 %v4755_v36 }
 0x302   : > { %3730 = vmatprep.subr.bf16.mxu0 %v4756_v44  ;;  %4278 = vmatprep.subr.bf16.mxu1 %v4959_v57 }
 0x305   : > { %3731 = vmatpush1.bf16.msra.mxu0 %v4758_v50  ;;  %4279 = vmatpush3.bf16.msra.mxu1 %v4759_v49 }
 0x306   : > { %3732 = vmatprep.subr.bf16.mxu0 %v4760_v30  ;;  %4280 = vmatprep.subr.bf16.mxu1 %v4959_v57 }
 0x309   : > { %3733 = vmatpush1.bf16.msra.mxu0 %v4762_v31  ;;  %4281 = vmatpush3.bf16.msra.mxu1 %v4763_v3 }
 0x30a   : > { %3734 = vmatprep.subr.bf16.mxu0 %v4764_v8  ;;  %4282 = vmatprep.subr.bf16.mxu1 %v4959_v57 }
 0x30d   : > { %3735 = vmatpush1.bf16.msra.mxu0 %v4766_v1  ;;  %4283 = vmatpush3.bf16.msra.mxu1 %v4767_v63 }
 0x30e   : > { %3736 = vmatprep.subr.bf16.mxu0 %v4768_v20  ;;  %4284 = vmatprep.subr.bf16.mxu1 %v4959_v57 }
 0x311   : > { %3737 = vmatpush1.bf16.msra.mxu0 %v4770_v24  ;;  %4285 = vmatpush3.bf16.msra.mxu1 %v4771_v46 }
 0x36f   : > { %v3540_v15 = vpop.permute.xlu0 %3539 }
 0x370   : > { %4772 = vrcp.f32 %v3540_v15 }
 0x37d   : > { %v4773_v10 = vpop.eup %4772 }
 0x37e   : > { %v3543_v19 = vmul.f32 %v4773_v10, %v3534_v11 }
 0x380   : > { %v3544_v27 = vpack.c.bf16 %v3543_v19, %v3543_v19 }
 0x382   : > { %3755 = vmatmul.mubr.bf16.vlgmr.msra.gmra.mxu0 %v3544_v27  ;;  %4287 = vmatmul.mubr.bf16.vlgmr.msra.gmra.mxu1 %v3544_v27 }
 0x442   : > { %v3756_v39 = vpop.f32.mrf.mxu0  ;;  %v3797_v41 = vpop.f32.mrf.mxu1 }
 0x443   : > { %v3757_v2 = vadd.f32 %v3756_v39, %v3582_v56  ;;  %v3798_v16 = vadd.f32 %v3797_v41, %v3590_v62 }
 0x444   : > { %v3758_v5 = vpop.f32.mrf.mxu0  ;;  %v4288_v13 = vpop.f32.mrf.mxu1 }
 0x445   : > { %3803 = vst [vmem:[#allocation12] sm:$0xff] %v3757_v2  ;;  %3805 = vst [vmem:[#allocation12 + $0x10] sm:$0xff] %v3798_v16  ;;  %v3759_v12 = vadd.f32 %v3758_v5, %v3586_v7 }
 0x446   : > { %v3760_v0 = vpop.f32.mrf.mxu0  ;;  %v3800_v29 = vpop.f32.mrf.mxu1 }
 0x447   : > { %3804 = vst [vmem:[#allocation12 + $0x8] sm:$0xff] %v3759_v12 }
 0x448   : > { %v3761_v42 = vpop.f32.mrf.mxu0  ;;  %v4289_v45 = vpop.f32.mrf.mxu1 }
 0x449 PF: > { %p4340_p5 = scmp.eq.s32.totalorder %s5026_s27, 1  ;;  %s4961_s19 = smov [#allocation12]  }
 0x44a   : > { %s3816_s21 = sshll.u32 %s4961_s19, 4  ;;  %s3817_s21 = int_to_ptr.vmem [resolvable:$true] %s3816_s21 }
 0x44b   : > { %s4852_s16 = scalar_lea.vmem %s3817_s21, 384  ;;  %p4859_p7 = scmp.lt.s32.totalorder %s3817_s21, %s3817_s21 }
 0x44c   : > { %p4853_p8 = scmp.ne.s32.totalorder %s3817_s21, %s4852_s16  ;;  %p4860_p9 = scmp.lt.s32.totalorder %s4852_s16, %s4852_s16 }
 0x44e   : > { %p4854_p12 = pnand %p4853_p8, %p4340_p5  ;;  %p4861_p11 = por %p4860_p9, %p4859_p7 }
 0x450   : > { %p4855_p13 = pneg %p4854_p12 }
 0x452   : > { %p4862_p0 = pnand %p4861_p11, %p4855_p13 }
 0x454   : > { %4865 = shalt.err (!%p4862_p0)
}
 0x455   : > { %4326 = dma.vmem_to_hbm [thread:$0]  (%p4340_p5), %s3817_s21, 384, %s6961_s6, [#allocation6]  }
 0x456   : > { %4917 = dma.done.wait (%p4340_p5), [#allocation6], 384  }
 0x457   : > { %4919 = vsyncadd (%p4340_p5), [#allocation6], 4294966912 }
 0x458 PF: > { %s24_s26 = sadd.s32 1, %s4942_s26   ;;  %s7151_s12 = sld [smem:[#allocation21_spill]] }
 0x459   : > { %p21_p3 = scmp.ge.s32.totalorder %s24_s26, 4   ;;  %s7152_s21 = smov %s4926_s22 }
 0x45a   : > { %s7153_s22 = smov %s4930_s23  ;;  %s7154_s23 = smov %s5052_s9 }
 0x45b   : > { %s7155_s24 = smov %s4938_s25  ;;  %23 = sbr.rel (!%p21_p3) target bundleno = 12 (0xc), region = 116 }
 0x45e   : > { %s7156_s25 = smov %s7151_s12 }
 0x460   :  { %3829 = vsyncpa [#allocation5], 1 }
 0x461   :  { %3831 = vsyncpa [#allocation5 + $0x1], 1 }
 0x462   :  { %3832 = vsyncpa [#allocation8], 1 }
 0x463   :  { %3834 = vsyncpa [#allocation8 + $0x1], 1 }
 0x464   :  { %3835 = vsyncpa [#allocation11], 1 }
 0x465   :  { %3836 = vsyncpa [#allocation6], 1 }
 0x466   :  { %3838 = vsyncpa [#allocation6 + $0x1], 1 }

</bundles_post_ra>
